<compile_context>
chip_gen: v5e
topology: v5e:2x2
jax: 0.10.0
libtpu: 0.0.40
codegen_flags: <defaults>
</compile_context>

<pallas_src>
import numpy as np

import jax
import jax.numpy as jnp
from jax import lax
from jax.experimental import pallas as pl
from jax.experimental.pallas import tpu as pltpu


def _round_up(x, m):
    return ((x + m - 1) // m) * m


# ---------------------------------------------------------------------------
# Fused Pallas kernel (one batch tile per grid step, everything stays in VMEM)
# ---------------------------------------------------------------------------
def _cnn_fused_kernel(x_ref, a1_ref, b1_ref, a2_ref, b2_ref,
                      wf1_ref, bf1_ref, wf2_ref, bf2_ref, out_ref):
    f32 = jnp.float32
    bf16 = jnp.bfloat16
    bt = x_ref.shape[2]

    x = x_ref[...]            # (4, 8, bt, 32) bf16: x[e, u, b, s] = image[b, 4u+e, s]
    a1 = a1_ref[...]          # (160, 256) bf16  banded conv1 weights, dw halves along N
    a2 = a2_ref[...]          # (640, 256) bf16  banded conv2 weights, dw halves along N
    wf1 = wf1_ref[...]        # (5, 128, 128) bf16  fc1 split-K blocks (one per pooled row p)

    # --- Conv1 (1->8, 5x5, VALID) + ReLU + 2x2 max-pool ---------------------
    # Produced in row-parity-split form, batch folded into M:
    #   p1[par][u*bt + b, q*8 + c] = pooled1[b, c, 2u+par, q]   (lanes 112..127 == 0)
    p1 = []
    for par in range(2):
        acc = None
        for dh in range(2):
            base = 2 * par + dh
            pieces = [x[(base + i) % 4, (base + i) // 4:(base + i) // 4 + 7]
                      for i in range(5)]                                  # (7, bt, 32)
            lhs = jnp.concatenate(pieces, axis=-1).reshape(7 * bt, 160)   # (7bt, 160)
            cand = jnp.dot(lhs, a1, preferred_element_type=f32)           # (7bt, 256)
            acc = cand if acc is None else jnp.maximum(acc, cand)
        pooled = jnp.maximum(acc[:, :128], acc[:, 128:]) + b1_ref[...]    # dw max + bias
        p1.append(jnp.maximum(pooled, 0.0).astype(bf16))                  # (7bt, 128)

    # --- Conv2 (8->16, 5x5, VALID) + ReLU + 2x2 max-pool ---------------------
    #   p2[p*bt + b, t*16 + co] = pooled2[b, co, p, t]          (lanes 80..127 == 0)
    acc2 = None
    for dh in range(2):
        pieces = []
        for i in range(5):
            r = dh + i
            off = (r // 2) * bt
            pieces.append(p1[r % 2][off:off + 5 * bt])                    # (5bt, 128)
        lhs2 = jnp.concatenate(pieces, axis=-1)                           # (5bt, 640)
        cand2 = jnp.dot(lhs2, a2, preferred_element_type=f32)             # (5bt, 256)
        acc2 = cand2 if acc2 is None else jnp.maximum(acc2, cand2)
    pooled2 = jnp.maximum(acc2[:, :128], acc2[:, 128:]) + b2_ref[...]
    p2 = jnp.maximum(pooled2, 0.0).astype(bf16)                           # (5bt, 128)

    # --- Fc1 as split-K over the 5 pooled rows (no flatten/lane relayout) ----
    hid = None
    for p in range(5):
        part = jnp.dot(p2[p * bt:(p + 1) * bt], wf1[p],
                       preferred_element_type=f32)                        # (bt, 128)
        hid = part if hid is None else hid + part
    hid = jnp.maximum(hid + bf1_ref[...], 0.0).astype(bf16)               # (bt, 128)

    # --- Fc2 (lane-dense 128-wide padded output; real logits in lanes 0..8) --
    y = jnp.dot(hid, wf2_ref[...], preferred_element_type=f32) + bf2_ref[...]
    out_ref[...] = y.astype(out_ref.dtype)                                # (bt, 128)


# ---------------------------------------------------------------------------
# One-time host-side parameter packing (banded + padded + bf16 weights)
# ---------------------------------------------------------------------------
def pack_params(params):
    w1 = np.asarray(params["conv1_w"], np.float32)    # (8, 1, 5, 5)   OIHW
    b1 = np.asarray(params["conv1_b"], np.float32)    # (8,)
    w2 = np.asarray(params["conv2_w"], np.float32)    # (16, 8, 5, 5)
    b2 = np.asarray(params["conv2_b"], np.float32)    # (16,)
    wf1 = np.asarray(params["fc1_w"], np.float32)     # (100, 400), torch (c,h,w) flatten
    bf1 = np.asarray(params["fc1_b"], np.float32)     # (100,)
    wf2 = np.asarray(params["fc2_w"], np.float32)     # (9, 100)
    bf2 = np.asarray(params["fc2_b"], np.float32)     # (9,)

    # Conv1 banded GEMM weights: output lane dw*128 + q*8 + c is
    #   sum_{i,s} lhs[i*32 + s] * A1[i*32 + s, dw*128 + q*8 + c],   s = 2q + dw + j.
    # Lanes 112..127 of each dw half stay zero (zero weight AND zero bias).
    A1 = np.zeros((5 * 32, 256), np.float32)
    for dw in range(2):
        for i in range(5):
            for q in range(14):
                for j in range(5):
                    s = 2 * q + dw + j
                    A1[i * 32 + s, dw * 128 + q * 8: dw * 128 + (q + 1) * 8] = w1[:, 0, i, j]

    # Conv2 banded weights, K re-banded to the 128-lane-padded p1 layout:
    #   rows i*128 + q*8 + ci, cols dw*128 + t*16 + co,   q = 2t + dw + j.
    A2 = np.zeros((5 * 128, 256), np.float32)
    for dw in range(2):
        for i in range(5):
            for t in range(5):
                for j in range(5):
                    q = 2 * t + dw + j
                    A2[i * 128 + q * 8: i * 128 + (q + 1) * 8,
                       dw * 128 + t * 16: dw * 128 + (t + 1) * 16] = w2[:, :, i, j].T

    # fc1 split-K blocks: p2 lane t*16+co holds pooled2[b, co, p, t]; PyTorch's
    # x.view(-1, 400) flattens as (co, p, t) -> column index co*25 + p*5 + t.
    W1 = np.zeros((5, 128, 128), np.float32)
    for p in range(5):
        for t in range(5):
            for co in range(16):
                W1[p, t * 16 + co, :100] = wf1[:, co * 25 + p * 5 + t]

    # fc2, padded to a lane-dense 128-wide output (padded lanes exactly zero).
    W2 = np.zeros((128, 128), np.float32)
    W2[:100, :9] = wf2.T

    b1p = np.zeros((1, 128), np.float32); b1p[0, :112] = np.tile(b1, 14)
    b2p = np.zeros((1, 128), np.float32); b2p[0, :80] = np.tile(b2, 5)
    bf1p = np.zeros((1, 128), np.float32); bf1p[0, :100] = bf1
    bf2p = np.zeros((1, 128), np.float32); bf2p[0, :9] = bf2

    return (
        jnp.asarray(A1, jnp.bfloat16), jnp.asarray(b1p, jnp.float32),
        jnp.asarray(A2, jnp.bfloat16), jnp.asarray(b2p, jnp.float32),
        jnp.asarray(W1, jnp.bfloat16), jnp.asarray(bf1p, jnp.float32),
        jnp.asarray(W2, jnp.bfloat16), jnp.asarray(bf2p, jnp.float32),
    )


# ---------------------------------------------------------------------------
# Forward pass (single fused pallas_call, batch-tiled grid, padded batch)
# ---------------------------------------------------------------------------
@jax.jit
def cnn_forward(packed, x_nchw):
    a1, b1, a2, b2, wf1, bf1, wf2, bf2 = packed
    B = x_nchw.shape[0]
    bt = min(256, _round_up(B, 8))         # large batch tile; pad B instead of gcd
    B_pad = _round_up(B, bt)
    nb = B_pad // bt

    # Polyphase row split so every stride-2 pool access in the kernel is a
    # unit-stride slice:  xph[e, u, b, s] = image[b, 4u + e, s].
    x = x_nchw.reshape(B, 8, 4, 32)
    if B_pad != B:
        x = jnp.pad(x, ((0, B_pad - B), (0, 0), (0, 0), (0, 0)))
    xph = x.transpose(2, 1, 0, 3).astype(jnp.bfloat16)      # (4, 8, B_pad, 32)

    out = pl.pallas_call(
        _cnn_fused_kernel,
        out_shape=jax.ShapeDtypeStruct((B_pad, 128), jnp.float32),
        grid_spec=pltpu.PrefetchScalarGridSpec(
            num_scalar_prefetch=0,
            grid=(nb,),
            in_specs=[
                pl.BlockSpec((4, 8, bt, 32), lambda i: (0, 0, i, 0)),
                pl.BlockSpec((160, 256), lambda i: (0, 0)),
                pl.BlockSpec((1, 128), lambda i: (0, 0)),
                pl.BlockSpec((640, 256), lambda i: (0, 0)),
                pl.BlockSpec((1, 128), lambda i: (0, 0)),
                pl.BlockSpec((5, 128, 128), lambda i: (0, 0, 0)),
                pl.BlockSpec((1, 128), lambda i: (0, 0)),
                pl.BlockSpec((128, 128), lambda i: (0, 0)),
                pl.BlockSpec((1, 128), lambda i: (0, 0)),
            ],
            out_specs=pl.BlockSpec((bt, 128), lambda i: (i, 0)),
        ),
        compiler_params=pltpu.CompilerParams(
            dimension_semantics=("parallel",),
            vmem_limit_bytes=32 * 1024 * 1024,
        ),
    )(xph, a1, b1, a2, b2, wf1, bf1, wf2, bf2)
    return out[:B, :9]


# ---------------------------------------------------------------------------
# Deterministic parameters + pure-JAX f32 reference for validation
# ---------------------------------------------------------------------------
def init_params(key):
    ks = jax.random.split(key, 8)

    def u(k, shape, fan_in):
        bound = 1.0 / np.sqrt(float(fan_in))
        return jax.random.uniform(k, shape, jnp.float32, -bound, bound)

    return {
        "conv1_w": u(ks[0], (8, 1, 5, 5), 25),
        "conv1_b": u(ks[1], (8,), 25),
        "conv2_w": u(ks[2], (16, 8, 5, 5), 200),
        "conv2_b": u(ks[3], (16,), 200),
        "fc1_w": u(ks[4], (100, 400), 400),
        "fc1_b": u(ks[5], (100,), 400),
        "fc2_w": u(ks[6], (9, 100), 100),
        "fc2_b": u(ks[7], (9,), 100),
    }


def cnn_reference(params, x_nchw):
    def conv(x, w, b):
        y = lax.conv_general_dilated(
            x, w, (1, 1), "VALID", dimension_numbers=("NCHW", "OIHW", "NCHW"))
        return jnp.maximum(y + b[None, :, None, None], 0.0)

    def pool(x):
        return lax.reduce_window(x, -jnp.inf, lax.max,
                                 (1, 1, 2, 2), (1, 1, 2, 2), "VALID")

    x = pool(conv(x_nchw, params["conv1_w"], params["conv1_b"]))
    x = pool(conv(x, params["conv2_w"], params["conv2_b"]))
    x = x.reshape(x.shape[0], -1)
    x = jnp.maximum(x @ params["fc1_w"].T + params["fc1_b"], 0.0)
    return x @ params["fc2_w"].T + params["fc2_b"]


if __name__ == "__main__":
    key = jax.random.PRNGKey(0)
    pkey, xkey = jax.random.split(key)
    params = init_params(pkey)
    # The module's forward implies 1 input channel, 32x32 spatial (16*5*5 flatten).
    x = jax.random.normal(xkey, (2, 1, 32, 32), jnp.float32)

    packed = pack_params(params)
    out = jax.block_until_ready(cnn_forward(packed, x))
    ref = jax.block_until_ready(cnn_reference(params, x))

    assert out.shape == (2, 9), out.shape
    err = float(jnp.max(jnp.abs(out - ref)))
    # bf16 matmul operands with f32 accumulation -> relaxed (but tight) tolerance.
    assert jnp.allclose(out, ref, atol=2e-2, rtol=2e-2), err
    print("KERNEL_OK")
</pallas_src>

<mosaic_0001>
module attributes {stable_mosaic.version = 11 : i64} {
  func.func @_cnn_fused_kernel(%arg0: i32, %arg1: memref<4x8x8x32xbf16, #tpu.memory_space<vmem>>, %arg2: memref<160x256xbf16, #tpu.memory_space<vmem>>, %arg3: memref<1x128xf32, #tpu.memory_space<vmem>>, %arg4: memref<640x256xbf16, #tpu.memory_space<vmem>>, %arg5: memref<1x128xf32, #tpu.memory_space<vmem>>, %arg6: memref<5x128x128xbf16, #tpu.memory_space<vmem>>, %arg7: memref<1x128xf32, #tpu.memory_space<vmem>>, %arg8: memref<128x128xbf16, #tpu.memory_space<vmem>>, %arg9: memref<1x128xf32, #tpu.memory_space<vmem>>, %arg10: memref<8x128xf32, #tpu.memory_space<vmem>>) attributes {dimension_semantics = [#tpu.dimension_semantics<parallel>], iteration_bounds = array<i64: 1>, scalar_prefetch = 0 : i64, scratch_operands = 0 : i64, tpu.core_type = #tpu.core_type<tc>, window_params = [{transform_indices = @transform_0, window_bounds = array<i64: 4, 8, 8, 32>}, {pipeline_mode = #tpu.pipeline_mode<synchronous>, transform_indices = @transform_1, window_bounds = array<i64: 160, 256>}, {pipeline_mode = #tpu.pipeline_mode<synchronous>, transform_indices = @transform_2, window_bounds = array<i64: 1, 128>}, {pipeline_mode = #tpu.pipeline_mode<synchronous>, transform_indices = @transform_3, window_bounds = array<i64: 640, 256>}, {pipeline_mode = #tpu.pipeline_mode<synchronous>, transform_indices = @transform_4, window_bounds = array<i64: 1, 128>}, {pipeline_mode = #tpu.pipeline_mode<synchronous>, transform_indices = @transform_5, window_bounds = array<i64: 5, 128, 128>}, {pipeline_mode = #tpu.pipeline_mode<synchronous>, transform_indices = @transform_6, window_bounds = array<i64: 1, 128>}, {pipeline_mode = #tpu.pipeline_mode<synchronous>, transform_indices = @transform_7, window_bounds = array<i64: 128, 128>}, {pipeline_mode = #tpu.pipeline_mode<synchronous>, transform_indices = @transform_8, window_bounds = array<i64: 1, 128>}, {transform_indices = @transform_9, window_bounds = array<i64: 8, 128>}]} {
    %c0 = arith.constant 0 : index
    %c0_0 = arith.constant 0 : index
    %c0_1 = arith.constant 0 : index
    %c0_2 = arith.constant 0 : index
    %0 = vector.load %arg1[%c0, %c0_0, %c0_1, %c0_2] : memref<4x8x8x32xbf16, #tpu.memory_space<vmem>>, vector<4x8x8x32xbf16>
    %c0_3 = arith.constant 0 : index
    %c0_4 = arith.constant 0 : index
    %1 = vector.load %arg2[%c0_3, %c0_4] : memref<160x256xbf16, #tpu.memory_space<vmem>>, vector<160x256xbf16>
    %c0_5 = arith.constant 0 : index
    %c0_6 = arith.constant 0 : index
    %2 = vector.load %arg4[%c0_5, %c0_6] : memref<640x256xbf16, #tpu.memory_space<vmem>>, vector<640x256xbf16>
    %c0_7 = arith.constant 0 : index
    %c0_8 = arith.constant 0 : index
    %c0_9 = arith.constant 0 : index
    %3 = vector.load %arg6[%c0_7, %c0_8, %c0_9] : memref<5x128x128xbf16, #tpu.memory_space<vmem>>, vector<5x128x128xbf16>
    %4 = vector.extract_strided_slice %0 {offsets = [0, 0, 0, 0], sizes = [1, 7, 8, 32], strides = [1, 1, 1, 1]} : vector<4x8x8x32xbf16> to vector<1x7x8x32xbf16>
    %5 = vector.shape_cast %4 : vector<1x7x8x32xbf16> to vector<7x8x32xbf16>
    %6 = vector.extract_strided_slice %0 {offsets = [1, 0, 0, 0], sizes = [1, 7, 8, 32], strides = [1, 1, 1, 1]} : vector<4x8x8x32xbf16> to vector<1x7x8x32xbf16>
    %7 = vector.shape_cast %6 : vector<1x7x8x32xbf16> to vector<7x8x32xbf16>
    %8 = vector.extract_strided_slice %0 {offsets = [2, 0, 0, 0], sizes = [1, 7, 8, 32], strides = [1, 1, 1, 1]} : vector<4x8x8x32xbf16> to vector<1x7x8x32xbf16>
    %9 = vector.shape_cast %8 : vector<1x7x8x32xbf16> to vector<7x8x32xbf16>
    %10 = vector.extract_strided_slice %0 {offsets = [3, 0, 0, 0], sizes = [1, 7, 8, 32], strides = [1, 1, 1, 1]} : vector<4x8x8x32xbf16> to vector<1x7x8x32xbf16>
    %11 = vector.shape_cast %10 : vector<1x7x8x32xbf16> to vector<7x8x32xbf16>
    %12 = vector.extract_strided_slice %0 {offsets = [0, 1, 0, 0], sizes = [1, 7, 8, 32], strides = [1, 1, 1, 1]} : vector<4x8x8x32xbf16> to vector<1x7x8x32xbf16>
    %13 = vector.shape_cast %12 : vector<1x7x8x32xbf16> to vector<7x8x32xbf16>
    %14 = tpu.concatenate %5, %7, %9, %11, %13 in 2 : vector<7x8x32xbf16>, vector<7x8x32xbf16>, vector<7x8x32xbf16>, vector<7x8x32xbf16>, vector<7x8x32xbf16> -> vector<7x8x160xbf16>
    %15 = vector.shape_cast %14 : vector<7x8x160xbf16> to vector<56x160xbf16>
    %cst = arith.constant dense<0.000000e+00> : vector<56x256xf32>
    %16 = tpu.matmul %15, %1, %cst {dimension_numbers = #tpu.dot_dimension_numbers<[1], [0], [0], [1], [0, 0, 1, 1], [], []>} : vector<56x160xbf16>, vector<160x256xbf16>, vector<56x256xf32> -> vector<56x256xf32>
    %17 = vector.extract_strided_slice %0 {offsets = [1, 0, 0, 0], sizes = [1, 7, 8, 32], strides = [1, 1, 1, 1]} : vector<4x8x8x32xbf16> to vector<1x7x8x32xbf16>
    %18 = vector.shape_cast %17 : vector<1x7x8x32xbf16> to vector<7x8x32xbf16>
    %19 = vector.extract_strided_slice %0 {offsets = [2, 0, 0, 0], sizes = [1, 7, 8, 32], strides = [1, 1, 1, 1]} : vector<4x8x8x32xbf16> to vector<1x7x8x32xbf16>
    %20 = vector.shape_cast %19 : vector<1x7x8x32xbf16> to vector<7x8x32xbf16>
    %21 = vector.extract_strided_slice %0 {offsets = [3, 0, 0, 0], sizes = [1, 7, 8, 32], strides = [1, 1, 1, 1]} : vector<4x8x8x32xbf16> to vector<1x7x8x32xbf16>
    %22 = vector.shape_cast %21 : vector<1x7x8x32xbf16> to vector<7x8x32xbf16>
    %23 = vector.extract_strided_slice %0 {offsets = [0, 1, 0, 0], sizes = [1, 7, 8, 32], strides = [1, 1, 1, 1]} : vector<4x8x8x32xbf16> to vector<1x7x8x32xbf16>
    %24 = vector.shape_cast %23 : vector<1x7x8x32xbf16> to vector<7x8x32xbf16>
    %25 = vector.extract_strided_slice %0 {offsets = [1, 1, 0, 0], sizes = [1, 7, 8, 32], strides = [1, 1, 1, 1]} : vector<4x8x8x32xbf16> to vector<1x7x8x32xbf16>
    %26 = vector.shape_cast %25 : vector<1x7x8x32xbf16> to vector<7x8x32xbf16>
    %27 = tpu.concatenate %18, %20, %22, %24, %26 in 2 : vector<7x8x32xbf16>, vector<7x8x32xbf16>, vector<7x8x32xbf16>, vector<7x8x32xbf16>, vector<7x8x32xbf16> -> vector<7x8x160xbf16>
    %28 = vector.shape_cast %27 : vector<7x8x160xbf16> to vector<56x160xbf16>
    %cst_10 = arith.constant dense<0.000000e+00> : vector<56x256xf32>
    %29 = tpu.matmul %28, %1, %cst_10 {dimension_numbers = #tpu.dot_dimension_numbers<[1], [0], [0], [1], [0, 0, 1, 1], [], []>} : vector<56x160xbf16>, vector<160x256xbf16>, vector<56x256xf32> -> vector<56x256xf32>
    %30 = arith.maximumf %16, %29 : vector<56x256xf32>
    %31 = vector.extract_strided_slice %30 {offsets = [0, 0], sizes = [56, 128], strides = [1, 1]} : vector<56x256xf32> to vector<56x128xf32>
    %32 = vector.extract_strided_slice %30 {offsets = [0, 128], sizes = [56, 128], strides = [1, 1]} : vector<56x256xf32> to vector<56x128xf32>
    %33 = arith.maximumf %31, %32 : vector<56x128xf32>
    %c0_11 = arith.constant 0 : index
    %c0_12 = arith.constant 0 : index
    %34 = vector.load %arg3[%c0_11, %c0_12] : memref<1x128xf32, #tpu.memory_space<vmem>>, vector<1x128xf32>
    %35 = vector.broadcast %34 : vector<1x128xf32> to vector<56x128xf32>
    %36 = arith.addf %33, %35 : vector<56x128xf32>
    %cst_13 = arith.constant 0.000000e+00 : f32
    %37 = vector.broadcast %cst_13 : f32 to vector<56x128xf32>
    %38 = arith.maximumf %36, %37 : vector<56x128xf32>
    %39 = arith.truncf %38 : vector<56x128xf32> to vector<56x128xbf16>
    %40 = vector.extract_strided_slice %0 {offsets = [2, 0, 0, 0], sizes = [1, 7, 8, 32], strides = [1, 1, 1, 1]} : vector<4x8x8x32xbf16> to vector<1x7x8x32xbf16>
    %41 = vector.shape_cast %40 : vector<1x7x8x32xbf16> to vector<7x8x32xbf16>
    %42 = vector.extract_strided_slice %0 {offsets = [3, 0, 0, 0], sizes = [1, 7, 8, 32], strides = [1, 1, 1, 1]} : vector<4x8x8x32xbf16> to vector<1x7x8x32xbf16>
    %43 = vector.shape_cast %42 : vector<1x7x8x32xbf16> to vector<7x8x32xbf16>
    %44 = vector.extract_strided_slice %0 {offsets = [0, 1, 0, 0], sizes = [1, 7, 8, 32], strides = [1, 1, 1, 1]} : vector<4x8x8x32xbf16> to vector<1x7x8x32xbf16>
    %45 = vector.shape_cast %44 : vector<1x7x8x32xbf16> to vector<7x8x32xbf16>
    %46 = vector.extract_strided_slice %0 {offsets = [1, 1, 0, 0], sizes = [1, 7, 8, 32], strides = [1, 1, 1, 1]} : vector<4x8x8x32xbf16> to vector<1x7x8x32xbf16>
    %47 = vector.shape_cast %46 : vector<1x7x8x32xbf16> to vector<7x8x32xbf16>
    %48 = vector.extract_strided_slice %0 {offsets = [2, 1, 0, 0], sizes = [1, 7, 8, 32], strides = [1, 1, 1, 1]} : vector<4x8x8x32xbf16> to vector<1x7x8x32xbf16>
    %49 = vector.shape_cast %48 : vector<1x7x8x32xbf16> to vector<7x8x32xbf16>
    %50 = tpu.concatenate %41, %43, %45, %47, %49 in 2 : vector<7x8x32xbf16>, vector<7x8x32xbf16>, vector<7x8x32xbf16>, vector<7x8x32xbf16>, vector<7x8x32xbf16> -> vector<7x8x160xbf16>
    %51 = vector.shape_cast %50 : vector<7x8x160xbf16> to vector<56x160xbf16>
    %cst_14 = arith.constant dense<0.000000e+00> : vector<56x256xf32>
    %52 = tpu.matmul %51, %1, %cst_14 {dimension_numbers = #tpu.dot_dimension_numbers<[1], [0], [0], [1], [0, 0, 1, 1], [], []>} : vector<56x160xbf16>, vector<160x256xbf16>, vector<56x256xf32> -> vector<56x256xf32>
    %53 = vector.extract_strided_slice %0 {offsets = [3, 0, 0, 0], sizes = [1, 7, 8, 32], strides = [1, 1, 1, 1]} : vector<4x8x8x32xbf16> to vector<1x7x8x32xbf16>
    %54 = vector.shape_cast %53 : vector<1x7x8x32xbf16> to vector<7x8x32xbf16>
    %55 = vector.extract_strided_slice %0 {offsets = [0, 1, 0, 0], sizes = [1, 7, 8, 32], strides = [1, 1, 1, 1]} : vector<4x8x8x32xbf16> to vector<1x7x8x32xbf16>
    %56 = vector.shape_cast %55 : vector<1x7x8x32xbf16> to vector<7x8x32xbf16>
    %57 = vector.extract_strided_slice %0 {offsets = [1, 1, 0, 0], sizes = [1, 7, 8, 32], strides = [1, 1, 1, 1]} : vector<4x8x8x32xbf16> to vector<1x7x8x32xbf16>
    %58 = vector.shape_cast %57 : vector<1x7x8x32xbf16> to vector<7x8x32xbf16>
    %59 = vector.extract_strided_slice %0 {offsets = [2, 1, 0, 0], sizes = [1, 7, 8, 32], strides = [1, 1, 1, 1]} : vector<4x8x8x32xbf16> to vector<1x7x8x32xbf16>
    %60 = vector.shape_cast %59 : vector<1x7x8x32xbf16> to vector<7x8x32xbf16>
    %61 = vector.extract_strided_slice %0 {offsets = [3, 1, 0, 0], sizes = [1, 7, 8, 32], strides = [1, 1, 1, 1]} : vector<4x8x8x32xbf16> to vector<1x7x8x32xbf16>
    %62 = vector.shape_cast %61 : vector<1x7x8x32xbf16> to vector<7x8x32xbf16>
    %63 = tpu.concatenate %54, %56, %58, %60, %62 in 2 : vector<7x8x32xbf16>, vector<7x8x32xbf16>, vector<7x8x32xbf16>, vector<7x8x32xbf16>, vector<7x8x32xbf16> -> vector<7x8x160xbf16>
    %64 = vector.shape_cast %63 : vector<7x8x160xbf16> to vector<56x160xbf16>
    %cst_15 = arith.constant dense<0.000000e+00> : vector<56x256xf32>
    %65 = tpu.matmul %64, %1, %cst_15 {dimension_numbers = #tpu.dot_dimension_numbers<[1], [0], [0], [1], [0, 0, 1, 1], [], []>} : vector<56x160xbf16>, vector<160x256xbf16>, vector<56x256xf32> -> vector<56x256xf32>
    %66 = arith.maximumf %52, %65 : vector<56x256xf32>
    %67 = vector.extract_strided_slice %66 {offsets = [0, 0], sizes = [56, 128], strides = [1, 1]} : vector<56x256xf32> to vector<56x128xf32>
    %68 = vector.extract_strided_slice %66 {offsets = [0, 128], sizes = [56, 128], strides = [1, 1]} : vector<56x256xf32> to vector<56x128xf32>
    %69 = arith.maximumf %67, %68 : vector<56x128xf32>
    %c0_16 = arith.constant 0 : index
    %c0_17 = arith.constant 0 : index
    %70 = vector.load %arg3[%c0_16, %c0_17] : memref<1x128xf32, #tpu.memory_space<vmem>>, vector<1x128xf32>
    %71 = vector.broadcast %70 : vector<1x128xf32> to vector<56x128xf32>
    %72 = arith.addf %69, %71 : vector<56x128xf32>
    %cst_18 = arith.constant 0.000000e+00 : f32
    %73 = vector.broadcast %cst_18 : f32 to vector<56x128xf32>
    %74 = arith.maximumf %72, %73 : vector<56x128xf32>
    %75 = arith.truncf %74 : vector<56x128xf32> to vector<56x128xbf16>
    %76 = vector.extract_strided_slice %39 {offsets = [0, 0], sizes = [40, 128], strides = [1, 1]} : vector<56x128xbf16> to vector<40x128xbf16>
    %77 = vector.extract_strided_slice %75 {offsets = [0, 0], sizes = [40, 128], strides = [1, 1]} : vector<56x128xbf16> to vector<40x128xbf16>
    %78 = vector.extract_strided_slice %39 {offsets = [8, 0], sizes = [40, 128], strides = [1, 1]} : vector<56x128xbf16> to vector<40x128xbf16>
    %79 = vector.extract_strided_slice %75 {offsets = [8, 0], sizes = [40, 128], strides = [1, 1]} : vector<56x128xbf16> to vector<40x128xbf16>
    %80 = vector.extract_strided_slice %39 {offsets = [16, 0], sizes = [40, 128], strides = [1, 1]} : vector<56x128xbf16> to vector<40x128xbf16>
    %81 = tpu.concatenate %76, %77, %78, %79, %80 in 1 : vector<40x128xbf16>, vector<40x128xbf16>, vector<40x128xbf16>, vector<40x128xbf16>, vector<40x128xbf16> -> vector<40x640xbf16>
    %cst_19 = arith.constant dense<0.000000e+00> : vector<40x256xf32>
    %82 = tpu.matmul %81, %2, %cst_19 {dimension_numbers = #tpu.dot_dimension_numbers<[1], [0], [0], [1], [0, 0, 1, 1], [], []>} : vector<40x640xbf16>, vector<640x256xbf16>, vector<40x256xf32> -> vector<40x256xf32>
    %83 = vector.extract_strided_slice %75 {offsets = [0, 0], sizes = [40, 128], strides = [1, 1]} : vector<56x128xbf16> to vector<40x128xbf16>
    %84 = vector.extract_strided_slice %39 {offsets = [8, 0], sizes = [40, 128], strides = [1, 1]} : vector<56x128xbf16> to vector<40x128xbf16>
    %85 = vector.extract_strided_slice %75 {offsets = [8, 0], sizes = [40, 128], strides = [1, 1]} : vector<56x128xbf16> to vector<40x128xbf16>
    %86 = vector.extract_strided_slice %39 {offsets = [16, 0], sizes = [40, 128], strides = [1, 1]} : vector<56x128xbf16> to vector<40x128xbf16>
    %87 = vector.extract_strided_slice %75 {offsets = [16, 0], sizes = [40, 128], strides = [1, 1]} : vector<56x128xbf16> to vector<40x128xbf16>
    %88 = tpu.concatenate %83, %84, %85, %86, %87 in 1 : vector<40x128xbf16>, vector<40x128xbf16>, vector<40x128xbf16>, vector<40x128xbf16>, vector<40x128xbf16> -> vector<40x640xbf16>
    %cst_20 = arith.constant dense<0.000000e+00> : vector<40x256xf32>
    %89 = tpu.matmul %88, %2, %cst_20 {dimension_numbers = #tpu.dot_dimension_numbers<[1], [0], [0], [1], [0, 0, 1, 1], [], []>} : vector<40x640xbf16>, vector<640x256xbf16>, vector<40x256xf32> -> vector<40x256xf32>
    %90 = arith.maximumf %82, %89 : vector<40x256xf32>
    %91 = vector.extract_strided_slice %90 {offsets = [0, 0], sizes = [40, 128], strides = [1, 1]} : vector<40x256xf32> to vector<40x128xf32>
    %92 = vector.extract_strided_slice %90 {offsets = [0, 128], sizes = [40, 128], strides = [1, 1]} : vector<40x256xf32> to vector<40x128xf32>
    %93 = arith.maximumf %91, %92 : vector<40x128xf32>
    %c0_21 = arith.constant 0 : index
    %c0_22 = arith.constant 0 : index
    %94 = vector.load %arg5[%c0_21, %c0_22] : memref<1x128xf32, #tpu.memory_space<vmem>>, vector<1x128xf32>
    %95 = vector.broadcast %94 : vector<1x128xf32> to vector<40x128xf32>
    %96 = arith.addf %93, %95 : vector<40x128xf32>
    %cst_23 = arith.constant 0.000000e+00 : f32
    %97 = vector.broadcast %cst_23 : f32 to vector<40x128xf32>
    %98 = arith.maximumf %96, %97 : vector<40x128xf32>
    %99 = arith.truncf %98 : vector<40x128xf32> to vector<40x128xbf16>
    %100 = vector.extract_strided_slice %99 {offsets = [0, 0], sizes = [8, 128], strides = [1, 1]} : vector<40x128xbf16> to vector<8x128xbf16>
    %101 = vector.extract_strided_slice %3 {offsets = [0, 0, 0], sizes = [1, 128, 128], strides = [1, 1, 1]} : vector<5x128x128xbf16> to vector<1x128x128xbf16>
    %102 = vector.shape_cast %101 : vector<1x128x128xbf16> to vector<128x128xbf16>
    %cst_24 = arith.constant dense<0.000000e+00> : vector<8x128xf32>
    %103 = tpu.matmul %100, %102, %cst_24 {dimension_numbers = #tpu.dot_dimension_numbers<[1], [0], [0], [1], [0, 0, 1, 1], [], []>} : vector<8x128xbf16>, vector<128x128xbf16>, vector<8x128xf32> -> vector<8x128xf32>
    %104 = vector.extract_strided_slice %99 {offsets = [8, 0], sizes = [8, 128], strides = [1, 1]} : vector<40x128xbf16> to vector<8x128xbf16>
    %105 = vector.extract_strided_slice %3 {offsets = [1, 0, 0], sizes = [1, 128, 128], strides = [1, 1, 1]} : vector<5x128x128xbf16> to vector<1x128x128xbf16>
    %106 = vector.shape_cast %105 : vector<1x128x128xbf16> to vector<128x128xbf16>
    %cst_25 = arith.constant dense<0.000000e+00> : vector<8x128xf32>
    %107 = tpu.matmul %104, %106, %cst_25 {dimension_numbers = #tpu.dot_dimension_numbers<[1], [0], [0], [1], [0, 0, 1, 1], [], []>} : vector<8x128xbf16>, vector<128x128xbf16>, vector<8x128xf32> -> vector<8x128xf32>
    %108 = arith.addf %103, %107 : vector<8x128xf32>
    %109 = vector.extract_strided_slice %99 {offsets = [16, 0], sizes = [8, 128], strides = [1, 1]} : vector<40x128xbf16> to vector<8x128xbf16>
    %110 = vector.extract_strided_slice %3 {offsets = [2, 0, 0], sizes = [1, 128, 128], strides = [1, 1, 1]} : vector<5x128x128xbf16> to vector<1x128x128xbf16>
    %111 = vector.shape_cast %110 : vector<1x128x128xbf16> to vector<128x128xbf16>
    %cst_26 = arith.constant dense<0.000000e+00> : vector<8x128xf32>
    %112 = tpu.matmul %109, %111, %cst_26 {dimension_numbers = #tpu.dot_dimension_numbers<[1], [0], [0], [1], [0, 0, 1, 1], [], []>} : vector<8x128xbf16>, vector<128x128xbf16>, vector<8x128xf32> -> vector<8x128xf32>
    %113 = arith.addf %108, %112 : vector<8x128xf32>
    %114 = vector.extract_strided_slice %99 {offsets = [24, 0], sizes = [8, 128], strides = [1, 1]} : vector<40x128xbf16> to vector<8x128xbf16>
    %115 = vector.extract_strided_slice %3 {offsets = [3, 0, 0], sizes = [1, 128, 128], strides = [1, 1, 1]} : vector<5x128x128xbf16> to vector<1x128x128xbf16>
    %116 = vector.shape_cast %115 : vector<1x128x128xbf16> to vector<128x128xbf16>
    %cst_27 = arith.constant dense<0.000000e+00> : vector<8x128xf32>
    %117 = tpu.matmul %114, %116, %cst_27 {dimension_numbers = #tpu.dot_dimension_numbers<[1], [0], [0], [1], [0, 0, 1, 1], [], []>} : vector<8x128xbf16>, vector<128x128xbf16>, vector<8x128xf32> -> vector<8x128xf32>
    %118 = arith.addf %113, %117 : vector<8x128xf32>
    %119 = vector.extract_strided_slice %99 {offsets = [32, 0], sizes = [8, 128], strides = [1, 1]} : vector<40x128xbf16> to vector<8x128xbf16>
    %120 = vector.extract_strided_slice %3 {offsets = [4, 0, 0], sizes = [1, 128, 128], strides = [1, 1, 1]} : vector<5x128x128xbf16> to vector<1x128x128xbf16>
    %121 = vector.shape_cast %120 : vector<1x128x128xbf16> to vector<128x128xbf16>
    %cst_28 = arith.constant dense<0.000000e+00> : vector<8x128xf32>
    %122 = tpu.matmul %119, %121, %cst_28 {dimension_numbers = #tpu.dot_dimension_numbers<[1], [0], [0], [1], [0, 0, 1, 1], [], []>} : vector<8x128xbf16>, vector<128x128xbf16>, vector<8x128xf32> -> vector<8x128xf32>
    %123 = arith.addf %118, %122 : vector<8x128xf32>
    %c0_29 = arith.constant 0 : index
    %c0_30 = arith.constant 0 : index
    %124 = vector.load %arg7[%c0_29, %c0_30] : memref<1x128xf32, #tpu.memory_space<vmem>>, vector<1x128xf32>
    %125 = vector.broadcast %124 : vector<1x128xf32> to vector<8x128xf32>
    %126 = arith.addf %123, %125 : vector<8x128xf32>
    %cst_31 = arith.constant 0.000000e+00 : f32
    %127 = vector.broadcast %cst_31 : f32 to vector<8x128xf32>
    %128 = arith.maximumf %126, %127 : vector<8x128xf32>
    %129 = arith.truncf %128 : vector<8x128xf32> to vector<8x128xbf16>
    %c0_32 = arith.constant 0 : index
    %c0_33 = arith.constant 0 : index
    %130 = vector.load %arg8[%c0_32, %c0_33] : memref<128x128xbf16, #tpu.memory_space<vmem>>, vector<128x128xbf16>
    %cst_34 = arith.constant dense<0.000000e+00> : vector<8x128xf32>
    %131 = tpu.matmul %129, %130, %cst_34 {dimension_numbers = #tpu.dot_dimension_numbers<[1], [0], [0], [1], [0, 0, 1, 1], [], []>} : vector<8x128xbf16>, vector<128x128xbf16>, vector<8x128xf32> -> vector<8x128xf32>
    %c0_35 = arith.constant 0 : index
    %c0_36 = arith.constant 0 : index
    %132 = vector.load %arg9[%c0_35, %c0_36] : memref<1x128xf32, #tpu.memory_space<vmem>>, vector<1x128xf32>
    %133 = vector.broadcast %132 : vector<1x128xf32> to vector<8x128xf32>
    %134 = arith.addf %131, %133 : vector<8x128xf32>
    %c0_37 = arith.constant 0 : index
    %c0_38 = arith.constant 0 : index
    %135 = vector.load %arg10[%c0_37, %c0_38] : memref<8x128xf32, #tpu.memory_space<vmem>>, vector<8x128xf32>
    tpu.vector_store %arg10[%c0_37, %c0_38], %134 {strides = array<i32>} : memref<8x128xf32, #tpu.memory_space<vmem>>, vector<8x128xf32>,
    return
  }
  func.func @transform_0(%arg0: i32) -> (i32, i32, i32, i32) {
    %c0_i32 = arith.constant 0 : i32
    %c0_i32_0 = arith.constant 0 : i32
    %c0_i32_1 = arith.constant 0 : i32
    %c0_i32_2 = arith.constant 0 : i32
    return %c0_i32, %c0_i32_0, %arg0, %c0_i32_1 : i32, i32, i32, i32
  }
  func.func @transform_1(%arg0: i32) -> (i32, i32) {
    %c0_i32 = arith.constant 0 : i32
    %c0_i32_0 = arith.constant 0 : i32
    %c0_i32_1 = arith.constant 0 : i32
    return %c0_i32, %c0_i32_0 : i32, i32
  }
  func.func @transform_2(%arg0: i32) -> (i32, i32) {
    %c0_i32 = arith.constant 0 : i32
    %c0_i32_0 = arith.constant 0 : i32
    %c0_i32_1 = arith.constant 0 : i32
    return %c0_i32, %c0_i32_0 : i32, i32
  }
  func.func @transform_3(%arg0: i32) -> (i32, i32) {
    %c0_i32 = arith.constant 0 : i32
    %c0_i32_0 = arith.constant 0 : i32
    %c0_i32_1 = arith.constant 0 : i32
    return %c0_i32, %c0_i32_0 : i32, i32
  }
  func.func @transform_4(%arg0: i32) -> (i32, i32) {
    %c0_i32 = arith.constant 0 : i32
    %c0_i32_0 = arith.constant 0 : i32
    %c0_i32_1 = arith.constant 0 : i32
    return %c0_i32, %c0_i32_0 : i32, i32
  }
  func.func @transform_5(%arg0: i32) -> (i32, i32, i32) {
    %c0_i32 = arith.constant 0 : i32
    %c0_i32_0 = arith.constant 0 : i32
    %c0_i32_1 = arith.constant 0 : i32
    %c0_i32_2 = arith.constant 0 : i32
    return %c0_i32, %c0_i32_0, %c0_i32_1 : i32, i32, i32
  }
  func.func @transform_6(%arg0: i32) -> (i32, i32) {
    %c0_i32 = arith.constant 0 : i32
    %c0_i32_0 = arith.constant 0 : i32
    %c0_i32_1 = arith.constant 0 : i32
    return %c0_i32, %c0_i32_0 : i32, i32
  }
  func.func @transform_7(%arg0: i32) -> (i32, i32) {
    %c0_i32 = arith.constant 0 : i32
    %c0_i32_0 = arith.constant 0 : i32
    %c0_i32_1 = arith.constant 0 : i32
    return %c0_i32, %c0_i32_0 : i32, i32
  }
  func.func @transform_8(%arg0: i32) -> (i32, i32) {
    %c0_i32 = arith.constant 0 : i32
    %c0_i32_0 = arith.constant 0 : i32
    %c0_i32_1 = arith.constant 0 : i32
    return %c0_i32, %c0_i32_0 : i32, i32
  }
  func.func @transform_9(%arg0: i32) -> (i32, i32) {
    %c0_i32 = arith.constant 0 : i32
    %c0_i32_0 = arith.constant 0 : i32
    return %arg0, %c0_i32 : i32, i32
  }
}

</mosaic_0001>

<bundles_post_ra>
// kernel: cnn_forward.1
= control target key start
LH: loop header
LB: loop body
LE: loop exit
PB: predicated region body
PF: predicated region fallthrough
CT: control target
= control target key end

     0   :  { %14 = vsyncpa [#allocation3], 0  ;;  %s5601_s0 = inlined_call_operand.vmem [shape: bf16[4,8,8,32], index: 0, kind: input, shape index: {}]   ;;  %s5602_s1 = inlined_call_operand.hbm [shape: bf16[160,256], index: 1, kind: input, shape index: {}]   ;;  %s5603_s2 = inlined_call_operand.vmem [shape: f32[1,128], index: 2, kind: input, shape index: {}]   ;;  %s5604_s3 = inlined_call_operand.hbm [shape: bf16[640,256], index: 3, kind: input, shape index: {}]   ;;  %s5605_s4 = inlined_call_operand.vmem [shape: f32[1,128], index: 4, kind: input, shape index: {}]   ;;  %s5606_s5 = inlined_call_operand.vmem [shape: bf16[5,128,128], index: 5, kind: input, shape index: {}]   ;;  %s5607_s6 = inlined_call_operand.vmem [shape: f32[1,128], index: 6, kind: input, shape index: {}]   ;;  %s5608_s7 = inlined_call_operand.hbm [shape: bf16[128,128], index: 7, kind: input, shape index: {}]   ;;  %s5609_s8 = inlined_call_operand.vmem [shape: f32[1,128], index: 8, kind: input, shape index: {}]   ;;  %s5610_s9 = inlined_call_operand.vmem [shape: f32[8,128], index: 9, kind: output, shape index: {}]  }
   0x1   :  { %15 = vsyncpa [#allocation5], 0  ;;  %s37_s11 = sshll.u32 %s5604_s3, 4  ;;  %s3762_s12 = smov [#allocation4]   ;;  %s38_s11 = int_to_ptr.hbm [resolvable:$true] %s37_s11 }
   0x2   :  { %s39_s13 = sshll.u32 %s3762_s12, 4  ;;  %s22_s16 = sshll.u32 %s5602_s1, 4  ;;  %s40_s13 = int_to_ptr.vmem [resolvable:$true] %s39_s13  ;;  %s23_s16 = int_to_ptr.hbm [resolvable:$true] %s22_s16 }
   0x3   :  { %s3763_s17 = smov 128   ;;  %s3764_s18 = smov 8  }
   0x4   :  { %45 = dma.hbm_to_vmem [thread:$0]  %s38_s11, 10240, %s40_s13, [#allocation5], %s3763_s17, %s3763_s17, %s3764_s18  }
   0x5   :  { %s3765_s19 = smov [#allocation2]   ;;  %s56_s23 = sshll.u32 %s5608_s7, 4  ;;  %s57_s23 = int_to_ptr.hbm [resolvable:$true] %s56_s23 }
   0x6   :  { %s24_s20 = sshll.u32 %s3765_s19, 4  ;;  %s3766_s3 = smov [#allocation6]   ;;  %s25_s20 = int_to_ptr.vmem [resolvable:$true] %s24_s20 }
   0x7   :  { %30 = dma.hbm_to_vmem [thread:$0]  %s23_s16, 2560, %s25_s20, [#allocation3], %s3763_s17, %s3763_s17, %s3764_s18  }
   0x8   :  { %s58_s24 = sshll.u32 %s3766_s3, 4  ;;  %s3767_s25 = smov 64   ;;  %s59_s24 = int_to_ptr.vmem [resolvable:$true] %s58_s24 }
   0x9   :  { %s3768_s26 = smov 4  }
   0xa   :  { %64 = dma.hbm_to_vmem [thread:$0]  %s57_s23, 1024, %s59_s24, [#allocation5], %s3767_s25, %s3767_s25, %s3768_s26  }
   0xb   :  { %3758 = dma.done.wait [#allocation3], 2560  }
   0xc   :  { %3759 = vsyncadd [#allocation3], 4294964736 }
   0xd   :  { %3760 = dma.done.wait [#allocation5], 11264  }
   0xe   :  { %3761 = vsyncadd [#allocation5], 4294956032  ;;  %v3835_v0 = vld [vmem:[%s5601_s0 + $0x40] sm:$0xf]  ;;  %v3847_v4 = vld [vmem:[%s5601_s0 + $0x44] sm:$0xf] }
   0xf   :  { %5683 = vst [vmem:[#allocation9_spill] sm:$0xff] %v3835_v0  ;;  %v3840_v1 = vld [vmem:[%s5601_s0 + $0x20] sm:$0xf]  ;;  %v334_v2 = vunpack.c.l.b16 %v3835_v0  ;;  %v3852_v5 = vld [vmem:[%s5601_s0 + $0x24] sm:$0xf]  ;;  %s3769_s18 = smov 32   ;;  %v335_v11 = vunpack.c.l.b16 %v3847_v4 }
  0x10   :  { %v299_v3 = vunpack.c.l.b16 %v3840_v1  ;;  %5684 = vst [vmem:[#allocation10_spill] sm:$0xff] %v3847_v4  ;;  %v104_v6 = vld [vmem:[%s5601_s0 + $0x60] sm:$0xf]  ;;  %v106_v9 = vld [vmem:[%s5601_s0 + $0x68] sm:$0xf]  ;;  %v3870_v12 = vunpack.c.l.b16 %v3852_v5  ;;  %s3770_s19 = smov 96  }
  0x11   :  { %v3857_v7 = vpack.c.b16 %v334_v2, %v334_v2  ;;  %v105_v10 = vld [vmem:[%s5601_s0 + $0x64] sm:$0xf]  ;;  %v369_v13 = vunpack.c.l.b16 %v104_v6  ;;  %v371_v14 = vunpack.c.l.b16 %v106_v9  ;;  %v3876_v18 = vpack.c.b16 %v335_v11, %v335_v11  ;;  %v3887_v20 = vld [vmem:[%s5601_s0 + $0x48] sm:$0xf]  ;;  %v3892_v21 = vld [vmem:[%s5601_s0 + $0x2c] sm:$0xf] }
  0x12   :  { %v306_v8 = vpack.c.b16 %v299_v3, %v299_v3  ;;  %v370_v15 = vunpack.c.l.b16 %v105_v10  ;;  %v3880_v19 = vpack.c.b16 %v3870_v12, %v3870_v12  ;;  %5686 = vst [vmem:[#allocation12_spill] sm:$0xff] %v3887_v20  ;;  %v3897_v22 = vld [vmem:[%s5601_s0 + $0x28] sm:$0xf]  ;;  %v336_v23 = vunpack.c.l.b16 %v3887_v20  ;;  %v3927_v30 = vld [vmem:[%s5601_s0 + $0x4c] sm:$0xf] }
  0x13   :  { %348 = vrot.lane.b32.xlu1 %v3857_v7, %s3767_s25  ;;  %v3872_v16 = vpack.c.b16 %v369_v13, %v369_v13  ;;  %5687 = vst [vmem:[#allocation13_spill] sm:$0xff] %v3892_v21  ;;  %v3905_v24 = vunpack.c.l.b16 %v3892_v21  ;;  %v3908_v25 = vunpack.c.l.b16 %v3897_v22  ;;  %v3934_v31 = vunpack.c.l.b16 %v3927_v30  ;;  %v107_v33 = vld [vmem:[%s5601_s0 + $0x6c] sm:$0xf]  ;;  %v3954_v37 = vld [vmem:[%s5601_s0 + $0x34] sm:$0xf] }
  0x14   :  { %313 = vrot.lane.b32.xlu0 %v306_v8, %s3769_s18  ;;  %v3874_v17 = vpack.c.b16 %v371_v14, %v370_v15  ;;  %5688 = vst [vmem:[#allocation14_spill] sm:$0xff] %v3897_v22  ;;  %v3910_v26 = vpack.c.b16 %v370_v15, %v370_v15  ;;  %v3912_v27 = vpack.c.b16 %v336_v23, %v335_v11  ;;  %v3949_v36 = vunpack.c.l.b16 %v107_v33  ;;  %v3959_v38 = vld [vmem:[%s5601_s0 + $0x30] sm:$0xf]  ;;  %v3999_v47 = vld [vmem:[%s5601_s0 + $0x54] sm:$0xf] }
  0x15   :  { %383 = vrot.lane.b32.xlu2 %v3872_v16, %s3770_s19  ;;  %v3916_v28 = vpack.c.b16 %v3905_v24, %v3905_v24  ;;  %v3920_v29 = vpack.c.b16 %v3908_v25, %v3908_v25  ;;  %5690 = vst [vmem:[#allocation16_spill] sm:$0xff] %v3927_v30  ;;  %v3936_v32 = vpack.c.b16 %v336_v23, %v336_v23  ;;  %v3966_v39 = vunpack.c.l.b16 %v3954_v37  ;;  %v3978_v42 = vld [vmem:[%s5601_s0 + $0x50] sm:$0xf]  ;;  %v109_v51 = vld [vmem:[%s5601_s0 + $0x74] sm:$0xf] }
  0x16   :  { %5685 = vst [vmem:[#allocation11_spill] sm:$0xff] %v3874_v17  ;;  %v3941_v34 = vpack.c.b16 %v371_v14, %v371_v14  ;;  %v3945_v35 = vpack.c.b16 %v3934_v31, %v3934_v31  ;;  %v3969_v40 = vunpack.c.l.b16 %v3959_v38  ;;  %v3973_v41 = vpack.c.b16 %v3949_v36, %v3949_v36  ;;  %v108_v46 = vld [vmem:[%s5601_s0 + $0x70] sm:$0xf]  ;;  %v4032_v55 = vld [vmem:[%s5601_s0 + $0x38] sm:$0xf] }
  0x17   :  { %5689 = vst [vmem:[#allocation15_spill] sm:$0xff] %v3912_v27  ;;  %v3982_v43 = vpack.c.b16 %v3966_v39, %v3966_v39  ;;  %v3991_v45 = vunpack.c.l.b16 %v3978_v42  ;;  %v4005_v48 = vunpack.c.l.b16 %v108_v46  ;;  %v4008_v49 = vunpack.c.l.b16 %v3999_v47  ;;  %v4037_v56 = vld [vmem:[%s5601_s0 + $0x58] sm:$0xf]  ;;  %v4081_v3 = vld [vmem:[%s5601_s0 + $0x4] sm:$0xf] }
  0x18   :  { %5691 = vst [vmem:[#allocation17_spill] sm:$0xff] %v3934_v31  ;;  %v3986_v44 = vpack.c.b16 %v3969_v40, %v3969_v40  ;;  %v4027_v54 = vunpack.c.l.b16 %v109_v51  ;;  %v4044_v57 = vunpack.c.l.b16 %v4032_v55  ;;  %v4047_v58 = vunpack.c.l.b16 %v4037_v56  ;;  %v110_v60 = vld [vmem:[%s5601_s0 + $0x78] sm:$0xf]  ;;  %v4093_v8 = vld [vmem:[%s5601_s0 + $0x8] sm:$0xf] }
  0x19   :  { %5692 = vst [vmem:[#allocation18_spill] sm:$0xff] %v3936_v32  ;;  %v4012_v50 = vpack.c.b16 %v3991_v45, %v3991_v45  ;;  %v4019_v52 = vpack.c.b16 %v4005_v48, %v4005_v48  ;;  %v4023_v53 = vpack.c.b16 %v4008_v49, %v4008_v49  ;;  %v4066_v63 = vunpack.c.l.b16 %v110_v60  ;;  %v2951_v11 = vld [vmem:[#allocation2 + $0x70] sm:$0xf]  ;;  %v3532_v13 = vld [vmem:[#allocation2 + $0x74] sm:$0xf0] }
  0x1a   :  { %5693 = vst [vmem:[#allocation19_spill] sm:$0xff] %v3945_v35  ;;  %v4051_v59 = vpack.c.b16 %v4027_v54, %v4027_v54  ;;  %v4058_v61 = vpack.c.b16 %v4044_v57, %v4044_v57  ;;  %v4062_v62 = vpack.c.b16 %v4047_v58, %v4047_v58  ;;  %v4088_v6 = vunpack.c.l.b16 %v4081_v3  ;;  %v3531_v14 = vld [vmem:[#allocation2 + $0x74] sm:$0xf]  ;;  %v2953_v23 = vld [vmem:[#allocation2 + $0x78] sm:$0xf0] }
  0x1b   :  { %350 = vrot.lane.b32.xlu1 %v3876_v18, %s3767_s25  ;;  %5694 = vst [vmem:[#allocation20_spill] sm:$0xff] %v3949_v36  ;;  %v4074_v2 = vpack.c.b16 %v4066_v63, %v4066_v63  ;;  %v4112_v15 = vor.u32 %v3532_v13, %v2951_v11  ;;  %v2943_v33 = vld [vmem:[#allocation2 + $0x60] sm:$0xf]  ;;  %v3530_v46 = vld [vmem:[#allocation2 + $0x64] sm:$0xf0]  ;;  %v4114_v51 = vor.u32 %v3531_v14, %v2953_v23  ;;  %vm397_vm0 = vcmask 261120  }
  0x1c   :  { %315 = vrot.lane.b32.xlu0 %v3880_v19, %s3769_s18  ;;  %5695 = vst [vmem:[#allocation21_spill] sm:$0xff] %v3954_v37  ;;  %v4097_v9 = vpack.c.b16 %v4088_v6, %v4088_v6  ;;  %v3529_v60 = vld [vmem:[#allocation2 + $0x64] sm:$0xf]  ;;  %v3528_v36 = vld [vmem:[#allocation2 + $0x54] sm:$0xf0]  ;;  %vm419_vm1 = vcmask 523264  }
  0x1d   :  { %385 = vrot.lane.b32.xlu2 %v3910_v26, %s3770_s19  ;;  %5696 = vst [vmem:[#allocation22_spill] sm:$0xff] %v3959_v38  ;;  %601 = vmatpush.bf16.msra.mxu0 %v4112_v15  ;;  %v3535_v11 = vld [vmem:[#allocation2 + $0x94] sm:$0xf]  ;;  %v2969_v13 = vld [vmem:[#allocation2 + $0x98] sm:$0xf0]  ;;  %vm434_vm2 = vcmask 785408  }
  0x1e   :  { %5697 = vst [vmem:[#allocation23_spill] sm:$0xff] %v3966_v39  ;;  %657 = vmatpush.bf16.msra.mxu2 %v4114_v51  ;;  %v4125_v14 = vld [vmem:[%s5601_s0 + $0xc] sm:$0xf]  ;;  %v3536_v20 = vld [vmem:[#allocation2 + $0x94] sm:$0xf0] }
  0x1f   :  { %5698 = vst [vmem:[#allocation24_spill] sm:$0xff] %v3978_v42  ;;  %v3526_v42 = vld [vmem:[#allocation2 + $0x44] sm:$0xf0]  ;;  %v2959_v31 = vld [vmem:[#allocation2 + $0x80] sm:$0xf] }
  0x20   :  { %5699 = vst [vmem:[#allocation25_spill] sm:$0xff] %v3991_v45  ;;  %v3521_v37 = vld [vmem:[#allocation2 + $0x24] sm:$0xf]  ;;  %v2905_v38 = vld [vmem:[#allocation2 + $0x18] sm:$0xf0] }
  0x21   :  { %5700 = vst [vmem:[#allocation26_spill] sm:$0xff] %v3999_v47  ;;  %v2927_v47 = vld [vmem:[#allocation2 + $0x40] sm:$0xf] }
  0x22   :  { %5701 = vst [vmem:[#allocation27_spill] sm:$0xff] %v4005_v48  ;;  %v2935_v48 = vld [vmem:[#allocation2 + $0x50] sm:$0xf]  ;;  %v4155_v0 = vor.u32 %v3526_v42, %v2927_v47  ;;  %v2895_v21 = vld [vmem:[#allocation2] sm:$0xf] }
  0x23   :  { %319 = vrot.lane.b32.xlu1 %v3916_v28, %s3769_s18  ;;  %5702 = vst [vmem:[#allocation28_spill] sm:$0xff] %v4008_v49  ;;  %v4132_v17 = vor.u32 %v3528_v36, %v2935_v48  ;;  %v4146_v36 = vld [vmem:[%s5601_s0 + $0x10] sm:$0xf]  ;;  %v2929_v49 = vld [vmem:[#allocation2 + $0x48] sm:$0xf0] }
  0x24   :  { %317 = vrot.lane.b32.xlu0 %v3920_v29, %s3769_s18  ;;  %5703 = vst [vmem:[#allocation29_spill] sm:$0xff] %v4012_v50  ;;  %v2919_v47 = vld [vmem:[#allocation2 + $0x30] sm:$0xf] }
  0x25   :  { %352 = vrot.lane.b32.xlu2 %v3936_v32, %s3767_s25  ;;  %5704 = vst [vmem:[#allocation30_spill] sm:$0xff] %v4023_v53 }
  0x26   :  { %5705 = vst [vmem:[#allocation31_spill] sm:$0xff] %v4027_v54  ;;  %v4117_v54 = vor.u32 %v3530_v46, %v2943_v33  ;;  %v3527_v33 = vld [vmem:[#allocation2 + $0x54] sm:$0xf]  ;;  %v2937_v46 = vld [vmem:[#allocation2 + $0x58] sm:$0xf0] }
  0x27   :  { %5706 = vst [vmem:[#allocation32_spill] sm:$0xff] %v4032_v55  ;;  %v4148_v48 = vor.u32 %v3527_v33, %v2937_v46  ;;  %v4165_v33 = vunpack.c.l.b16 %v4146_v36  ;;  %v3524_v46 = vld [vmem:[#allocation2 + $0x34] sm:$0xf0]  ;;  %v3534_v55 = vld [vmem:[#allocation2 + $0x84] sm:$0xf0] }
  0x28   :  { %5707 = vst [vmem:[#allocation33_spill] sm:$0xff] %v4037_v56  ;;  %v4129_v56 = vor.u32 %v3535_v11, %v2969_v13  ;;  %602 = vmatpush.bf16.msra.mxu0 %v4117_v54  ;;  %v2961_v11 = vld [vmem:[#allocation2 + $0x88] sm:$0xf0]  ;;  %v2967_v13 = vld [vmem:[#allocation2 + $0x90] sm:$0xf]  ;;  %v4192_v27 = vor.u32 %v3534_v55, %v2959_v31 }
  0x29   :  { %5708 = vst [vmem:[#allocation34_spill] sm:$0xff] %v4044_v57  ;;  %v4152_v4 = vor.u32 %v3536_v20, %v2967_v13  ;;  %v4179_v42 = vpack.c.b16 %v4165_v33, %v4165_v33  ;;  %v2903_v55 = vld [vmem:[#allocation2 + $0x10] sm:$0xf] }
  0x2a   :  { %5709 = vst [vmem:[#allocation35_spill] sm:$0xff] %v4047_v58  ;;  %691 = vmatpush.bf16.msra.mxu3 %v4129_v56  ;;  %v3525_v58 = vld [vmem:[#allocation2 + $0x44] sm:$0xf] }
  0x2b   :  { %387 = vrot.lane.b32.xlu1 %v3941_v34, %s3770_s19  ;;  %5710 = vst [vmem:[#allocation36_spill] sm:$0xff] %v4062_v62  ;;  %635 = vmatpush.bf16.msra.mxu1 %v4152_v4  ;;  %v4169_v20 = vor.u32 %v3525_v58, %v2929_v49  ;;  %v4182_v49 = vor.u32 %v3524_v46, %v2919_v47  ;;  %v2921_v58 = vld [vmem:[#allocation2 + $0x38] sm:$0xf0]  ;;  %v2911_v47 = vld [vmem:[#allocation2 + $0x20] sm:$0xf] }
  0x2c   :  { %354 = vrot.lane.b32.xlu0 %v3945_v35, %s3767_s25  ;;  %5711 = vst [vmem:[#allocation37_spill] sm:$0xff] %v4066_v63  ;;  %v2945_v63 = vld [vmem:[#allocation2 + $0x68] sm:$0xf0]  ;;  %603 = vmatpush.bf16.msra.mxu0 %v4132_v17  ;;  %v3522_v46 = vld [vmem:[#allocation2 + $0x24] sm:$0xf0] }
  0x2d   :  { %389 = vrot.lane.b32.xlu2 %v3973_v41, %s3770_s19  ;;  %5712 = vst [vmem:[#allocation38_spill] sm:$0xff] %v4112_v15  ;;  %v4127_v23 = vor.u32 %v3529_v60, %v2945_v63  ;;  %v4140_v63 = vunpack.c.l.b16 %v4125_v14  ;;  %v3533_v60 = vld [vmem:[#allocation2 + $0x84] sm:$0xf] }
  0x2e   :  { %5713 = vst [vmem:[#allocation39_spill] sm:$0xff] %v4117_v54  ;;  %v4150_v30 = vor.u32 %v3533_v60, %v2961_v11  ;;  %v3523_v60 = vld [vmem:[#allocation2 + $0x34] sm:$0xf] }
  0x2f   :  { %658 = vmatpush.bf16.msra.mxu2 %v4127_v23  ;;  %v4160_v45 = vpack.c.b16 %v4140_v63, %v4140_v63  ;;  %v4186_v13 = vor.u32 %v3523_v60, %v2921_v58  ;;  %v2913_v60 = vld [vmem:[#allocation2 + $0x28] sm:$0xf0]  ;;  %636 = vmatpush.bf16.msra.mxu1 %v4192_v27 }
  0x30   :  { %692 = vmatpush.bf16.msra.mxu3 %v4150_v30  ;;  %604 = vmatpush.bf16.msra.mxu0 %v4155_v0  ;;  %v4203_v58 = vor.u32 %v3521_v37, %v2913_v60  ;;  %v4217_v37 = vld [vmem:[%s5601_s0 + $0x18] sm:$0xf] }
  0x33   :  { %323 = vrot.lane.b32.xlu1 %v3982_v43, %s3769_s18  ;;  %659 = vmatpush.bf16.msra.mxu2 %v4148_v48 }
  0x34   :  { %321 = vrot.lane.b32.xlu0 %v3986_v44, %s3769_s18  ;;  %884 = vmatpush.bf16.msrb.mxu3 %v4152_v4 }
  0x35   :  { %356 = vrot.lane.b32.xlu2 %v4012_v50, %s3767_s25  ;;  %605 = vmatpush.bf16.msra.mxu0 %v4182_v49 }
  0x36   :  { %850 = vmatpush.bf16.msrb.mxu1 %v4112_v15 }
  0x37   :  { %660 = vmatpush.bf16.msra.mxu2 %v4169_v20 }
  0x38   :  { %885 = vmatpush.bf16.msrb.mxu3 %v4192_v27 }
  0x3a   :  { %851 = vmatpush.bf16.msrb.mxu1 %v4117_v54 }
  0x3b   :  { %391 = vrot.lane.b32.xlu1 %v4019_v52, %s3770_s19  ;;  %661 = vmatpush.bf16.msra.mxu2 %v4186_v13 }
  0x3c   :  { %358 = vrot.lane.b32.xlu0 %v4023_v53, %s3767_s25 }
  0x3d   :  { %393 = vrot.lane.b32.xlu2 %v4051_v59, %s3770_s19 }
  0x3e   :  { %852 = vmatpush.bf16.msrb.mxu1 %v4132_v17 }
  0x3f   :  { %662 = vmatpush.bf16.msra.mxu2 %v4203_v58 }
  0x42   :  { %853 = vmatpush.bf16.msrb.mxu1 %v4155_v0 }
  0x43   :  { %360 = vrot.lane.b32.xlu1 %v4062_v62, %s3767_s25 }
  0x44   :  { %325 = vrot.lane.b32.xlu0 %v4058_v61, %s3769_s18 }
  0x45   :  { %395 = vrot.lane.b32.xlu2 %v4074_v2, %s3770_s19 }
  0x46   :  { %854 = vmatpush.bf16.msrb.mxu1 %v4182_v49 }
  0x4b   :  { %715 = vrot.lane.b32.xlu1 %v3876_v18, %s3769_s18 }
  0x4c   :  { %713 = vrot.lane.b32.xlu0 %v3857_v7, %s3769_s18  ;;  %v4102_v7 = vunpack.c.l.b16 %v4093_v8 }
  0x4d   :  { %727 = vrot.lane.b32.xlu2 %v3872_v16, %s3767_s25 }
  0x4e   :  { %v4110_v10 = vpack.c.b16 %v4102_v7, %v4102_v7  ;;  %v478_v11 = vpack.c.b16 %v4102_v7, %v4088_v6  ;;  %v4197_v6 = vld [vmem:[%s5601_s0 + $0x14] sm:$0xf]  ;;  %v4200_v7 = vor.u32 %v3522_v46, %v2911_v47  ;;  %v3520_v47 = vld [vmem:[#allocation2 + $0x14] sm:$0xf0] }
  0x4f   :  { %v472_v31 = vunpack.c.l.b16 %v4197_v6  ;;  %v3519_v46 = vld [vmem:[#allocation2 + $0x14] sm:$0xf]  ;;  %v4220_v60 = vor.u32 %v3520_v47, %v2903_v55  ;;  %v3517_v55 = vld [vmem:[#allocation2 + $0x4] sm:$0xf]  ;;  %v2897_v47 = vld [vmem:[#allocation2 + $0x8] sm:$0xf0] }
  0x50   :  { %2977 = vmatmul.msk.bf16.vlgmr.msra.gmra.mxu3 %vm397_vm0, %v478_v11  ;;  %606 = vmatpush.bf16.msra.mxu0 %v4200_v7  ;;  %v4235_v22 = vor.u32 %v3517_v55, %v2897_v47 }
  0x51   :  { %2973 = vmatmul.msk.bf16.vlgmr.msra.gmra.mxu1 %vm397_vm0, %v478_v11  ;;  %1173 = vmatpush.bf16.msra.mxu3 %v4152_v4  ;;  %v3518_v11 = vld [vmem:[#allocation2 + $0x4] sm:$0xf0] }
  0x52   :  { %855 = vmatpush.bf16.msrb.mxu1 %v4200_v7 }
  0x53   :  { %747 = vrot.lane.b32.xlu1 %v4097_v9, %s3770_s19 }
  0x54   :  { %729 = vrot.lane.b32.xlu0 %v3910_v26, %s3767_s25  ;;  %607 = vmatpush.bf16.msra.mxu0 %v4220_v60 }
  0x55   :  { %749 = vrot.lane.b32.xlu2 %v4110_v10, %s3770_s19  ;;  %1174 = vmatpush.bf16.msra.mxu3 %v4192_v27 }
  0x56   :  { %856 = vmatpush.bf16.msrb.mxu1 %v4220_v60 }
  0x5b   :  { %719 = vrot.lane.b32.xlu1 %v3945_v35, %s3769_s18  ;;  %v474_v35 = vunpack.c.l.b16 %v4217_v37 }
  0x5c   :  { %717 = vrot.lane.b32.xlu0 %v3936_v32, %s3769_s18 }
  0x5d   :  { %731 = vrot.lane.b32.xlu2 %v3941_v34, %s3767_s25  ;;  %v4244_v32 = vpack.c.b16 %v474_v35, %v474_v35 }
  0x63   :  { %751 = vrot.lane.b32.xlu1 %v4160_v45, %s3770_s19 }
  0x64   :  { %733 = vrot.lane.b32.xlu0 %v3973_v41, %s3767_s25 }
  0x65   :  { %753 = vrot.lane.b32.xlu2 %v4179_v42, %s3770_s19 }
  0x6b   :  { %723 = vrot.lane.b32.xlu1 %v4023_v53, %s3769_s18  ;;  %v4227_v53 = vpack.c.b16 %v472_v31, %v472_v31 }
  0x6c   :  { %721 = vrot.lane.b32.xlu0 %v4012_v50, %s3769_s18  ;;  %v4222_v50 = vor.u32 %v3519_v46, %v2905_v38  ;;  %v4233_v38 = vor.u32 %v3518_v11, %v2895_v21  ;;  %v480_v21 = vpack.c.b16 %v4165_v33, %v4140_v63  ;;  %v87_v11 = vld [vmem:[%s5601_s0 + $0x1c] sm:$0xf] }
  0x6d   :  { %735 = vrot.lane.b32.xlu2 %v4019_v52, %s3767_s25  ;;  %v476_v55 = vunpack.c.l.b16 %v87_v11  ;;  %v482_v11 = vpack.c.b16 %v474_v35, %v472_v31 }
  0x6e   :  { %663 = vmatpush.bf16.msra.mxu2 %v4222_v50  ;;  %608 = vmatpush.bf16.msra.mxu0 %v4233_v38 }
  0x6f   :  { %v384_v46 = vpop.permute.xlu2 %383  ;;  %2978 = vmatmul.msk.bf16.gmra.mxu3 %vm397_vm0, %v480_v21  ;;  %v4265_v63 = vpack.c.b16 %v476_v55, %v476_v55  ;;  %2974 = vmatmul.msk.bf16.gmra.mxu1 %vm397_vm0, %v480_v21 }
  0x70   :  { %857 = vmatpush.bf16.msrb.mxu1 %v4233_v38 }
  0x72   :  { %664 = vmatpush.bf16.msra.mxu2 %v4235_v22  ;;  %906 = vmatpush.bf16.msrb.mxu0 %v4114_v51 }
  0x73   :  { %755 = vrot.lane.b32.xlu1 %v4227_v53, %s3770_s19 }
  0x74   :  { %737 = vrot.lane.b32.xlu0 %v4051_v59, %s3767_s25  ;;  %1139 = vmatpush.bf16.msra.mxu1 %v4112_v15 }
  0x75   :  { %757 = vrot.lane.b32.xlu2 %v4244_v32, %s3770_s19 }
  0x76   :  { %940 = vmatpush.bf16.msrb.mxu2 %v4129_v56  ;;  %907 = vmatpush.bf16.msrb.mxu0 %v4127_v23 }
  0x77   :  { %v386_v47 = vpop.permute.xlu2 %385 }
  0x78   :  { %1140 = vmatpush.bf16.msra.mxu1 %v4117_v54 }
  0x7a   :  { %941 = vmatpush.bf16.msrb.mxu2 %v4150_v30  ;;  %908 = vmatpush.bf16.msrb.mxu0 %v4148_v48 }
  0x7b   :  { %739 = vrot.lane.b32.xlu1 %v4074_v2, %s3767_s25 }
  0x7c   :  { %725 = vrot.lane.b32.xlu0 %v4062_v62, %s3769_s18  ;;  %v80_v62 = vld [vmem:[%s5601_s0] sm:$0xf]  ;;  %1141 = vmatpush.bf16.msra.mxu1 %v4132_v17 }
  0x7d   :  { %759 = vrot.lane.b32.xlu2 %v4265_v63, %s3770_s19 }
  0x7e   :  { %909 = vmatpush.bf16.msrb.mxu0 %v4169_v20 }
  0x7f   :  { %v353_v33 = vpop.permute.xlu2 %352  ;;  %2979 = vmatmul.msk.bf16.gmra.mxu3 %vm397_vm0, %v482_v11  ;;  %2975 = vmatmul.msk.bf16.gmra.mxu1 %vm397_vm0, %v482_v11 }
  0x80   :  { %1142 = vmatpush.bf16.msra.mxu1 %v4155_v0 }
  0x82   :  { %910 = vmatpush.bf16.msrb.mxu0 %v4186_v13 }
  0x83   :  { %1010 = vrot.lane.b32.xlu1 %v3910_v26, %s3769_s18 }
  0x84   :  { %1008 = vrot.lane.b32.xlu0 %v3872_v16, %s3769_s18  ;;  %1143 = vmatpush.bf16.msra.mxu1 %v4182_v49 }
  0x85   :  { %v349_v21 = vpop.permute.xlu1 %348  ;;  %1022 = vrot.lane.b32.xlu2 %v4097_v9, %s3767_s25 }
  0x86   :  { %v314_v55 = vpop.permute.xlu0 %313  ;;  %911 = vmatpush.bf16.msrb.mxu0 %v4203_v58 }
  0x87   :  { %v400_v16 = vsel %vm397_vm0, %v80_v62, %v314_v55  ;;  %v390_v26 = vpop.permute.xlu2 %389 }
  0x88   :  { %v421_v35 = vsel %vm419_vm1, %v400_v16, %v349_v21  ;;  %1144 = vmatpush.bf16.msra.mxu1 %v4200_v7 }
  0x89   :  { %v436_v62 = vsel %vm434_vm2, %v421_v35, %v384_v46 }
  0x8a   :  { %912 = vmatpush.bf16.msrb.mxu0 %v4222_v50  ;;  %v463_v11 = vunpack.c.l.b16 %v436_v62 }
  0x8b   :  { %1036 = vrot.lane.b32.xlu1 %v3880_v19, %s3770_s19 }
  0x8c   :  { %1024 = vrot.lane.b32.xlu0 %v4110_v10, %s3767_s25  ;;  %1145 = vmatpush.bf16.msra.mxu1 %v4220_v60 }
  0x8d   :  { %v351_v31 = vpop.permute.xlu1 %350  ;;  %1038 = vrot.lane.b32.xlu2 %v3920_v29, %s3770_s19 }
  0x8e   :  { %v316_v15 = vpop.permute.xlu0 %315  ;;  %913 = vmatpush.bf16.msrb.mxu0 %v4235_v22 }
  0x8f   :  { %v403_v55 = vsel %vm397_vm0, %v4081_v3, %v316_v15  ;;  %v357_v39 = vpop.permute.xlu2 %356  ;;  %2980 = vmatmul.msk.bf16.gmra.mxu3 %vm397_vm0, %v4265_v63  ;;  %2976 = vmatmul.msk.bf16.gmra.mxu1 %vm397_vm0, %v4265_v63 }
  0x90   :  { %v423_v21 = vsel %vm419_vm1, %v403_v55, %v351_v31  ;;  %1146 = vmatpush.bf16.msra.mxu1 %v4233_v38 }
  0x91   :  { %v438_v16 = vsel %vm434_vm2, %v423_v21, %v386_v47  ;;  %v4344_v21 = vpack.c.b16 %v3908_v25, %v3870_v12 }
  0x92   :  { %v465_v57 = vunpack.c.l.b16 %v438_v16 }
  0x93   :  { %1014 = vrot.lane.b32.xlu1 %v3973_v41, %s3769_s18 }
  0x94   :  { %v477_v54 = vpack.c.b16 %v465_v57, %v463_v11  ;;  %1012 = vrot.lane.b32.xlu0 %v3941_v34, %s3769_s18 }
  0x95   :  { %v320_v3 = vpop.permute.xlu1 %319  ;;  %1026 = vrot.lane.b32.xlu2 %v4160_v45, %s3767_s25 }
  0x96   :  { %v318_v15 = vpop.permute.xlu0 %317  ;;  %609 = vmatmul.bf16.vlgmr.msra.gmra.mxu0 %v477_v54  ;;  %665 = vmatmul.bf16.vlgmr.msra.gmra.mxu2 %v477_v54  ;;  %v409_v54 = vsel %vm397_vm0, %v4125_v14, %v320_v3 }
  0x97   :  { %1229 = vmatpush.bf16.msra.mxu2 %v4129_v56  ;;  %1195 = vmatpush.bf16.msra.mxu0 %v4114_v51  ;;  %v394_v34 = vpop.permute.xlu2 %393  ;;  %v406_v41 = vsel %vm397_vm0, %v4093_v8, %v318_v15 }
  0x98   :  { %v425_v57 = vsel %vm419_vm1, %v406_v41, %v353_v33 }
  0x9b   :  { %1230 = vmatpush.bf16.msra.mxu2 %v4150_v30  ;;  %1040 = vrot.lane.b32.xlu1 %v3916_v28, %s3770_s19 }
  0x9c   :  { %1028 = vrot.lane.b32.xlu0 %v4179_v42, %s3767_s25  ;;  %1196 = vmatpush.bf16.msra.mxu0 %v4127_v23 }
  0x9d   :  { %v388_v46 = vpop.permute.xlu1 %387  ;;  %1042 = vrot.lane.b32.xlu2 %v3986_v44, %s3770_s19 }
  0x9e   :  { %v355_v8 = vpop.permute.xlu0 %354  ;;  %v440_v47 = vsel %vm434_vm2, %v425_v57, %v388_v46 }
  0x9f   :  { %v427_v35 = vsel %vm419_vm1, %v409_v54, %v355_v8  ;;  %v467_v31 = vunpack.c.l.b16 %v440_v47  ;;  %v396_v14 = vpop.permute.xlu2 %395  ;;  %2981 = vmatmul.msk.bf16.vlgmr.msrb.gmra.mxu3 %vm397_vm0, %v4344_v21  ;;  %v95_v8 = vld [vmem:[%s5601_s0 + $0x3c] sm:$0xf] }
  0xa0   :  { %v442_v62 = vsel %vm434_vm2, %v427_v35, %v390_v26  ;;  %1197 = vmatpush.bf16.msra.mxu0 %v4148_v48  ;;  %1416 = vmatpush.bf16.msrb.mxu3 %v4152_v4 }
  0xa1   :  { %v469_v55 = vunpack.c.l.b16 %v442_v62 }
  0xa3   :  { %v479_v33 = vpack.c.b16 %v469_v55, %v467_v31  ;;  %1018 = vrot.lane.b32.xlu1 %v4051_v59, %s3769_s18 }
  0xa4   :  { %1016 = vrot.lane.b32.xlu0 %v4019_v52, %s3769_s18  ;;  %1198 = vmatpush.bf16.msra.mxu0 %v4169_v20 }
  0xa5   :  { %v324_v26 = vpop.permute.xlu1 %323  ;;  %1030 = vrot.lane.b32.xlu2 %v4227_v53, %s3767_s25  ;;  %1417 = vmatpush.bf16.msrb.mxu3 %v4192_v27 }
  0xa6   :  { %v322_v16 = vpop.permute.xlu0 %321  ;;  %614 = vmatmul.bf16.gmra.mxu0 %v479_v33  ;;  %670 = vmatmul.bf16.gmra.mxu2 %v479_v33  ;;  %v415_v4 = vsel %vm397_vm0, %v4197_v6, %v324_v26 }
  0xa7   :  { %v728_v12 = vpop.permute.xlu2 %727  ;;  %v412_v25 = vsel %vm397_vm0, %v4146_v36, %v322_v16 }
  0xa8   :  { %1199 = vmatpush.bf16.msra.mxu0 %v4186_v13  ;;  %v429_v52 = vsel %vm419_vm1, %v412_v25, %v357_v39  ;;  %v4378_v39 = vpack.c.b16 %v3969_v40, %v3905_v24  ;;  %v825_v24 = vunpack.c.l.b16 %v95_v8 }
  0xaa   :  { %v4390_v35 = vpack.c.b16 %v825_v24, %v825_v24 }
  0xab   :  { %1044 = vrot.lane.b32.xlu1 %v3982_v43, %s3770_s19 }
  0xac   :  { %1032 = vrot.lane.b32.xlu0 %v4244_v32, %s3767_s25  ;;  %1200 = vmatpush.bf16.msra.mxu0 %v4203_v58 }
  0xad   :  { %v392_v59 = vpop.permute.xlu1 %391  ;;  %1046 = vrot.lane.b32.xlu2 %v4058_v61, %s3770_s19 }
  0xae   :  { %v359_v11 = vpop.permute.xlu0 %358  ;;  %v444_v36 = vsel %vm434_vm2, %v429_v52, %v392_v59 }
  0xaf   :  { %v431_v3 = vsel %vm419_vm1, %v415_v4, %v359_v11  ;;  %v471_v15 = vunpack.c.l.b16 %v444_v36  ;;  %v750_v27 = vpop.permute.xlu2 %749  ;;  %2982 = vmatmul.msk.bf16.gmra.mxu3 %vm397_vm0, %v4378_v39  ;;  %v5716_v11 = vld [vmem:[#allocation18_spill] sm:$0xff] }
  0xb0   :  { %v446_v41 = vsel %vm434_vm2, %v431_v3, %v394_v34  ;;  %1201 = vmatpush.bf16.msra.mxu0 %v4222_v50 }
  0xb1   :  { %v473_v54 = vunpack.c.l.b16 %v446_v41  ;;  %v5718_v41 = vld [vmem:[#allocation14_spill] sm:$0xff] }
  0xb3   :  { %v481_v57 = vpack.c.b16 %v473_v54, %v471_v15  ;;  %1034 = vrot.lane.b32.xlu1 %v4265_v63, %s3767_s25  ;;  %v5717_v15 = vld [vmem:[#allocation38_spill] sm:$0xff] }
  0xb4   :  { %1020 = vrot.lane.b32.xlu0 %v4074_v2, %s3769_s18  ;;  %1202 = vmatpush.bf16.msra.mxu0 %v4235_v22 }
  0xb5   :  { %v361_v34 = vpop.permute.xlu1 %360  ;;  %1048 = vrot.lane.b32.xlu2 %v4390_v35, %s3770_s19 }
  0xb6   :  { %v326_v6 = vpop.permute.xlu0 %325  ;;  %619 = vmatmul.bf16.gmra.mxu0 %v481_v57  ;;  %675 = vmatmul.bf16.gmra.mxu2 %v481_v57 }
  0xb7   :  { %v418_v46 = vsel %vm397_vm0, %v4217_v37, %v326_v6  ;;  %v732_v40 = vpop.permute.xlu2 %731 }
  0xb8   :  { %v433_v2 = vsel %vm419_vm1, %v418_v46, %v361_v34 }
  0xb9   :  { %v448_v47 = vsel %vm434_vm2, %v433_v2, %v396_v14 }
  0xba   :  { %v475_v62 = vunpack.c.l.b16 %v448_v47 }
  0xbb   :  { %1253 = vrot.lane.b32.xlu1 %v4110_v10, %s3769_s18  ;;  %v5715_v10 = vld [vmem:[#allocation34_spill] sm:$0xff] }
  0xbc   :  { %1251 = vrot.lane.b32.xlu0 %v4097_v9, %s3769_s18  ;;  %v483_v33 = vpack.c.b16 %v475_v62, %v475_v62  ;;  %v5714_v9 = vld [vmem:[#allocation23_spill] sm:$0xff]  ;;  %v5725_v62 = vld [vmem:[#allocation30_spill] sm:$0xff] }
  0xbd   :  { %v716_v31 = vpop.permute.xlu1 %715  ;;  %1265 = vrot.lane.b32.xlu2 %v3880_v19, %s3767_s25  ;;  %v4411_v25 = vpack.c.b16 %v5715_v10, %v5714_v9  ;;  %v5728_v10 = vld [vmem:[#allocation32_spill] sm:$0xff] }
  0xbe   :  { %v714_v37 = vpop.permute.xlu0 %713  ;;  %v766_v16 = vsel %vm397_vm0, %v3852_v5, %v716_v31 }
  0xbf   :  { %v763_v55 = vsel %vm397_vm0, %v3840_v1, %v714_v37  ;;  %v754_v26 = vpop.permute.xlu2 %753  ;;  %2983 = vmatmul.msk.bf16.gmra.mxu3 %vm397_vm0, %v4411_v25 }
  0xc0   :  { %v783_v14 = vsel %vm419_vm1, %v763_v55, %v728_v12 }
  0xc3   :  { %1279 = vrot.lane.b32.xlu1 %v3876_v18, %s3770_s19 }
  0xc4   :  { %1267 = vrot.lane.b32.xlu0 %v3920_v29, %s3767_s25 }
  0xc5   :  { %v748_v12 = vpop.permute.xlu1 %747  ;;  %1281 = vrot.lane.b32.xlu2 %v5716_v11, %s3770_s19 }
  0xc6   :  { %v730_v1 = vpop.permute.xlu0 %729  ;;  %624 = vmatmul.bf16.gmra.mxu0 %v483_v33  ;;  %680 = vmatmul.bf16.gmra.mxu2 %v483_v33  ;;  %v797_v5 = vsel %vm434_vm2, %v783_v14, %v748_v12  ;;  %v5726_v33 = vld [vmem:[#allocation15_spill] sm:$0xff] }
  0xc7   :  { %v785_v4 = vsel %vm419_vm1, %v766_v16, %v730_v1  ;;  %v818_v29 = vunpack.c.l.b16 %v797_v5  ;;  %v736_v19 = vpop.permute.xlu2 %735 }
  0xc8   :  { %v799_v18 = vsel %vm434_vm2, %v785_v4, %v750_v27  ;;  %v5719_v27 = vld [vmem:[#allocation39_spill] sm:$0xff] }
  0xc9   :  { %v819_v52 = vunpack.c.l.b16 %v799_v18 }
  0xcb   :  { %v826_v59 = vpack.c.b16 %v819_v52, %v818_v29  ;;  %1257 = vrot.lane.b32.xlu1 %v4179_v42, %s3769_s18  ;;  %v5721_v42 = vld [vmem:[#allocation19_spill] sm:$0xff]  ;;  %v5730_v29 = vld [vmem:[#allocation25_spill] sm:$0xff] }
  0xcc   :  { %1255 = vrot.lane.b32.xlu0 %v4160_v45, %s3769_s18  ;;  %v5720_v45 = vld [vmem:[#allocation13_spill] sm:$0xff] }
  0xcd   :  { %858 = vmatmul.bf16.vlgmr.msrb.gmra.mxu1 %v826_v59  ;;  %v720_v3 = vpop.permute.xlu1 %719  ;;  %1269 = vrot.lane.b32.xlu2 %v3916_v28, %s3767_s25 }
  0xce   :  { %v718_v36 = vpop.permute.xlu0 %717  ;;  %1382 = vmatpush.bf16.msrb.mxu1 %v5717_v15  ;;  %v772_v34 = vsel %vm397_vm0, %v5720_v45, %v720_v3  ;;  %v4478_v14 = vpop.f32.mrf.mxu1 }
  0xcf   :  { %v769_v54 = vsel %vm397_vm0, %v5718_v41, %v718_v36  ;;  %v758_v57 = vpop.permute.xlu2 %757  ;;  %2984 = vmatmul.msk.bf16.gmra.mxu3 %vm397_vm0, %v4390_v35 }
  0xd0   :  { %v787_v6 = vsel %vm419_vm1, %v769_v54, %v732_v40  ;;  %v5732_v54 = vld [vmem:[#allocation10_spill] sm:$0xff] }
  0xd2   :  { %1383 = vmatpush.bf16.msrb.mxu1 %v5719_v27 }
  0xd3   :  { %1283 = vrot.lane.b32.xlu1 %v5721_v42, %s3770_s19 }
  0xd4   :  { %1271 = vrot.lane.b32.xlu0 %v3986_v44, %s3767_s25 }
  0xd5   :  { %v752_v2 = vpop.permute.xlu1 %751 }
  0xd6   :  { %v734_v46 = vpop.permute.xlu0 %733  ;;  %914 = vmatmul.bf16.vlgmr.msrb.gmra.mxu0 %v826_v59  ;;  %2985 = vmatmul.msk.bf16.vlgmr.msrb.gmra.mxu2 %vm397_vm0, %v4344_v21  ;;  %v801_v24 = vsel %vm434_vm2, %v787_v6, %v752_v2  ;;  %v4495_v4 = vpop.f32.mrf.mxu1 }
  0xd7   :  { %v789_v8 = vsel %vm419_vm1, %v772_v34, %v734_v46  ;;  %1472 = vmatpush.bf16.msrb.mxu2 %v4129_v56  ;;  %v820_v40 = vunpack.c.l.b16 %v801_v24  ;;  %1438 = vmatpush.bf16.msrb.mxu0 %v4114_v51  ;;  %v760_v21 = vpop.permute.xlu2 %759  ;;  %v5722_v56 = vld [vmem:[#allocation29_spill] sm:$0xff] }
  0xd8   :  { %v803_v44 = vsel %vm434_vm2, %v789_v8, %v754_v26  ;;  %1384 = vmatpush.bf16.msrb.mxu1 %v4132_v17  ;;  %1285 = vrot.lane.b32.xlu2 %v5722_v56, %s3770_s19  ;;  %v5723_v17 = vld [vmem:[#allocation22_spill] sm:$0xff] }
  0xd9   :  { %v821_v28 = vunpack.c.l.b16 %v803_v44 }
  0xdb   :  { %v828_v47 = vpack.c.b16 %v821_v28, %v820_v40  ;;  %1473 = vmatpush.bf16.msrb.mxu2 %v4150_v30  ;;  %1261 = vrot.lane.b32.xlu1 %v4244_v32, %s3769_s18  ;;  %v5724_v32 = vld [vmem:[#allocation21_spill] sm:$0xff]  ;;  %v5733_v40 = vld [vmem:[#allocation28_spill] sm:$0xff]  ;;  %v5734_v28 = vld [vmem:[#allocation35_spill] sm:$0xff] }
  0xdc   :  { %1259 = vrot.lane.b32.xlu0 %v4227_v53, %s3769_s18  ;;  %1439 = vmatpush.bf16.msrb.mxu0 %v4127_v23 }
  0xdd   :  { %863 = vmatmul.bf16.gmra.mxu1 %v828_v47  ;;  %v724_v31 = vpop.permute.xlu1 %723 }
  0xde   :  { %v722_v37 = vpop.permute.xlu0 %721  ;;  %1385 = vmatpush.bf16.msrb.mxu1 %v4155_v0  ;;  %v778_v53 = vsel %vm397_vm0, %v5724_v32, %v724_v31  ;;  %v5736_v32 = vld [vmem:[#allocation16_spill] sm:$0xff] }
  0xdf   :  { %v775_v51 = vsel %vm397_vm0, %v5723_v17, %v722_v37  ;;  %v1023_v23 = vpop.permute.xlu2 %1022  ;;  %2989 = vmatmul.msk.bf16.vlgmr.msra.gmra.mxu3 %vm397_vm0, %v5726_v33 }
  0xe0   :  { %1440 = vmatpush.bf16.msrb.mxu0 %v4148_v48  ;;  %v791_v30 = vsel %vm419_vm1, %v775_v51, %v736_v19  ;;  %1273 = vrot.lane.b32.xlu2 %v3982_v43, %s3767_s25  ;;  %v5735_v51 = vld [vmem:[#allocation12_spill] sm:$0xff] }
  0xe2   :  { %1386 = vmatpush.bf16.msrb.mxu1 %v4182_v49 }
  0xe3   :  { %1287 = vrot.lane.b32.xlu1 %v5725_v62, %s3770_s19 }
  0xe4   :  { %1275 = vrot.lane.b32.xlu0 %v4058_v61, %s3767_s25  ;;  %1441 = vmatpush.bf16.msrb.mxu0 %v4169_v20  ;;  %v5727_v20 = vld [vmem:[#allocation36_spill] sm:$0xff] }
  0xe5   :  { %v756_v48 = vpop.permute.xlu1 %755 }
  0xe6   :  { %v738_v0 = vpop.permute.xlu0 %737  ;;  %919 = vmatmul.bf16.gmra.mxu0 %v828_v47  ;;  %2986 = vmatmul.msk.bf16.gmra.mxu2 %vm397_vm0, %v4378_v39  ;;  %v805_v55 = vsel %vm434_vm2, %v791_v30, %v756_v48  ;;  %v4480_v39 = vpop.f32.mrf.mxu3  ;;  %v4535_v47 = vpack.c.b16 %v5734_v28, %v5733_v40 }
  0xe7   :  { %v793_v49 = vsel %vm419_vm1, %v778_v53, %v738_v0  ;;  %v822_v26 = vunpack.c.l.b16 %v805_v55  ;;  %1387 = vmatpush.bf16.msrb.mxu1 %v4200_v7  ;;  %v1039_v12 = vpop.permute.xlu2 %1038 }
  0xe8   :  { %v807_v61 = vsel %vm434_vm2, %v793_v49, %v758_v57  ;;  %1442 = vmatpush.bf16.msrb.mxu0 %v4186_v13  ;;  %1289 = vrot.lane.b32.xlu2 %v5727_v20, %s3770_s19 }
  0xe9   :  { %v823_v43 = vunpack.c.l.b16 %v807_v61 }
  0xeb   :  { %v830_v16 = vpack.c.b16 %v823_v43, %v822_v26  ;;  %1277 = vrot.lane.b32.xlu1 %v4390_v35, %s3767_s25  ;;  %1388 = vmatpush.bf16.msrb.mxu1 %v4220_v60  ;;  %v5729_v60 = vld [vmem:[#allocation17_spill] sm:$0xff] }
  0xec   :  { %1263 = vrot.lane.b32.xlu0 %v4265_v63, %s3769_s18  ;;  %1443 = vmatpush.bf16.msrb.mxu0 %v4203_v58  ;;  %v4503_v52 = vpack.c.b16 %v5730_v29, %v5729_v60  ;;  %v4513_v36 = vpop.f32.mrf.mxu1  ;;  %v5737_v29 = vld [vmem:[#allocation24_spill] sm:$0xff] }
  0xed   :  { %868 = vmatmul.bf16.gmra.mxu1 %v830_v16  ;;  %v740_v7 = vpop.permute.xlu1 %739 }
  0xee   :  { %v726_v9 = vpop.permute.xlu0 %725  ;;  %v4498_v5 = vpop.f32.mrf.mxu3 }
  0xef   :  { %v781_v1 = vsel %vm397_vm0, %v5728_v10, %v726_v9  ;;  %1389 = vmatpush.bf16.msrb.mxu1 %v4233_v38  ;;  %2990 = vmatmul.msk.bf16.gmra.mxu3 %vm397_vm0, %v4503_v52  ;;  %v1027_v59 = vpop.permute.xlu2 %1026 }
  0xf0   :  { %v795_v13 = vsel %vm419_vm1, %v781_v1, %v740_v7  ;;  %1444 = vmatpush.bf16.msrb.mxu0 %v4222_v50  ;;  %v103_v50 = vld [vmem:[%s5601_s0 + $0x5c] sm:$0xf] }
  0xf1   :  { %v809_v63 = vsel %vm434_vm2, %v795_v13, %v760_v21  ;;  %v1114_v11 = vunpack.c.l.b16 %v103_v50 }
  0xf2   :  { %v824_v18 = vunpack.c.l.b16 %v809_v63 }
  0xf3   :  { %v4517_v15 = vpack.c.b16 %v1114_v11, %v1114_v11 }
  0xf4   :  { %1445 = vmatpush.bf16.msrb.mxu0 %v4235_v22  ;;  %v832_v38 = vpack.c.b16 %v824_v18, %v824_v18  ;;  %v4529_v46 = vpop.f32.mrf.mxu1 }
  0xf5   :  { %v1011_v19 = vpop.permute.xlu1 %1010  ;;  %1291 = vrot.lane.b32.xlu2 %v4517_v15, %s3770_s19 }
  0xf6   :  { %924 = vmatmul.bf16.gmra.mxu0 %v830_v16  ;;  %2987 = vmatmul.msk.bf16.gmra.mxu2 %vm397_vm0, %v4411_v25  ;;  %v1009_v58 = vpop.permute.xlu0 %1008  ;;  %v4515_v3 = vpop.f32.mrf.mxu3  ;;  %v5731_v25 = vld [vmem:[#allocation9_spill] sm:$0xff]  ;;  %v1055_v27 = vsel %vm397_vm0, %v5732_v54, %v1011_v19 }
  0xf7   :  { %v1052_v41 = vsel %vm397_vm0, %v5731_v25, %v1009_v58  ;;  %v1043_v2 = vpop.permute.xlu2 %1042  ;;  %v5738_v58 = vld [vmem:[#allocation26_spill] sm:$0xff] }
  0xf8   :  { %v1072_v6 = vsel %vm419_vm1, %v1052_v41, %v1023_v23 }
  0xfc   :  { %v4541_v31 = vpop.f32.mrf.mxu1 }
  0xfd   :  { %873 = vmatmul.bf16.gmra.mxu1 %v832_v38  ;;  %v1037_v57 = vpop.permute.xlu1 %1036 }
  0xfe   :  { %v1025_v22 = vpop.permute.xlu0 %1024  ;;  %v1086_v42 = vsel %vm434_vm2, %v1072_v6, %v1037_v57  ;;  %v4531_v8 = vpop.f32.mrf.mxu3 }
  0xff   :  { %v1074_v45 = vsel %vm419_vm1, %v1055_v27, %v1025_v22  ;;  %v1107_v44 = vunpack.c.l.b16 %v1086_v42  ;;  %2991 = vmatmul.msk.bf16.gmra.mxu3 %vm397_vm0, %v4535_v47  ;;  %v1031_v62 = vpop.permute.xlu2 %1030 }
 0x100   :  { %v1088_v34 = vsel %vm434_vm2, %v1074_v45, %v1039_v12 }
 0x101   :  { %v1108_v24 = vunpack.c.l.b16 %v1088_v34 }
 0x103   :  { %v1115_v37 = vpack.c.b16 %v1108_v24, %v1107_v44 }
 0x104   :  { %v4553_v61 = vpop.f32.mrf.mxu1 }
 0x105   :  { %v1015_v56 = vpop.permute.xlu1 %1014 }
 0x106   :  { %929 = vmatmul.bf16.gmra.mxu0 %v832_v38  ;;  %2988 = vmatmul.msk.bf16.gmra.mxu2 %vm397_vm0, %v4390_v35  ;;  %v1013_v21 = vpop.permute.xlu0 %1012  ;;  %v4543_v17 = vpop.f32.mrf.mxu3  ;;  %v1061_v53 = vsel %vm397_vm0, %v5736_v32, %v1015_v56 }
 0x107   :  { %v1058_v30 = vsel %vm397_vm0, %v5735_v51, %v1013_v21  ;;  %v1047_v1 = vpop.permute.xlu2 %1046 }
 0x108   :  { %v1076_v0 = vsel %vm419_vm1, %v1058_v30, %v1027_v59 }
 0x10c   :  { %v4567_v18 = vpop.f32.mrf.mxu1 }
 0x10d   :  { %1147 = vmatmul.bf16.vlgmr.msra.gmra.mxu1 %v1115_v37  ;;  %v1041_v35 = vpop.permute.xlu1 %1040 }
 0x10e   :  { %v1029_v23 = vpop.permute.xlu0 %1028  ;;  %v1090_v55 = vsel %vm434_vm2, %v1076_v0, %v1041_v35  ;;  %v4555_v43 = vpop.f32.mrf.mxu3 }
 0x10f   :  { %v1078_v48 = vsel %vm419_vm1, %v1061_v53, %v1029_v23  ;;  %v1109_v9 = vunpack.c.l.b16 %v1090_v55  ;;  %2992 = vmatmul.msk.bf16.gmra.mxu3 %vm397_vm0, %v4517_v15  ;;  %v1049_v11 = vpop.permute.xlu2 %1048  ;;  %v5741_v55 = vld [vmem:[#allocation20_spill] sm:$0xff] }
 0x110   :  { %v1092_v49 = vsel %vm434_vm2, %v1078_v48, %v1043_v2 }
 0x111   :  { %v1110_v20 = vunpack.c.l.b16 %v1092_v49 }
 0x113   :  { %v610_v26 = vpop.f32.mrf.mxu0  ;;  %v1117_v13 = vpack.c.b16 %v1110_v20, %v1109_v9 }
 0x114   :  { %v4558_v16 = vadd.f32 %v4478_v14, %v610_v26  ;;  %v655_v22 = vpop.f32.mrf.mxu1  ;;  %v5742_v26 = vld [vmem:[#allocation27_spill] sm:$0xff] }
 0x115   :  { %v1019_v10 = vpop.permute.xlu1 %1018  ;;  %v4610_v20 = vpack.c.b16 %v5742_v26, %v5741_v55  ;;  %v3055_v26 = vld [vmem:[#allocation4 + $0x60] sm:$0xf] }
 0x116   :  { %1203 = vmatmul.bf16.vlgmr.msra.gmra.mxu0 %v1115_v37  ;;  %2993 = vmatmul.msk.bf16.vlgmr.msra.gmra.mxu2 %vm397_vm0, %v5726_v33  ;;  %v1017_v7 = vpop.permute.xlu0 %1016  ;;  %v4571_v60 = vpop.f32.mrf.mxu3  ;;  %v1067_v19 = vsel %vm397_vm0, %v5738_v58, %v1019_v10  ;;  %v5740_v37 = vld [vmem:[#allocation33_spill] sm:$0xff] }
 0x117   :  { %v1064_v33 = vsel %vm397_vm0, %v5737_v29, %v1017_v7  ;;  %v1266_v21 = vpop.permute.xlu2 %1265  ;;  %v3679_v29 = vld [vmem:[%s5601_s0 + $0x64] sm:$0xf] }
 0x118   :  { %v1080_v59 = vsel %vm419_vm1, %v1064_v33, %v1031_v62 }
 0x119   :  { %v666_v12 = vpop.f32.mrf.mxu2 }
 0x11a   :  { %v4565_v63 = vadd.f32 %v4480_v39, %v666_v12 }
 0x11b   :  { %v4569_v14 = vpop.f32.mrf.mxu0 }
 0x11d   :  { %1152 = vmatmul.bf16.gmra.mxu1 %v1117_v13  ;;  %v1045_v38 = vpop.permute.xlu1 %1044 }
 0x11e   :  { %v1033_v50 = vpop.permute.xlu0 %1032  ;;  %v1094_v27 = vsel %vm434_vm2, %v1080_v59, %v1045_v38  ;;  %v711_v6 = vpop.f32.mrf.mxu3 }
 0x11f   :  { %v1082_v39 = vsel %vm419_vm1, %v1067_v19, %v1033_v50  ;;  %v1111_v42 = vunpack.c.l.b16 %v1094_v27  ;;  %v1282_v49 = vpop.permute.xlu2 %1281 }
 0x120   :  { %v1096_v54 = vsel %vm434_vm2, %v1082_v39, %v1047_v1 }
 0x121   :  { %v668_v25 = vpop.f32.mrf.mxu2  ;;  %v1112_v34 = vunpack.c.l.b16 %v1096_v54 }
 0x122   :  { %v4580_v41 = vadd.f32 %v4498_v5, %v668_v25  ;;  %v5739_v5 = vld [vmem:[#allocation11_spill] sm:$0xff] }
 0x123   :  { %v615_v57 = vpop.f32.mrf.mxu0  ;;  %2997 = vmatmul.msk.bf16.vlgmr.msrb.gmra.mxu3 %vm397_vm0, %v5739_v5  ;;  %v1119_v40 = vpack.c.b16 %v1112_v34, %v1111_v42  ;;  %v5743_v34 = vld [vmem:[#allocation31_spill] sm:$0xff]  ;;  %v5744_v42 = vld [vmem:[#allocation37_spill] sm:$0xff] }
 0x124   :  { %v4585_v45 = vadd.f32 %v4513_v36, %v615_v57 }
 0x125   :  { %v1035_v24 = vpop.permute.xlu1 %1034 }
 0x126   :  { %1208 = vmatmul.bf16.gmra.mxu0 %v1117_v13  ;;  %2994 = vmatmul.msk.bf16.gmra.mxu2 %vm397_vm0, %v4503_v52  ;;  %v1021_v2 = vpop.permute.xlu0 %1020  ;;  %v887_v36 = vpop.f32.mrf.mxu3  ;;  %v3678_v13 = vld [vmem:[%s5601_s0 + $0x60] sm:$0xf] }
 0x127   :  { %v1070_v51 = vsel %vm397_vm0, %v5740_v37, %v1021_v2  ;;  %v1270_v50 = vpop.permute.xlu2 %1269  ;;  %v4645_v2 = vpack.c.b16 %v5744_v42, %v5743_v34 }
 0x128   :  { %v1084_v32 = vsel %vm419_vm1, %v1070_v51, %v1035_v24 }
 0x129   :  { %v671_v44 = vpop.f32.mrf.mxu2  ;;  %v1098_v23 = vsel %vm434_vm2, %v1084_v32, %v1049_v11  ;;  %v3063_v32 = vld [vmem:[#allocation4 + $0x70] sm:$0xf] }
 0x12a   :  { %v4592_v28 = vadd.f32 %v4515_v3, %v671_v44  ;;  %v1113_v48 = vunpack.c.l.b16 %v1098_v23 }
 0x12b   :  { %v4594_v56 = vpop.f32.mrf.mxu0 }
 0x12c   :  { %v1121_v10 = vpack.c.b16 %v1113_v48, %v1113_v48 }
 0x12d   :  { %1157 = vmatmul.bf16.gmra.mxu1 %v1119_v40  ;;  %v1254_v52 = vpop.permute.xlu1 %1253 }
 0x12e   :  { %v1252_v30 = vpop.permute.xlu0 %1251  ;;  %v4603_v35 = vpop.f32.mrf.mxu3  ;;  %v1298_v33 = vsel %vm397_vm0, %v3679_v29, %v1254_v52 }
 0x131   :  { %v673_v53 = vpop.f32.mrf.mxu2 }
 0x132   :  { %v4600_v62 = vadd.f32 %v4531_v8, %v673_v53  ;;  %v3552_v53 = vld [vmem:[#allocation4 + $0x74] sm:$0xf0] }
 0x133   :  { %v620_v3 = vpop.f32.mrf.mxu0  ;;  %2998 = vmatmul.msk.bf16.gmra.mxu3 %vm397_vm0, %v4610_v20  ;;  %v4666_v48 = vor.u32 %v3552_v53, %v3063_v32 }
 0x134   :  { %v4606_v0 = vadd.f32 %v4541_v31, %v620_v3 }
 0x135   :  { %v1280_v9 = vpop.permute.xlu1 %1279  ;;  %1990 = vmatpush.bf16.msra.mxu1 %v4666_v48 }
 0x136   :  { %1213 = vmatmul.bf16.gmra.mxu0 %v1119_v40  ;;  %2995 = vmatmul.msk.bf16.gmra.mxu2 %vm397_vm0, %v4535_v47  ;;  %v1268_v8 = vpop.permute.xlu0 %1267  ;;  %v4621_v12 = vpop.f32.mrf.mxu3  ;;  %v1295_v47 = vsel %vm397_vm0, %v3678_v13, %v1252_v30 }
 0x137   :  { %v1317_v19 = vsel %vm419_vm1, %v1298_v33, %v1268_v8  ;;  %v1286_v40 = vpop.permute.xlu2 %1285  ;;  %v3550_v8 = vld [vmem:[#allocation4 + $0x64] sm:$0xf0]  ;;  %v111_v33 = vld [vmem:[%s5601_s0 + $0x7c] sm:$0xf] }
 0x138   :  { %v1331_v11 = vsel %vm434_vm2, %v1317_v19, %v1282_v49  ;;  %v3047_v19 = vld [vmem:[#allocation4 + $0x50] sm:$0xf] }
 0x139   :  { %v676_v7 = vpop.f32.mrf.mxu2  ;;  %v1351_v57 = vunpack.c.l.b16 %v1331_v11  ;;  %v3191_v11 = vld [vmem:[#allocation4 + $0x170] sm:$0xf] }
 0x13a   :  { %v4617_v31 = vadd.f32 %v4543_v17, %v676_v7  ;;  %v1315_v17 = vsel %vm419_vm1, %v1295_v47, %v1266_v21 }
 0x13b   :  { %v4619_v1 = vpop.f32.mrf.mxu0  ;;  %v1329_v25 = vsel %vm434_vm2, %v1315_v17, %v1280_v9  ;;  %v4673_v9 = vor.u32 %v3550_v8, %v3055_v26  ;;  %v3682_v8 = vld [vmem:[%s5601_s0 + $0x70] sm:$0xf] }
 0x13c   :  { %v1350_v6 = vunpack.c.l.b16 %v1329_v25  ;;  %v3584_v25 = vld [vmem:[#allocation4 + $0x174] sm:$0xf0] }
 0x13d   :  { %1162 = vmatmul.bf16.gmra.mxu1 %v1121_v10  ;;  %v1258_v38 = vpop.permute.xlu1 %1257 }
 0x13e   :  { %v1256_v58 = vpop.permute.xlu0 %1255  ;;  %v4638_v27 = vpop.f32.mrf.mxu3  ;;  %v1358_v24 = vpack.c.b16 %v1351_v57, %v1350_v6  ;;  %1991 = vmatpush.bf16.msra.mxu1 %v4673_v9 }
 0x13f   :  { %v1274_v6 = vpop.permute.xlu2 %1273 }
 0x141   :  { %v678_v59 = vpop.f32.mrf.mxu2 }
 0x142   :  { %v4634_v39 = vadd.f32 %v4555_v43, %v678_v59 }
 0x143   :  { %v625_v54 = vpop.f32.mrf.mxu0  ;;  %2999 = vmatmul.msk.bf16.gmra.mxu3 %vm397_vm0, %v4645_v2 }
 0x144   :  { %v4641_v22 = vadd.f32 %v4567_v18, %v625_v54 }
 0x145   :  { %v1284_v37 = vpop.permute.xlu1 %1283 }
 0x146   :  { %1218 = vmatmul.bf16.gmra.mxu0 %v1121_v10  ;;  %2996 = vmatmul.msk.bf16.gmra.mxu2 %vm397_vm0, %v4517_v15  ;;  %v1272_v43 = vpop.permute.xlu0 %1271  ;;  %v4656_v52 = vpop.f32.mrf.mxu3  ;;  %v3680_v15 = vld [vmem:[%s5601_s0 + $0x68] sm:$0xf] }
 0x147   :  { %v1301_v23 = vsel %vm397_vm0, %v3680_v15, %v1256_v58 }
 0x148   :  { %v1319_v49 = vsel %vm419_vm1, %v1301_v23, %v1270_v50  ;;  %v3548_v50 = vld [vmem:[#allocation4 + $0x54] sm:$0xf0] }
 0x149   :  { %v681_v44 = vpop.f32.mrf.mxu2  ;;  %v1333_v47 = vsel %vm434_vm2, %v1319_v49, %v1284_v37  ;;  %v4685_v59 = vor.u32 %v3548_v50, %v3047_v19  ;;  %v3183_v37 = vld [vmem:[#allocation4 + $0x160] sm:$0xf]  ;;  %v3031_v49 = vld [vmem:[#allocation4 + $0x30] sm:$0xf]  ;;  %v3580_v19 = vld [vmem:[#allocation4 + $0x154] sm:$0xf0] }
 0x14a   :  { %v4652_v18 = vadd.f32 %v4571_v60, %v681_v44  ;;  %v859_v21 = vpop.f32.mrf.mxu1  ;;  %v3681_v60 = vld [vmem:[%s5601_s0 + $0x6c] sm:$0xf]  ;;  %v1352_v57 = vunpack.c.l.b16 %v1333_v47  ;;  %v3039_v44 = vld [vmem:[#allocation4 + $0x40] sm:$0xf] }
 0x14b   :  { %v4654_v51 = vadd.f32 %v887_v36, %v859_v21  ;;  %v627_v30 = vpop.f32.mrf.mxu0  ;;  %v1304_v3 = vsel %vm397_vm0, %v3681_v60, %v1258_v38  ;;  %v1357_v38 = vunpack.c.l.b16 %v111_v33  ;;  %1992 = vmatpush.bf16.msra.mxu1 %v4685_v59 }
 0x14c   :  { %v1321_v55 = vsel %vm419_vm1, %v1304_v3, %v1272_v43  ;;  %v4689_v43 = vor.u32 %v3584_v25, %v3191_v11  ;;  %v3582_v30 = vld [vmem:[#allocation4 + $0x164] sm:$0xf0] }
 0x14d   :  { %v962_v36 = vmax.f32 %v4558_v16, %v4654_v51  ;;  %1390 = vmatmul.bf16.vlgmr.msrb.gmra.mxu1 %v1358_v24  ;;  %v1335_v13 = vsel %vm434_vm2, %v1321_v55, %v1286_v40  ;;  %v1262_v34 = vpop.permute.xlu1 %1261  ;;  %v4687_v42 = vpack.c.b16 %v1357_v38, %v1357_v38  ;;  %v3546_v40 = vld [vmem:[#allocation4 + $0x44] sm:$0xf0]  ;;  %v4699_v15 = vor.u32 %v3582_v30, %v3183_v37  ;;  %v3544_v55 = vld [vmem:[#allocation4 + $0x34] sm:$0xf0]  ;;  %v4729_v38 = vld [vmem:[%s5603_s2] ss:$0 sm:$0xff] }
 0x14e   :  { %v1260_v29 = vpop.permute.xlu0 %1259  ;;  %v4683_v17 = vpop.f32.mrf.mxu3  ;;  %v1353_v54 = vunpack.c.l.b16 %v1335_v13  ;;  %2036 = vmatpush.bf16.msra.mxu0 %v4689_v43  ;;  %v4697_v21 = vor.u32 %v3546_v40, %v3039_v44  ;;  %v4717_v33 = vor.u32 %v3544_v55, %v3031_v49  ;;  %v3542_v44 = vld [vmem:[#allocation4 + $0x24] sm:$0xf0]  ;;  %v3167_v51 = vld [vmem:[#allocation4 + $0x140] sm:$0xf] }
 0x150   :  { %v1360_v53 = vpack.c.b16 %v1353_v54, %v1352_v57  ;;  %1993 = vmatpush.bf16.msra.mxu1 %v4697_v21  ;;  %v1290_v54 = vpop.permute.xlu2 %1289 }
 0x151   :  { %v683_v7 = vpop.f32.mrf.mxu2 }
 0x152   :  { %v4675_v10 = vpop.f32.mrf.mxu1  ;;  %v1307_v7 = vsel %vm397_vm0, %v3682_v8, %v1260_v29  ;;  %2037 = vmatpush.bf16.msra.mxu0 %v4699_v15  ;;  %v3540_v8 = vld [vmem:[#allocation4 + $0x14] sm:$0xf0] }
 0x153   :  { %v915_v58 = vpop.f32.mrf.mxu0  ;;  %3000 = vmatmul.msk.bf16.gmra.mxu3 %vm397_vm0, %v4687_v42  ;;  %v1323_v11 = vsel %vm419_vm1, %v1307_v7, %v1274_v6  ;;  %v890_v40 = vadd.f32 %v4603_v35, %v4675_v10  ;;  %v641_v6 = vadd.f32 %v4495_v4, %v4569_v14 }
 0x154   :  { %1994 = vmatpush.bf16.msra.mxu1 %v4717_v33 }
 0x155   :  { %v1288_v57 = vpop.permute.xlu1 %1287  ;;  %v964_v7 = vmax.f32 %v641_v6, %v890_v40 }
 0x156   :  { %1446 = vmatmul.bf16.vlgmr.msrb.gmra.mxu0 %v1358_v24  ;;  %3001 = vmatmul.msk.bf16.vlgmr.msrb.gmra.mxu2 %vm397_vm0, %v5739_v5  ;;  %v4704_v3 = vpop.f32.mrf.mxu3  ;;  %v1276_v47 = vpop.permute.xlu0 %1275  ;;  %v1337_v35 = vsel %vm434_vm2, %v1323_v11, %v1288_v57  ;;  %v3007_v11 = vld [vmem:[#allocation4] sm:$0xf] }
 0x157   :  { %v3151_v57 = vld [vmem:[#allocation4 + $0x120] sm:$0xf] }
 0x159   :  { %v943_v32 = vpop.f32.mrf.mxu2 }
 0x15a   :  { %v944_v24 = vadd.f32 %v943_v32, %v915_v58  ;;  %v864_v23 = vpop.f32.mrf.mxu1  ;;  %v3175_v58 = vld [vmem:[#allocation4 + $0x150] sm:$0xf] }
 0x15b   :  { %v4702_v5 = vadd.f32 %v4621_v12, %v864_v23  ;;  %v917_v60 = vpop.f32.mrf.mxu0  ;;  %v3683_v12 = vld [vmem:[%s5601_s0 + $0x74] sm:$0xf]  ;;  %v4721_v50 = vor.u32 %v3580_v19, %v3175_v58 }
 0x15c   :  { %v963_v26 = vmax.f32 %v4565_v63, %v944_v24  ;;  %v1310_v13 = vsel %vm397_vm0, %v3683_v12, %v1262_v34  ;;  %v3023_v34 = vld [vmem:[#allocation4 + $0x20] sm:$0xf]  ;;  %v3159_v12 = vld [vmem:[#allocation4 + $0x130] sm:$0xf] }
 0x15d   :  { %v966_v63 = vmax.f32 %v4585_v45, %v4702_v5  ;;  %1395 = vmatmul.bf16.gmra.mxu1 %v1360_v53  ;;  %v1325_v25 = vsel %vm419_vm1, %v1310_v13, %v1276_v47  ;;  %2038 = vmatpush.bf16.msra.mxu0 %v4721_v50  ;;  %v4737_v16 = vor.u32 %v3542_v44, %v3023_v34  ;;  %v1354_v47 = vunpack.c.l.b16 %v1337_v35  ;;  %v3574_v34 = vld [vmem:[#allocation4 + $0x124] sm:$0xf0] }
 0x15e   :  { %v976_v29 = vmax.f32 %v962_v36, %v963_v26  ;;  %v3578_v36 = vld [vmem:[#allocation4 + $0x144] sm:$0xf0]  ;;  %v1339_v49 = vsel %vm434_vm2, %v1325_v25, %v1290_v54  ;;  %v904_v55 = vpop.f32.mrf.mxu3  ;;  %v3015_v26 = vld [vmem:[#allocation4 + $0x10] sm:$0xf]  ;;  %v646_v45 = vadd.f32 %v4529_v46, %v4594_v56 }
 0x15f   :  { %v4741_v30 = vor.u32 %v3578_v36, %v3167_v51  ;;  %1995 = vmatpush.bf16.msra.mxu1 %v4737_v16  ;;  %v4749_v14 = vor.u32 %v3540_v8, %v3015_v26  ;;  %v1355_v13 = vunpack.c.l.b16 %v1339_v49  ;;  %v1264_v51 = vpop.permute.xlu0 %1263  ;;  %v4760_v36 = vor.u32 %v3574_v34, %v3151_v57  ;;  %v3684_v26 = vld [vmem:[%s5601_s0 + $0x78] sm:$0xf] }
 0x160   :  { %v987_v32 = vadd.f32 %v4729_v38, %v976_v29  ;;  %v1313_v8 = vsel %vm397_vm0, %v3684_v26, %v1264_v51 }
 0x161   :  { %v945_v37 = vpop.f32.mrf.mxu2  ;;  %2039 = vmatpush.bf16.msra.mxu0 %v4741_v30  ;;  %v1362_v40 = vpack.c.b16 %v1355_v13, %v1354_v47 }
 0x162   :  { %v946_v24 = vadd.f32 %v945_v37, %v917_v60  ;;  %v866_v23 = vpop.f32.mrf.mxu1  ;;  %v3576_v60 = vld [vmem:[#allocation4 + $0x134] sm:$0xf0]  ;;  %v994_v19 = vmax.f32 %v987_v32, 0.0 }
 0x163   :  { %v920_v10 = vpop.f32.mrf.mxu0  ;;  %v4751_v58 = vor.u32 %v3576_v60, %v3159_v12  ;;  %1996 = vmatpush.bf16.msra.mxu1 %v4749_v14 }
 0x164   :  { %v965_v4 = vmax.f32 %v4580_v41, %v946_v24  ;;  %v3538_v41 = vld [vmem:[#allocation4 + $0x4] sm:$0xf0] }
 0x165   :  { %2040 = vmatpush.bf16.msra.mxu0 %v4751_v58  ;;  %v4758_v54 = vor.u32 %v3538_v41, %v3007_v11  ;;  %v895_v11 = vadd.f32 %v4638_v27, %v866_v23 }
 0x166   :  { %v977_v29 = vmax.f32 %v964_v7, %v965_v4  ;;  %1451 = vmatmul.bf16.gmra.mxu0 %v1360_v53  ;;  %3002 = vmatmul.msk.bf16.gmra.mxu2 %vm397_vm0, %v4610_v20  ;;  %v1001_v53 = vpack.c.bf16 %v994_v19, %v994_v19  ;;  %v4765_v49 = vpop.f32.mrf.mxu3  ;;  %v1278_v7 = vpop.permute.xlu1 %1277 }
 0x167   :  { %1997 = vmatpush.bf16.msra.mxu1 %v4758_v54  ;;  %v1327_v47 = vsel %vm419_vm1, %v1313_v8, %v1278_v7  ;;  %v1292_v19 = vpop.permute.xlu2 %1291  ;;  %v968_v27 = vmax.f32 %v646_v45, %v895_v11 }
 0x168   :  { %v988_v25 = vadd.f32 %v4729_v38, %v977_v29  ;;  %v1541_v60 = vunpack.c.l.b16 %v1001_v53  ;;  %v1341_v51 = vsel %vm434_vm2, %v1327_v47, %v1292_v19 }
 0x169   :  { %v948_v44 = vpop.f32.mrf.mxu2  ;;  %2041 = vmatpush.bf16.msra.mxu0 %v4760_v36 }
 0x16a   :  { %v995_v6 = vmax.f32 %v988_v25, 0.0  ;;  %v949_v20 = vadd.f32 %v948_v44, %v920_v10  ;;  %v869_v37 = vpop.f32.mrf.mxu1  ;;  %v3143_v10 = vld [vmem:[#allocation4 + $0x110] sm:$0xf]  ;;  %v3570_v25 = vld [vmem:[#allocation4 + $0x104] sm:$0xf0] }
 0x16b   :  { %v4763_v32 = vadd.f32 %v4656_v52, %v869_v37  ;;  %v922_v24 = vpop.f32.mrf.mxu0  ;;  %v3572_v52 = vld [vmem:[#allocation4 + $0x114] sm:$0xf0]  ;;  %v1356_v37 = vunpack.c.l.b16 %v1341_v51 }
 0x16c   :  { %v1002_v35 = vpack.c.bf16 %v995_v6, %v995_v6  ;;  %v967_v55 = vmax.f32 %v4592_v28, %v949_v20  ;;  %v4776_v12 = vor.u32 %v3572_v52, %v3143_v10 }
 0x16d   :  { %v970_v4 = vmax.f32 %v4606_v0, %v4763_v32  ;;  %1400 = vmatmul.bf16.gmra.mxu1 %v1362_v40  ;;  %v3135_v0 = vld [vmem:[#allocation4 + $0x100] sm:$0xf] }
 0x16e   :  { %v1542_v13 = vunpack.c.l.b16 %v1002_v35  ;;  %v978_v28 = vmax.f32 %v966_v63, %v967_v55  ;;  %2042 = vmatpush.bf16.msra.mxu0 %v4776_v12  ;;  %v4787_v34 = vor.u32 %v3570_v25, %v3135_v0  ;;  %v4792_v6 = vpop.f32.mrf.mxu3  ;;  %v3614_v0 = vld [vmem:[#allocation4 + $0x264] sm:$0xf0] }
 0x170   :  { %v4782_v29 = vpack.c.b16 %v1542_v13, %v1541_v60  ;;  %v989_v41 = vadd.f32 %v4729_v38, %v978_v28  ;;  %v3319_v60 = vld [vmem:[#allocation4 + $0x270] sm:$0xf]  ;;  %v3616_v28 = vld [vmem:[#allocation4 + $0x274] sm:$0xf0] }
 0x171   :  { %v950_v57 = vpop.f32.mrf.mxu2 }
 0x172   :  { %5745 = vst [vmem:[#allocation23_spill] sm:$0xff] %v4782_v29  ;;  %v996_v5 = vmax.f32 %v989_v41, 0.0  ;;  %v951_v63 = vadd.f32 %v950_v57, %v922_v24  ;;  %v871_v44 = vpop.f32.mrf.mxu1  ;;  %2043 = vmatpush.bf16.msra.mxu0 %v4787_v34  ;;  %v1364_v24 = vpack.c.b16 %v1356_v37, %v1356_v37  ;;  %v3311_v41 = vld [vmem:[#allocation4 + $0x260] sm:$0xf] }
 0x173   :  { %v925_v53 = vpop.f32.mrf.mxu0  ;;  %v900_v25 = vadd.f32 %v4683_v17, %v871_v44  ;;  %v4813_v45 = vor.u32 %v3614_v0, %v3311_v41  ;;  %v3606_v0 = vld [vmem:[#allocation4 + $0x224] sm:$0xf0] }
 0x174   :  { %v1003_v23 = vpack.c.bf16 %v996_v5, %v996_v5  ;;  %v969_v20 = vmax.f32 %v4600_v62, %v951_v63  ;;  %v651_v5 = vadd.f32 %v4553_v61, %v4619_v1  ;;  %v3295_v61 = vld [vmem:[#allocation4 + $0x240] sm:$0xf]  ;;  %v3610_v1 = vld [vmem:[#allocation4 + $0x244] sm:$0xf0] }
 0x176   :  { %v1543_v32 = vunpack.c.l.b16 %v1003_v23  ;;  %v979_v35 = vmax.f32 %v968_v27, %v969_v20  ;;  %1456 = vmatmul.bf16.gmra.mxu0 %v1362_v40  ;;  %3003 = vmatmul.msk.bf16.gmra.mxu2 %vm397_vm0, %v4645_v2  ;;  %v4802_v52 = vpop.f32.mrf.mxu3  ;;  %v4805_v2 = vor.u32 %v3616_v28, %v3319_v60  ;;  %v3303_v27 = vld [vmem:[#allocation4 + $0x250] sm:$0xf]  ;;  %v3612_v23 = vld [vmem:[#allocation4 + $0x254] sm:$0xf0]  ;;  %v972_v20 = vmax.f32 %v651_v5, %v900_v25 }
 0x177   :  { %v4821_v37 = vor.u32 %v3612_v23, %v3303_v27  ;;  %v3287_v60 = vld [vmem:[#allocation4 + $0x230] sm:$0xf]  ;;  %v3608_v28 = vld [vmem:[#allocation4 + $0x234] sm:$0xf0] }
 0x178   :  { %v4798_v46 = vpack.c.b16 %v1543_v32, %v1542_v13  ;;  %v990_v56 = vadd.f32 %v4729_v38, %v979_v35  ;;  %2082 = vmatpush.bf16.msrb.mxu1 %v4805_v2  ;;  %v3604_v27 = vld [vmem:[#allocation4 + $0x214] sm:$0xf0] }
 0x179   :  { %v953_v55 = vpop.f32.mrf.mxu2 }
 0x17a   :  { %5746 = vst [vmem:[#allocation34_spill] sm:$0xff] %v4798_v46  ;;  %v997_v26 = vmax.f32 %v990_v56, 0.0  ;;  %v954_v8 = vadd.f32 %v953_v55, %v925_v53  ;;  %v874_v7 = vpop.f32.mrf.mxu1 }
 0x17b   :  { %v903_v62 = vadd.f32 %v4704_v3, %v874_v7  ;;  %v927_v10 = vpop.f32.mrf.mxu0 }
 0x17c   :  { %v1004_v40 = vpack.c.bf16 %v997_v26, %v997_v26  ;;  %v971_v47 = vmax.f32 %v4617_v31, %v954_v8  ;;  %2083 = vmatpush.bf16.msrb.mxu1 %v4813_v45  ;;  %v4832_v26 = vor.u32 %v3610_v1, %v3295_v61 }
 0x17d   :  { %v974_v13 = vmax.f32 %v4641_v22, %v903_v62  ;;  %1405 = vmatmul.bf16.gmra.mxu1 %v1364_v24 }
 0x17e   :  { %v1544_v19 = vunpack.c.l.b16 %v1004_v40  ;;  %v980_v11 = vmax.f32 %v970_v4, %v971_v47  ;;  %v4818_v53 = vpop.f32.mrf.mxu3 }
 0x180   :  { %v4809_v3 = vpack.c.b16 %v1544_v19, %v1543_v32  ;;  %v991_v57 = vadd.f32 %v4729_v38, %v980_v11  ;;  %2084 = vmatpush.bf16.msrb.mxu1 %v4821_v37 }
 0x181   :  { %v955_v31 = vpop.f32.mrf.mxu2 }
 0x182   :  { %5747 = vst [vmem:[#allocation18_spill] sm:$0xff] %v4809_v3  ;;  %v998_v22 = vmax.f32 %v991_v57, 0.0  ;;  %v956_v63 = vadd.f32 %v955_v31, %v927_v10  ;;  %v876_v51 = vpop.f32.mrf.mxu1 }
 0x183   :  { %v930_v4 = vpop.f32.mrf.mxu0  ;;  %v3271_v51 = vld [vmem:[#allocation4 + $0x210] sm:$0xf] }
 0x184   :  { %v1005_v17 = vpack.c.bf16 %v998_v22, %v998_v22  ;;  %v973_v44 = vmax.f32 %v4634_v39, %v956_v63  ;;  %2085 = vmatpush.bf16.msrb.mxu1 %v4832_v26  ;;  %v3568_v63 = vld [vmem:[#allocation4 + $0xf4] sm:$0xf0]  ;;  %v4862_v23 = vor.u32 %v3604_v27, %v3271_v51 }
 0x185   :  { %v3564_v51 = vld [vmem:[#allocation4 + $0xd4] sm:$0xf0] }
 0x186   :  { %v4823_v32 = vunpack.c.l.b16 %v1005_v17  ;;  %v981_v35 = vmax.f32 %v972_v20, %v973_v44  ;;  %1461 = vmatmul.bf16.gmra.mxu0 %v1364_v24  ;;  %3004 = vmatmul.msk.bf16.gmra.mxu2 %vm397_vm0, %v4687_v42  ;;  %v4837_v42 = vpop.f32.mrf.mxu3  ;;  %5753 = vst [vmem:[#allocation29_spill] sm:$0xff] %v4862_v23  ;;  %v3263_v20 = vld [vmem:[#allocation4 + $0x200] sm:$0xf]  ;;  %v3602_v17 = vld [vmem:[#allocation4 + $0x204] sm:$0xf0] }
 0x187   :  { %v4867_v44 = vor.u32 %v3602_v17, %v3263_v20 }
 0x188   :  { %v992_v56 = vadd.f32 %v4729_v38, %v981_v35  ;;  %v4830_v55 = vpack.c.b16 %v4823_v32, %v1544_v19  ;;  %v4841_v19 = vor.u32 %v3608_v28, %v3287_v60  ;;  %v3119_v60 = vld [vmem:[#allocation4 + $0xe0] sm:$0xf]  ;;  %v3566_v28 = vld [vmem:[#allocation4 + $0xe4] sm:$0xf0] }
 0x189   :  { %v958_v39 = vpop.f32.mrf.mxu2  ;;  %5754 = vst [vmem:[#allocation22_spill] sm:$0xff] %v4867_v44 }
 0x18a   :  { %5748 = vst [vmem:[#allocation38_spill] sm:$0xff] %v4830_v55  ;;  %v999_v8 = vmax.f32 %v992_v56, 0.0  ;;  %v959_v7 = vadd.f32 %v958_v39, %v930_v4  ;;  %v1148_v62 = vpop.f32.mrf.mxu1  ;;  %2086 = vmatpush.bf16.msrb.mxu1 %v4841_v19 }
 0x18b   :  { %v4835_v24 = vadd.f32 %v4765_v49, %v1148_v62  ;;  %v932_v10 = vpop.f32.mrf.mxu0  ;;  %5749 = vst [vmem:[#allocation14_spill] sm:$0xff] %v4841_v19  ;;  %v3279_v49 = vld [vmem:[#allocation4 + $0x220] sm:$0xf]  ;;  %v3600_v62 = vld [vmem:[#allocation4 + $0x1f4] sm:$0xf0] }
 0x18c   :  { %v1006_v40 = vpack.c.bf16 %v999_v8, %v999_v8  ;;  %v975_v47 = vmax.f32 %v4652_v18, %v959_v7  ;;  %v4849_v25 = vor.u32 %v3606_v0, %v3279_v49  ;;  %v3255_v7 = vld [vmem:[#allocation4 + $0x1f0] sm:$0xf]  ;;  %v3247_v49 = vld [vmem:[#allocation4 + $0x1e0] sm:$0xf]  ;;  %v3598_v0 = vld [vmem:[#allocation4 + $0x1e4] sm:$0xf0] }
 0x18d   :  { %1998 = vmatmul.bf16.vlgmr.msra.gmra.mxu1 %v4782_v29  ;;  %v4879_v10 = vor.u32 %v3600_v62, %v3255_v7  ;;  %v4906_v62 = vpack.c.b16 %v4823_v32, %v4823_v32  ;;  %v3113_v29 = vld [vmem:[#allocation4 + $0xd8] sm:$0xf0]  ;;  %v3592_v19 = vld [vmem:[#allocation4 + $0x1b4] sm:$0xf0] }
 0x18e   :  { %v4844_v11 = vunpack.c.l.b16 %v1006_v40  ;;  %v4846_v41 = vmax.f32 %v974_v13, %v975_v47  ;;  %5750 = vst [vmem:[#allocation39_spill] sm:$0xff] %v4849_v25  ;;  %v4857_v22 = vpop.f32.mrf.mxu3  ;;  %2087 = vmatpush.bf16.msrb.mxu1 %v4849_v25  ;;  %v3127_v13 = vld [vmem:[#allocation4 + $0xf0] sm:$0xf]  ;;  %v4883_v40 = vor.u32 %v3566_v28, %v3119_v60 }
 0x18f   :  { %v4860_v4 = vor.u32 %v3568_v63, %v3127_v13  ;;  %5755 = vst [vmem:[#allocation21_spill] sm:$0xff] %v4879_v10  ;;  %2059 = vmatpush.bf16.msra.mxu2 %v4879_v10  ;;  %v4890_v13 = vor.u32 %v3598_v0, %v3247_v49  ;;  %v3111_v63 = vld [vmem:[#allocation4 + $0xd0] sm:$0xf]  ;;  %v3596_v49 = vld [vmem:[#allocation4 + $0x1d4] sm:$0xf0] }
 0x190   :  { %v4853_v57 = vpack.c.b16 %v4844_v11, %v4823_v32  ;;  %5756 = vst [vmem:[#allocation30_spill] sm:$0xff] %v4883_v40  ;;  %v4892_v27 = vor.u32 %v3564_v51, %v3111_v63  ;;  %v3239_v28 = vld [vmem:[#allocation4 + $0x1d0] sm:$0xf]  ;;  %v3103_v0 = vld [vmem:[#allocation4 + $0xc0] sm:$0xf] }
 0x191   :  { %v960_v31 = vpop.f32.mrf.mxu2  ;;  %5752 = vst [vmem:[#allocation19_spill] sm:$0xff] %v4860_v4  ;;  %2013 = vmatpush.bf16.msra.mxu3 %v4860_v4  ;;  %v3129_v51 = vld [vmem:[#allocation4 + $0xf8] sm:$0xf0]  ;;  %v3593_v4 = vld [vmem:[#allocation4 + $0x1c4] sm:$0xf] }
 0x192   :  { %5751 = vst [vmem:[#allocation13_spill] sm:$0xff] %v4853_v57  ;;  %v4855_v18 = vpop.f32.mrf.mxu1  ;;  %2088 = vmatpush.bf16.msrb.mxu1 %v4862_v23  ;;  %v3241_v23 = vld [vmem:[#allocation4 + $0x1d8] sm:$0xf0] }
 0x193   :  { %v1204_v5 = vpop.f32.mrf.mxu0  ;;  %5757 = vst [vmem:[#allocation15_spill] sm:$0xff] %v4890_v13  ;;  %2060 = vmatpush.bf16.msra.mxu2 %v4890_v13  ;;  %v3095_v13 = vld [vmem:[#allocation4 + $0xb0] sm:$0xf] }
 0x194   :  { %5758 = vst [vmem:[#allocation36_spill] sm:$0xff] %v4892_v27 }
 0x195   :  { %2014 = vmatpush.bf16.msra.mxu3 %v4883_v40  ;;  %5759 = vst [vmem:[#allocation32_spill] sm:$0xff] %v4906_v62 }
 0x196   :  { %2044 = vmatmul.bf16.vlgmr.msra.gmra.mxu0 %v4798_v46  ;;  %v4876_v8 = vpop.f32.mrf.mxu3  ;;  %2089 = vmatpush.bf16.msrb.mxu1 %v4867_v44 }
 0x199   :  { %v1232_v35 = vpop.f32.mrf.mxu2  ;;  %2015 = vmatpush.bf16.msra.mxu3 %v4892_v27 }
 0x19a   :  { %v4869_v61 = vadd.f32 %v1232_v35, %v1204_v5  ;;  %v1153_v1 = vpop.f32.mrf.mxu1 }
 0x19b   :  { %v4872_v56 = vadd.f32 %v4802_v52, %v1153_v1  ;;  %v4874_v39 = vpop.f32.mrf.mxu0 }
 0x19d   :  { %2003 = vmatmul.bf16.gmra.mxu1 %v4809_v3 }
 0x19e   :  { %v1193_v5 = vpop.f32.mrf.mxu3 }
 0x19f   :  { %v4911_v5 = vor.u32 %v3596_v49, %v3239_v28  ;;  %v4928_v28 = vpack.c.b16 %v4844_v11, %v4844_v11  ;;  %v3565_v49 = vld [vmem:[#allocation4 + $0xe4] sm:$0xf]  ;;  %v3563_v11 = vld [vmem:[#allocation4 + $0xd4] sm:$0xf] }
 0x1a0   :  { %v4940_v27 = vor.u32 %v3563_v11, %v3113_v29  ;;  %v3105_v29 = vld [vmem:[#allocation4 + $0xc8] sm:$0xf0]  ;;  %v3597_v11 = vld [vmem:[#allocation4 + $0x1e4] sm:$0xf] }
 0x1a1   :  { %v4886_v52 = vpop.f32.mrf.mxu2  ;;  %5760 = vst [vmem:[#allocation17_spill] sm:$0xff] %v4911_v5  ;;  %2061 = vmatpush.bf16.msra.mxu2 %v4911_v5  ;;  %v3594_v5 = vld [vmem:[#allocation4 + $0x1c4] sm:$0xf0] }
 0x1a2   :  { %v4888_v47 = vpop.f32.mrf.mxu1  ;;  %5762 = vst [vmem:[#allocation9_spill] sm:$0xff] %v4928_v28 }
 0x1a3   :  { %v1209_v31 = vpop.f32.mrf.mxu0  ;;  %5765 = vst [vmem:[#allocation35_spill] sm:$0xff] %v4940_v27 }
 0x1a6   :  { %2049 = vmatmul.bf16.gmra.mxu0 %v4830_v55  ;;  %v4908_v60 = vpop.f32.mrf.mxu3 }
 0x1a9   :  { %v1237_v20 = vpop.f32.mrf.mxu2 }
 0x1aa   :  { %v4897_v17 = vadd.f32 %v1237_v20, %v1209_v31  ;;  %v1158_v35 = vpop.f32.mrf.mxu1  ;;  %v3562_v31 = vld [vmem:[#allocation4 + $0xc4] sm:$0xf0] }
 0x1ab   :  { %v4900_v1 = vadd.f32 %v4837_v42, %v1158_v35  ;;  %v4902_v7 = vpop.f32.mrf.mxu0  ;;  %v4913_v63 = vor.u32 %v3562_v31, %v3103_v0  ;;  %v3567_v42 = vld [vmem:[#allocation4 + $0xf4] sm:$0xf]  ;;  %v3121_v0 = vld [vmem:[#allocation4 + $0xe8] sm:$0xf0]  ;;  %v3231_v31 = vld [vmem:[#allocation4 + $0x1c0] sm:$0xf] }
 0x1ac   :  { %v4919_v32 = vor.u32 %v3567_v42, %v3129_v51  ;;  %v4930_v10 = vor.u32 %v3565_v49, %v3121_v0  ;;  %v4933_v42 = vor.u32 %v3594_v5, %v3231_v31  ;;  %v3560_v51 = vld [vmem:[#allocation4 + $0xb4] sm:$0xf0]  ;;  %v3257_v49 = vld [vmem:[#allocation4 + $0x1f8] sm:$0xf0] }
 0x1ad   :  { %2008 = vmatmul.bf16.gmra.mxu1 %v4906_v62  ;;  %5761 = vst [vmem:[#allocation25_spill] sm:$0xff] %v4913_v63  ;;  %2016 = vmatpush.bf16.msra.mxu3 %v4913_v63  ;;  %v4935_v46 = vor.u32 %v3560_v51, %v3095_v13  ;;  %v3599_v63 = vld [vmem:[#allocation4 + $0x1f4] sm:$0xf] }
 0x1ae   :  { %v4923_v55 = vpop.f32.mrf.mxu3  ;;  %2128 = vmatpush.bf16.msrb.mxu0 %v4919_v32  ;;  %5763 = vst [vmem:[#allocation10_spill] sm:$0xff] %v4933_v42  ;;  %2062 = vmatpush.bf16.msra.mxu2 %v4933_v42  ;;  %v4944_v31 = vor.u32 %v3599_v63, %v3257_v49  ;;  %v3561_v42 = vld [vmem:[#allocation4 + $0xc4] sm:$0xf]  ;;  %v3097_v49 = vld [vmem:[#allocation4 + $0xb8] sm:$0xf0] }
 0x1af   :  { %5764 = vst [vmem:[#allocation28_spill] sm:$0xff] %v4935_v46 }
 0x1b0   :  { %5766 = vst [vmem:[#allocation12_spill] sm:$0xff] %v4944_v31  ;;  %2174 = vmatpush.bf16.msra.mxu1 %v4944_v31 }
 0x1b1   :  { %v4916_v20 = vpop.f32.mrf.mxu2  ;;  %2017 = vmatpush.bf16.msra.mxu3 %v4935_v46 }
 0x1b2   :  { %v4921_v35 = vpop.f32.mrf.mxu1  ;;  %2129 = vmatpush.bf16.msrb.mxu0 %v4930_v10 }
 0x1b3   :  { %v1214_v62 = vpop.f32.mrf.mxu0 }
 0x1b6   :  { %2054 = vmatmul.bf16.gmra.mxu0 %v4928_v28  ;;  %v4951_v28 = vpop.f32.mrf.mxu3 }
 0x1b7   :  { %2130 = vmatpush.bf16.msrb.mxu0 %v4940_v27  ;;  %v3556_v27 = vld [vmem:[#allocation4 + $0x94] sm:$0xf0] }
 0x1b9   :  { %v1242_v44 = vpop.f32.mrf.mxu2 }
 0x1ba   :  { %v4942_v0 = vadd.f32 %v1242_v44, %v1214_v62  ;;  %v1163_v5 = vpop.f32.mrf.mxu1  ;;  %v4956_v44 = vor.u32 %v3561_v42, %v3105_v29  ;;  %v3249_v62 = vld [vmem:[#allocation4 + $0x1e8] sm:$0xf0] }
 0x1bb   :  { %v4947_v13 = vadd.f32 %v4876_v8, %v1163_v5  ;;  %v4949_v51 = vpop.f32.mrf.mxu0  ;;  %v4958_v63 = vor.u32 %v3597_v11, %v3249_v62  ;;  %v3559_v8 = vld [vmem:[#allocation4 + $0xb4] sm:$0xf]  ;;  %v3087_v11 = vld [vmem:[#allocation4 + $0xa0] sm:$0xf]  ;;  %v3558_v62 = vld [vmem:[#allocation4 + $0xa4] sm:$0xf0] }
 0x1bc   :  { %5767 = vst [vmem:[#allocation16_spill] sm:$0xff] %v4956_v44  ;;  %2131 = vmatpush.bf16.msrb.mxu0 %v4956_v44  ;;  %v3595_v5 = vld [vmem:[#allocation4 + $0x1d4] sm:$0xf]  ;;  %v4964_v31 = vor.u32 %v3559_v8, %v3097_v49  ;;  %v3089_v44 = vld [vmem:[#allocation4 + $0xa8] sm:$0xf0] }
 0x1bd   :  { %2090 = vmatmul.bf16.vlgmr.msrb.gmra.mxu1 %v4809_v3  ;;  %5768 = vst [vmem:[#allocation24_spill] sm:$0xff] %v4958_v63  ;;  %v4966_v25 = vor.u32 %v3595_v5, %v3241_v23  ;;  %v3557_v3 = vld [vmem:[#allocation4 + $0xa4] sm:$0xf]  ;;  %v3233_v8 = vld [vmem:[#allocation4 + $0x1c8] sm:$0xf0] }
 0x1be   :  { %2175 = vmatpush.bf16.msra.mxu1 %v4958_v63  ;;  %5770 = vst [vmem:[#allocation11_spill] sm:$0xff] %v4964_v31  ;;  %v4968_v29 = vpop.f32.mrf.mxu3  ;;  %v4972_v63 = vor.u32 %v3558_v62, %v3087_v11  ;;  %v3223_v49 = vld [vmem:[#allocation4 + $0x1b0] sm:$0xf]  ;;  %v4976_v23 = vor.u32 %v3593_v4, %v3233_v8  ;;  %v3555_v11 = vld [vmem:[#allocation4 + $0x94] sm:$0xf] }
 0x1bf   :  { %5771 = vst [vmem:[#allocation33_spill] sm:$0xff] %v4966_v25  ;;  %v4978_v5 = vor.u32 %v3592_v19, %v3223_v49  ;;  %v3225_v4 = vld [vmem:[#allocation4 + $0x1b8] sm:$0xf0] }
 0x1c0   :  { %2132 = vmatpush.bf16.msrb.mxu0 %v4964_v31  ;;  %5772 = vst [vmem:[#allocation20_spill] sm:$0xff] %v4972_v63  ;;  %2018 = vmatpush.bf16.msra.mxu3 %v4972_v63  ;;  %v3079_v31 = vld [vmem:[#allocation4 + $0x90] sm:$0xf] }
 0x1c1   :  { %v4962_v46 = vpop.f32.mrf.mxu2  ;;  %5774 = vst [vmem:[#allocation31_spill] sm:$0xff] %v4976_v23  ;;  %2063 = vmatpush.bf16.msra.mxu2 %v4978_v5 }
 0x1c2   :  { %5769 = vst [vmem:[#allocation26_spill] sm:$0xff] %v4962_v46  ;;  %v1165_v40 = vpop.f32.mrf.mxu1  ;;  %2176 = vmatpush.bf16.msra.mxu1 %v4966_v25  ;;  %v4984_v25 = vor.u32 %v3556_v27, %v3079_v31  ;;  %v3215_v27 = vld [vmem:[#allocation4 + $0x1a0] sm:$0xf]  ;;  %v3590_v31 = vld [vmem:[#allocation4 + $0x1a4] sm:$0xf0] }
 0x1c3   :  { %v1219_v42 = vpop.f32.mrf.mxu0  ;;  %v4974_v40 = vor.u32 %v3557_v3, %v3089_v44  ;;  %5775 = vst [vmem:[#allocation37_spill] sm:$0xff] %v4978_v5  ;;  %v3081_v3 = vld [vmem:[#allocation4 + $0x98] sm:$0xf0]  ;;  %v3591_v44 = vld [vmem:[#allocation4 + $0x1b4] sm:$0xf] }
 0x1c4   :  { %5776 = vst [vmem:[#allocation40_spill] sm:$0xff] %v4984_v25  ;;  %v4988_v49 = vor.u32 %v3555_v11, %v3081_v3  ;;  %v4990_v63 = vor.u32 %v3591_v44, %v3225_v4  ;;  %2019 = vmatpush.bf16.msra.mxu3 %v4984_v25  ;;  %v5000_v11 = vor.u32 %v3590_v31, %v3215_v27  ;;  %v3553_v3 = vld [vmem:[#allocation4 + $0x84] sm:$0xf]  ;;  %v3073_v44 = vld [vmem:[#allocation4 + $0x88] sm:$0xf0] }
 0x1c5   :  { %5773 = vst [vmem:[#allocation27_spill] sm:$0xff] %v4974_v40  ;;  %2133 = vmatpush.bf16.msrb.mxu0 %v4974_v40  ;;  %v993_v40 = vadd.f32 %v4729_v38, %v4846_v41  ;;  %v3589_v4 = vld [vmem:[#allocation4 + $0x1a4] sm:$0xf]  ;;  %v3217_v5 = vld [vmem:[#allocation4 + $0x1a8] sm:$0xf0] }
 0x1c6   :  { %2177 = vmatpush.bf16.msra.mxu1 %v4976_v23  ;;  %5778 = vst [vmem:[#allocation42_spill] sm:$0xff] %v4988_v49  ;;  %v4995_v46 = vpop.f32.mrf.mxu3  ;;  %2064 = vmatpush.bf16.msra.mxu2 %v5000_v11  ;;  %v3587_v27 = vld [vmem:[#allocation4 + $0x194] sm:$0xf] }
 0x1c7   :  { %5779 = vst [vmem:[#allocation43_spill] sm:$0xff] %v4990_v63  ;;  %v1000_v25 = vmax.f32 %v993_v40, 0.0 }
 0x1c8   :  { %5780 = vst [vmem:[#allocation44_spill] sm:$0xff] %v5000_v11  ;;  %v3586_v11 = vld [vmem:[#allocation4 + $0x184] sm:$0xf0] }
 0x1c9   :  { %v1247_v62 = vpop.f32.mrf.mxu2  ;;  %2134 = vmatpush.bf16.msrb.mxu0 %v4988_v49  ;;  %v5007_v49 = vor.u32 %v3589_v4, %v3217_v5  ;;  %v1007_v5 = vpack.c.bf16 %v1000_v25, %v1000_v25  ;;  %v3199_v4 = vld [vmem:[#allocation4 + $0x180] sm:$0xf] }
 0x1ca   :  { %v4986_v8 = vadd.f32 %v1247_v62, %v1219_v42  ;;  %v1391_v19 = vpop.f32.mrf.mxu1  ;;  %2178 = vmatpush.bf16.msra.mxu1 %v4990_v63  ;;  %v3071_v42 = vld [vmem:[#allocation4 + $0x80] sm:$0xf]  ;;  %v3554_v62 = vld [vmem:[#allocation4 + $0x84] sm:$0xf0]  ;;  %v3207_v63 = vld [vmem:[#allocation4 + $0x190] sm:$0xf] }
 0x1cb   :  { %v1221_v23 = vpop.f32.mrf.mxu0  ;;  %v5002_v41 = vor.u32 %v3554_v62, %v3071_v42  ;;  %v3209_v42 = vld [vmem:[#allocation4 + $0x198] sm:$0xf0]  ;;  %v1420_v25 = vadd.f32 %v4908_v60, %v1391_v19  ;;  %v3551_v19 = vld [vmem:[#allocation4 + $0x74] sm:$0xf] }
 0x1cc   :  { %5777 = vst [vmem:[#allocation41_spill] sm:$0xff] %v4986_v8  ;;  %v5004_v23 = vor.u32 %v3553_v3, %v3073_v44  ;;  %v3588_v8 = vld [vmem:[#allocation4 + $0x194] sm:$0xf0]  ;;  %v5015_v62 = vor.u32 %v3587_v27, %v3209_v42 }
 0x1cd   :  { %2095 = vmatmul.bf16.gmra.mxu1 %v4853_v57  ;;  %5781 = vst [vmem:[#allocation45_spill] sm:$0xff] %v5002_v41  ;;  %2020 = vmatpush.bf16.msra.mxu3 %v5002_v41  ;;  %v5011_v57 = vor.u32 %v3588_v8, %v3207_v63  ;;  %v3585_v41 = vld [vmem:[#allocation4 + $0x184] sm:$0xf]  ;;  %v3201_v63 = vld [vmem:[#allocation4 + $0x188] sm:$0xf0]  ;;  %v1585_v8 = vunpack.c.l.b16 %v1007_v5 }
 0x1ce   :  { %2135 = vmatpush.bf16.msrb.mxu0 %v5004_v23  ;;  %2179 = vmatpush.bf16.msra.mxu1 %v5007_v49  ;;  %v5018_v44 = vpop.f32.mrf.mxu3 }
 0x1cf   :  { %5782 = vst [vmem:[#allocation46_spill] sm:$0xff] %v5011_v57  ;;  %2065 = vmatpush.bf16.msra.mxu2 %v5011_v57  ;;  %v5031_v57 = vpack.c.b16 %v1585_v8, %v1585_v8 }
 0x1d1   :  { %v1249_v31 = vpop.f32.mrf.mxu2 }
 0x1d2   :  { %2226 = vmatpush.bf16.msra.mxu0 %v4666_v48  ;;  %v1393_v40 = vpop.f32.mrf.mxu1  ;;  %v5020_v31 = vor.u32 %v3586_v11, %v3199_v4  ;;  %2180 = vmatpush.bf16.msra.mxu1 %v5015_v62  ;;  %v5024_v48 = vor.u32 %v3585_v41, %v3201_v63  ;;  %v1494_v41 = vmax.f32 %v4835_v24, %v1420_v25 }
 0x1d3   :  { %v1447_v3 = vpop.f32.mrf.mxu0  ;;  %v1179_v24 = vadd.f32 %v4792_v6, %v4855_v18  ;;  %v3583_v18 = vld [vmem:[#allocation4 + $0x174] sm:$0xf] }
 0x1d4   :  { %2066 = vmatpush.bf16.msra.mxu2 %v5020_v31 }
 0x1d6   :  { %2227 = vmatpush.bf16.msra.mxu0 %v4673_v9  ;;  %2181 = vmatpush.bf16.msra.mxu1 %v5024_v48  ;;  %v5033_v9 = vpop.f32.mrf.mxu3 }
 0x1d9   :  { %v1475_v27 = vpop.f32.mrf.mxu2 }
 0x1da   :  { %2228 = vmatpush.bf16.msra.mxu0 %v4685_v59  ;;  %v1476_v42 = vadd.f32 %v1475_v27, %v1447_v3  ;;  %v1396_v11 = vpop.f32.mrf.mxu1  ;;  %2272 = vmatpush.bf16.msrb.mxu1 %v4689_v43  ;;  %v1422_v59 = vadd.f32 %v4923_v55, %v1393_v40  ;;  %v3065_v43 = vld [vmem:[#allocation4 + $0x78] sm:$0xf0] }
 0x1db   :  { %v1449_v4 = vpop.f32.mrf.mxu0  ;;  %v5042_v8 = vor.u32 %v3551_v19, %v3065_v43  ;;  %v3547_v19 = vld [vmem:[#allocation4 + $0x54] sm:$0xf]  ;;  %v3049_v43 = vld [vmem:[#allocation4 + $0x58] sm:$0xf0] }
 0x1dc   :  { %v1495_v5 = vmax.f32 %v4869_v61, %v1476_v42  ;;  %v1496_v40 = vmax.f32 %v1179_v24, %v1422_v59  ;;  %v3549_v42 = vld [vmem:[#allocation4 + $0x64] sm:$0xf] }
 0x1dd   :  { %2100 = vmatmul.bf16.gmra.mxu1 %v5031_v57  ;;  %2105 = vmatpush.bf16.msrb.mxu3 %v5042_v8 }
 0x1de   :  { %2229 = vmatpush.bf16.msra.mxu0 %v4697_v21  ;;  %v1508_v60 = vmax.f32 %v1494_v41, %v1495_v5  ;;  %2273 = vmatpush.bf16.msrb.mxu1 %v4699_v15  ;;  %v1235_v21 = vadd.f32 %v4886_v52, %v4874_v39  ;;  %v1436_v55 = vpop.f32.mrf.mxu3  ;;  %v3057_v41 = vld [vmem:[#allocation4 + $0x68] sm:$0xf0]  ;;  %v3193_v39 = vld [vmem:[#allocation4 + $0x178] sm:$0xf0]  ;;  %v3581_v52 = vld [vmem:[#allocation4 + $0x164] sm:$0xf] }
 0x1e0   :  { %v1515_v3 = vadd.f32 %v4729_v38, %v1508_v60  ;;  %v1425_v60 = vadd.f32 %v4951_v28, %v1396_v11 }
 0x1e1   :  { %v1477_v63 = vpop.f32.mrf.mxu2 }
 0x1e2   :  { %2230 = vmatpush.bf16.msra.mxu0 %v4717_v33  ;;  %v1478_v61 = vadd.f32 %v1477_v63, %v1449_v4  ;;  %v1398_v25 = vpop.f32.mrf.mxu1  ;;  %2274 = vmatpush.bf16.msrb.mxu1 %v4721_v50  ;;  %v1522_v5 = vmax.f32 %v1515_v3, 0.0  ;;  %v5051_v33 = vor.u32 %v3549_v42, %v3057_v41  ;;  %v5055_v50 = vor.u32 %v3583_v18, %v3193_v39  ;;  %v3185_v4 = vld [vmem:[#allocation4 + $0x168] sm:$0xf0]  ;;  %v3577_v18 = vld [vmem:[#allocation4 + $0x144] sm:$0xf] }
 0x1e3   :  { %v1452_v15 = vpop.f32.mrf.mxu0  ;;  %v5063_v63 = vor.u32 %v3547_v19, %v3049_v43  ;;  %v1498_v11 = vmax.f32 %v4872_v56, %v1425_v60  ;;  %v3041_v42 = vld [vmem:[#allocation4 + $0x48] sm:$0xf0]  ;;  %v3543_v39 = vld [vmem:[#allocation4 + $0x34] sm:$0xf]  ;;  %v1427_v60 = vadd.f32 %v4968_v29, %v1398_v25  ;;  %v3161_v25 = vld [vmem:[#allocation4 + $0x138] sm:$0xf0] }
 0x1e4   :  { %v1497_v27 = vmax.f32 %v1235_v21, %v1478_v61  ;;  %2106 = vmatpush.bf16.msrb.mxu3 %v5051_v33  ;;  %2151 = vmatpush.bf16.msrb.mxu2 %v5055_v50  ;;  %v3575_v29 = vld [vmem:[#allocation4 + $0x134] sm:$0xf] }
 0x1e6   :  { %2231 = vmatpush.bf16.msra.mxu0 %v4737_v16  ;;  %v1509_v6 = vmax.f32 %v1496_v40, %v1497_v27  ;;  %2275 = vmatpush.bf16.msrb.mxu1 %v4741_v30  ;;  %v5061_v16 = vor.u32 %v3581_v52, %v3185_v4  ;;  %v1529_v30 = vpack.c.bf16 %v1522_v5, %v1522_v5  ;;  %v3545_v27 = vld [vmem:[#allocation4 + $0x44] sm:$0xf]  ;;  %v3033_v52 = vld [vmem:[#allocation4 + $0x38] sm:$0xf0] }
 0x1e7   :  { %v5071_v41 = vor.u32 %v3545_v27, %v3041_v42 }
 0x1e8   :  { %v1516_v59 = vadd.f32 %v4729_v38, %v1509_v6  ;;  %2107 = vmatpush.bf16.msrb.mxu3 %v5063_v63  ;;  %2152 = vmatpush.bf16.msrb.mxu2 %v5061_v16  ;;  %v3177_v6 = vld [vmem:[#allocation4 + $0x158] sm:$0xf0] }
 0x1e9   :  { %v1480_v3 = vpop.f32.mrf.mxu2 }
 0x1ea   :  { %2232 = vmatpush.bf16.msra.mxu0 %v4749_v14  ;;  %v1523_v24 = vmax.f32 %v1516_v59, 0.0  ;;  %v1481_v21 = vadd.f32 %v1480_v3, %v1452_v15  ;;  %v1401_v61 = vpop.f32.mrf.mxu1  ;;  %2276 = vmatpush.bf16.msrb.mxu1 %v4751_v58  ;;  %v1557_v14 = vunpack.c.l.b16 %v1529_v30  ;;  %v3579_v58 = vld [vmem:[#allocation4 + $0x154] sm:$0xf]  ;;  %v5082_v59 = vor.u32 %v3543_v39, %v3033_v52 }
 0x1eb   :  { %v1454_v28 = vpop.f32.mrf.mxu0  ;;  %v5075_v56 = vor.u32 %v3579_v58, %v3177_v6  ;;  %v1240_v3 = vadd.f32 %v4916_v20, %v4902_v7  ;;  %v5099_v20 = vor.u32 %v3575_v29, %v3161_v25  ;;  %v1430_v58 = vadd.f32 %v4995_v46, %v1401_v61  ;;  %v3145_v61 = vld [vmem:[#allocation4 + $0x118] sm:$0xf0] }
 0x1ec   :  { %v1530_v55 = vpack.c.bf16 %v1523_v24, %v1523_v24  ;;  %v1499_v40 = vmax.f32 %v4897_v17, %v1481_v21  ;;  %2108 = vmatpush.bf16.msrb.mxu3 %v5071_v41  ;;  %v3169_v17 = vld [vmem:[#allocation4 + $0x148] sm:$0xf0] }
 0x1ed   :  { %2153 = vmatpush.bf16.msrb.mxu2 %v5075_v56  ;;  %v5085_v43 = vor.u32 %v3577_v18, %v3169_v17  ;;  %v3539_v18 = vld [vmem:[#allocation4 + $0x14] sm:$0xf] }
 0x1ee   :  { %2233 = vmatpush.bf16.msra.mxu0 %v4758_v54  ;;  %v1558_v15 = vunpack.c.l.b16 %v1530_v55  ;;  %v1510_v5 = vmax.f32 %v1498_v11, %v1499_v40  ;;  %2277 = vmatpush.bf16.msrb.mxu1 %v4760_v36  ;;  %v1184_v36 = vadd.f32 %v4818_v53, %v4888_v47  ;;  %v3541_v55 = vld [vmem:[#allocation4 + $0x24] sm:$0xf]  ;;  %v3025_v40 = vld [vmem:[#allocation4 + $0x28] sm:$0xf0] }
 0x1ef   :  { %v5095_v7 = vor.u32 %v3541_v55, %v3025_v40  ;;  %v1189_v55 = vadd.f32 %v4857_v22, %v4921_v35  ;;  %v3321_v35 = vld [vmem:[#allocation4 + $0x278] sm:$0xf0] }
 0x1f0   :  { %v5078_v4 = vpack.c.b16 %v1558_v15, %v1557_v14  ;;  %v1517_v54 = vadd.f32 %v4729_v38, %v1510_v5  ;;  %2109 = vmatpush.bf16.msrb.mxu3 %v5082_v59  ;;  %v1500_v53 = vmax.f32 %v1184_v36, %v1427_v60  ;;  %v3573_v14 = vld [vmem:[#allocation4 + $0x124] sm:$0xf]  ;;  %v3153_v5 = vld [vmem:[#allocation4 + $0x128] sm:$0xf0] }
 0x1f1   :  { %v1482_v19 = vpop.f32.mrf.mxu2  ;;  %2154 = vmatpush.bf16.msrb.mxu2 %v5085_v43  ;;  %v5109_v39 = vor.u32 %v3573_v14, %v3153_v5 }
 0x1f2   :  { %v1524_v30 = vmax.f32 %v1517_v54, 0.0  ;;  %v1483_v24 = vadd.f32 %v1482_v19, %v1454_v28  ;;  %v1403_v21 = vpop.f32.mrf.mxu1  ;;  %2021 = vmatmul.bf16.vlgmr.msra.gmra.mxu3 %v5078_v4  ;;  %2136 = vmatmul.bf16.vlgmr.msrb.gmra.mxu0 %v5078_v4  ;;  %v1502_v19 = vmax.f32 %v4900_v1, %v1430_v58 }
 0x1f3   :  { %v1457_v11 = vpop.f32.mrf.mxu0  ;;  %2278 = vmatpush.bf16.msrb.mxu1 %v4776_v12  ;;  %2318 = vmatpush.bf16.msrb.mxu0 %v4805_v2  ;;  %v3017_v2 = vld [vmem:[#allocation4 + $0x18] sm:$0xf0] }
 0x1f4   :  { %v1531_v47 = vpack.c.bf16 %v1524_v30, %v1524_v30  ;;  %v1501_v27 = vmax.f32 %v1240_v3, %v1483_v24  ;;  %2110 = vmatpush.bf16.msrb.mxu3 %v5095_v7  ;;  %v5111_v52 = vor.u32 %v3539_v18, %v3017_v2  ;;  %v3009_v30 = vld [vmem:[#allocation4 + $0x8] sm:$0xf0] }
 0x1f5   :  { %2155 = vmatpush.bf16.msrb.mxu2 %v5099_v20 }
 0x1f6   :  { %v1559_v28 = vunpack.c.l.b16 %v1531_v47  ;;  %v1511_v42 = vmax.f32 %v1500_v53, %v1501_v27  ;;  %v3569_v27 = vld [vmem:[#allocation4 + $0x104] sm:$0xf] }
 0x1f7   :  { %2279 = vmatpush.bf16.msrb.mxu1 %v4787_v34  ;;  %2319 = vmatpush.bf16.msrb.mxu0 %v4813_v45  ;;  %v3571_v45 = vld [vmem:[#allocation4 + $0x114] sm:$0xf] }
 0x1f8   :  { %v5103_v12 = vpack.c.b16 %v1559_v28, %v1558_v15  ;;  %v1518_v6 = vadd.f32 %v4729_v38, %v1511_v42  ;;  %2111 = vmatpush.bf16.msrb.mxu3 %v5111_v52  ;;  %v3537_v15 = vld [vmem:[#allocation4 + $0x4] sm:$0xf]  ;;  %v5126_v24 = vor.u32 %v3571_v45, %v3145_v61  ;;  %v5784_v42 = vld [vmem:[#allocation35_spill] sm:$0xff] }
 0x1f9   :  { %v1485_v17 = vpop.f32.mrf.mxu2  ;;  %2156 = vmatpush.bf16.msrb.mxu2 %v5109_v39  ;;  %v5128_v29 = vor.u32 %v3537_v15, %v3009_v30  ;;  %v5789_v30 = vld [vmem:[#allocation30_spill] sm:$0xff] }
 0x1fa   :  { %v1525_v60 = vmax.f32 %v1518_v6, 0.0  ;;  %v1486_v54 = vadd.f32 %v1485_v17, %v1457_v11  ;;  %v1406_v34 = vpop.f32.mrf.mxu1  ;;  %2067 = vmatmul.bf16.vlgmr.msra.gmra.mxu2 %v5103_v12  ;;  %2182 = vmatmul.bf16.vlgmr.msra.gmra.mxu1 %v5103_v12  ;;  %v5786_v17 = vld [vmem:[#allocation19_spill] sm:$0xff] }
 0x1fb   :  { %v5116_v38 = vadd.f32 %v5033_v9, %v1406_v34  ;;  %v1459_v46 = vpop.f32.mrf.mxu0  ;;  %2364 = vmatpush.bf16.msra.mxu1 %v4919_v32  ;;  %2320 = vmatpush.bf16.msrb.mxu0 %v4821_v37  ;;  %v1432_v32 = vadd.f32 %v5018_v44, %v1403_v21  ;;  %v5138_v37 = vld [vmem:[%s5603_s2] ss:$0 sm:$0xff]  ;;  %v5787_v34 = vld [vmem:[#allocation39_spill] sm:$0xff] }
 0x1fc   :  { %v1532_v36 = vpack.c.bf16 %v1525_v60, %v1525_v60  ;;  %v1503_v3 = vmax.f32 %v4942_v0, %v1486_v54  ;;  %2112 = vmatpush.bf16.msrb.mxu3 %v5128_v29 }
 0x1fd   :  { %v1506_v9 = vmax.f32 %v4947_v13, %v5116_v38  ;;  %2157 = vmatpush.bf16.msrb.mxu2 %v5126_v24  ;;  %v1504_v14 = vmax.f32 %v1189_v55, %v1432_v32  ;;  %v5788_v38 = vld [vmem:[#allocation16_spill] sm:$0xff]  ;;  %v5792_v55 = vld [vmem:[#allocation11_spill] sm:$0xff] }
 0x1fe   :  { %v1560_v25 = vunpack.c.l.b16 %v1532_v36  ;;  %v1512_v11 = vmax.f32 %v1502_v19, %v1503_v3  ;;  %v3613_v36 = vld [vmem:[#allocation4 + $0x264] sm:$0xf]  ;;  %v3313_v3 = vld [vmem:[#allocation4 + $0x268] sm:$0xf0] }
 0x1ff   :  { %2365 = vmatpush.bf16.msra.mxu1 %v4930_v10  ;;  %2321 = vmatpush.bf16.msrb.mxu0 %v4832_v26  ;;  %v5783_v10 = vld [vmem:[#allocation26_spill] sm:$0xff]  ;;  %v3615_v26 = vld [vmem:[#allocation4 + $0x274] sm:$0xf] }
 0x200   :  { %v5132_v1 = vpack.c.b16 %v1560_v25, %v1559_v28  ;;  %v1519_v0 = vadd.f32 %v5138_v37, %v1512_v11  ;;  %v1245_v40 = vadd.f32 %v5783_v10, %v4949_v51  ;;  %v3137_v28 = vld [vmem:[#allocation4 + $0x108] sm:$0xf0]  ;;  %v5153_v6 = vor.u32 %v3615_v26, %v3321_v35  ;;  %v5790_v11 = vld [vmem:[#allocation41_spill] sm:$0xff] }
 0x201   :  { %v1487_v13 = vpop.f32.mrf.mxu2  ;;  %v5150_v22 = vor.u32 %v3569_v27, %v3137_v28  ;;  %v5785_v51 = vld [vmem:[#allocation14_spill] sm:$0xff] }
 0x202   :  { %v1526_v53 = vmax.f32 %v1519_v0, 0.0  ;;  %v1488_v44 = vadd.f32 %v1487_v13, %v1459_v46  ;;  %v1408_v21 = vpop.f32.mrf.mxu1  ;;  %2026 = vmatmul.bf16.gmra.mxu3 %v5132_v1  ;;  %2141 = vmatmul.bf16.gmra.mxu0 %v5132_v1  ;;  %v5169_v0 = vor.u32 %v3613_v36, %v3313_v3  ;;  %v5791_v13 = vld [vmem:[#allocation29_spill] sm:$0xff]  ;;  %v3297_v35 = vld [vmem:[#allocation4 + $0x248] sm:$0xf0]  ;;  %v5800_v36 = vld [vmem:[#allocation40_spill] sm:$0xff] }
 0x203   :  { %v1462_v47 = vpop.f32.mrf.mxu0  ;;  %2366 = vmatpush.bf16.msra.mxu1 %v5784_v42  ;;  %2322 = vmatpush.bf16.msrb.mxu0 %v5785_v51  ;;  %v5794_v21 = vld [vmem:[#allocation22_spill] sm:$0xff]  ;;  %v3305_v42 = vld [vmem:[#allocation4 + $0x258] sm:$0xf0]  ;;  %v5796_v51 = vld [vmem:[#allocation25_spill] sm:$0xff] }
 0x204   :  { %v1533_v5 = vpack.c.bf16 %v1526_v53, %v1526_v53  ;;  %v1505_v58 = vmax.f32 %v1245_v40, %v1488_v44  ;;  %2158 = vmatpush.bf16.msrb.mxu2 %v5150_v22  ;;  %2197 = vmatpush.bf16.msra.mxu3 %v5153_v6  ;;  %v5793_v53 = vld [vmem:[#allocation36_spill] sm:$0xff]  ;;  %v5801_v3 = vld [vmem:[#allocation23_spill] sm:$0xff] }
 0x206   :  { %v1561_v18 = vunpack.c.l.b16 %v1533_v5  ;;  %v1513_v2 = vmax.f32 %v1504_v14, %v1505_v58  ;;  %v3609_v58 = vld [vmem:[#allocation4 + $0x244] sm:$0xf] }
 0x207   :  { %2323 = vmatpush.bf16.msrb.mxu0 %v5787_v34  ;;  %2367 = vmatpush.bf16.msra.mxu1 %v5788_v38 }
 0x208   :  { %2249 = vmatpush.bf16.msra.mxu2 %v5786_v17  ;;  %v1520_v60 = vadd.f32 %v5138_v37, %v1513_v2  ;;  %v5159_v54 = vpack.c.b16 %v1561_v18, %v1560_v25  ;;  %2198 = vmatpush.bf16.msra.mxu3 %v5169_v0  ;;  %v5177_v44 = vpack.c.b16 %v1561_v18, %v1561_v18  ;;  %v5797_v2 = vld [vmem:[#allocation42_spill] sm:$0xff]  ;;  %v5798_v17 = vld [vmem:[#allocation28_spill] sm:$0xff] }
 0x209   :  { %v1490_v46 = vpop.f32.mrf.mxu2 }
 0x20a   :  { %v1527_v45 = vmax.f32 %v1520_v60, 0.0  ;;  %v1491_v61 = vadd.f32 %v1490_v46, %v1462_v47  ;;  %v5163_v15 = vpop.f32.mrf.mxu1  ;;  %2072 = vmatmul.bf16.gmra.mxu2 %v5159_v54  ;;  %2187 = vmatmul.bf16.gmra.mxu1 %v5159_v54  ;;  %v5795_v47 = vld [vmem:[#allocation27_spill] sm:$0xff] }
 0x20b   :  { %v1464_v19 = vpop.f32.mrf.mxu0  ;;  %2324 = vmatpush.bf16.msrb.mxu0 %v5791_v13  ;;  %2368 = vmatpush.bf16.msra.mxu1 %v5792_v55  ;;  %v3607_v46 = vld [vmem:[#allocation4 + $0x234] sm:$0xf]  ;;  %v5802_v13 = vld [vmem:[#allocation45_spill] sm:$0xff]  ;;  %v5803_v55 = vld [vmem:[#allocation12_spill] sm:$0xff] }
 0x20c   :  { %2250 = vmatpush.bf16.msra.mxu2 %v5789_v30  ;;  %v1534_v25 = vpack.c.bf16 %v1527_v45, %v1527_v45  ;;  %v1507_v32 = vmax.f32 %v5790_v11, %v1491_v61  ;;  %v3289_v45 = vld [vmem:[#allocation4 + $0x238] sm:$0xf0]  ;;  %v3605_v30 = vld [vmem:[#allocation4 + $0x224] sm:$0xf] }
 0x20d   :  { %v5799_v61 = vld [vmem:[#allocation20_spill] sm:$0xff]  ;;  %v5208_v19 = vor.u32 %v3607_v46, %v3289_v45  ;;  %v5808_v46 = vld [vmem:[#allocation31_spill] sm:$0xff] }
 0x20e   :  { %v1577_v10 = vunpack.c.l.b16 %v1534_v25  ;;  %v5173_v40 = vmax.f32 %v1506_v9, %v1507_v32  ;;  %v3611_v9 = vld [vmem:[#allocation4 + $0x254] sm:$0xf]  ;;  %v3281_v25 = vld [vmem:[#allocation4 + $0x228] sm:$0xf0] }
 0x20f   :  { %2325 = vmatpush.bf16.msrb.mxu0 %v5794_v21  ;;  %2369 = vmatpush.bf16.msra.mxu1 %v5795_v47  ;;  %v5189_v5 = vor.u32 %v3611_v9, %v3305_v42  ;;  %v5218_v32 = vor.u32 %v3605_v30, %v3281_v25  ;;  %v3273_v21 = vld [vmem:[#allocation4 + $0x218] sm:$0xf0]  ;;  %v5805_v9 = vld [vmem:[#allocation34_spill] sm:$0xff]  ;;  %v3601_v42 = vld [vmem:[#allocation4 + $0x204] sm:$0xf] }
 0x210   :  { %2251 = vmatpush.bf16.msra.mxu2 %v5793_v53  ;;  %v5181_v27 = vpack.c.b16 %v1577_v10, %v1561_v18  ;;  %v5194_v18 = vor.u32 %v3609_v58, %v3297_v35  ;;  %v5197_v60 = vpack.c.b16 %v1577_v10, %v1577_v10  ;;  %v5804_v10 = vld [vmem:[#allocation24_spill] sm:$0xff]  ;;  %v3603_v53 = vld [vmem:[#allocation4 + $0x214] sm:$0xf]  ;;  %v3265_v58 = vld [vmem:[#allocation4 + $0x208] sm:$0xf0] }
 0x211   :  { %v1492_v28 = vpop.f32.mrf.mxu2  ;;  %2199 = vmatpush.bf16.msra.mxu3 %v5189_v5  ;;  %v5224_v47 = vor.u32 %v3603_v53, %v3273_v21  ;;  %v5813_v25 = vld [vmem:[#allocation38_spill] sm:$0xff] }
 0x212   :  { %v5183_v26 = vpop.f32.mrf.mxu1  ;;  %2031 = vmatmul.bf16.gmra.mxu3 %v5177_v44  ;;  %2146 = vmatmul.bf16.gmra.mxu0 %v5177_v44 }
 0x213   :  { %v5187_v14 = vpop.f32.mrf.mxu0  ;;  %2370 = vmatpush.bf16.msra.mxu1 %v5797_v2  ;;  %v5806_v2 = vld [vmem:[#allocation33_spill] sm:$0xff] }
 0x214   :  { %2252 = vmatpush.bf16.msra.mxu2 %v5796_v51  ;;  %v5233_v51 = vor.u32 %v3601_v42, %v3265_v58 }
 0x215   :  { %2200 = vmatpush.bf16.msra.mxu3 %v5194_v18 }
 0x217   :  { %2371 = vmatpush.bf16.msra.mxu1 %v5004_v23 }
 0x218   :  { %2253 = vmatpush.bf16.msra.mxu2 %v5798_v17  ;;  %v5807_v17 = vld [vmem:[#allocation21_spill] sm:$0xff] }
 0x219   :  { %2201 = vmatpush.bf16.msra.mxu3 %v5208_v19 }
 0x21a   :  { %v5201_v34 = vpop.f32.mrf.mxu1  ;;  %2077 = vmatmul.bf16.gmra.mxu2 %v5197_v60  ;;  %2192 = vmatmul.bf16.gmra.mxu1 %v5197_v60 }
 0x21b   :  { %v5205_v38 = vpop.f32.mrf.mxu0 }
 0x21c   :  { %2254 = vmatpush.bf16.msra.mxu2 %v5799_v61  ;;  %v5809_v61 = vld [vmem:[#allocation18_spill] sm:$0xff] }
 0x21d   :  { %2202 = vmatpush.bf16.msra.mxu3 %v5218_v32 }
 0x220   :  { %2255 = vmatpush.bf16.msra.mxu2 %v5800_v36 }
 0x221   :  { %2203 = vmatpush.bf16.msra.mxu3 %v5224_v47 }
 0x222   :  { %v5212_v23 = vpop.f32.mrf.mxu1  ;;  %2113 = vmatmul.bf16.vlgmr.msrb.gmra.mxu3 %v5801_v3  ;;  %2234 = vmatmul.bf16.vlgmr.msra.gmra.mxu0 %v5078_v4  ;;  %v5811_v3 = vld [vmem:[#allocation43_spill] sm:$0xff] }
 0x223   :  { %v5216_v11 = vpop.f32.mrf.mxu0  ;;  %2410 = vmatpush.bf16.msra.mxu0 %v5803_v55  ;;  %v5816_v55 = vld [vmem:[#allocation32_spill] sm:$0xff] }
 0x224   :  { %2256 = vmatpush.bf16.msra.mxu2 %v5802_v13 }
 0x225   :  { %2204 = vmatpush.bf16.msra.mxu3 %v5233_v51 }
 0x227   :  { %2411 = vmatpush.bf16.msra.mxu0 %v5804_v10  ;;  %v5817_v10 = vld [vmem:[#allocation44_spill] sm:$0xff] }
 0x229   :  { %2295 = vmatpush.bf16.msrb.mxu3 %v5807_v17 }
 0x22a   :  { %v5226_v28 = vpop.f32.mrf.mxu1  ;;  %2159 = vmatmul.bf16.vlgmr.msrb.gmra.mxu2 %v5805_v9  ;;  %2280 = vmatmul.bf16.vlgmr.msrb.gmra.mxu1 %v5103_v12 }
 0x22b   :  { %v5230_v35 = vpop.f32.mrf.mxu0  ;;  %2341 = vmatpush.bf16.msrb.mxu2 %v5042_v8  ;;  %2412 = vmatpush.bf16.msra.mxu0 %v5806_v2  ;;  %v5810_v8 = vld [vmem:[#allocation15_spill] sm:$0xff] }
 0x22d   :  { %2296 = vmatpush.bf16.msrb.mxu3 %v5810_v8 }
 0x22f   :  { %2342 = vmatpush.bf16.msrb.mxu2 %v5051_v33  ;;  %2413 = vmatpush.bf16.msra.mxu0 %v5808_v46  ;;  %v5812_v33 = vld [vmem:[#allocation17_spill] sm:$0xff] }
 0x231   :  { %2297 = vmatpush.bf16.msrb.mxu3 %v5812_v33 }
 0x232   :  { %v2011_v45 = vpop.f32.mrf.mxu1  ;;  %2118 = vmatmul.bf16.gmra.mxu3 %v5809_v61  ;;  %2239 = vmatmul.bf16.gmra.mxu0 %v5132_v1 }
 0x233   :  { %v5243_v36 = vpop.f32.mrf.mxu0  ;;  %2343 = vmatpush.bf16.msrb.mxu2 %v5063_v63  ;;  %2414 = vmatpush.bf16.msra.mxu0 %v5811_v3  ;;  %v5814_v63 = vld [vmem:[#allocation10_spill] sm:$0xff] }
 0x235   :  { %2298 = vmatpush.bf16.msrb.mxu3 %v5814_v63 }
 0x237   :  { %2344 = vmatpush.bf16.msrb.mxu2 %v5071_v41  ;;  %2415 = vmatpush.bf16.msra.mxu0 %v5007_v49  ;;  %v5815_v41 = vld [vmem:[#allocation37_spill] sm:$0xff] }
 0x239   :  { %2299 = vmatpush.bf16.msrb.mxu3 %v5815_v41 }
 0x23a   :  { %v5251_v30 = vpop.f32.mrf.mxu1  ;;  %2164 = vmatmul.bf16.gmra.mxu2 %v5813_v25  ;;  %2285 = vmatmul.bf16.gmra.mxu1 %v5159_v54 }
 0x23b   :  { %v2057_v13 = vpop.f32.mrf.mxu0  ;;  %2345 = vmatpush.bf16.msrb.mxu2 %v5082_v59  ;;  %2416 = vmatpush.bf16.msra.mxu0 %v5015_v62  ;;  %v5818_v59 = vld [vmem:[#allocation46_spill] sm:$0xff] }
 0x23d   :  { %2300 = vmatpush.bf16.msrb.mxu3 %v5817_v10 }
 0x23f   :  { %2346 = vmatpush.bf16.msrb.mxu2 %v5095_v7  ;;  %2417 = vmatpush.bf16.msra.mxu0 %v5024_v48  ;;  %v5819_v7 = vld [vmem:[#allocation9_spill] sm:$0xff] }
 0x241   :  { %2301 = vmatpush.bf16.msrb.mxu3 %v5818_v59 }
 0x242   :  { %v5261_v49 = vpop.f32.mrf.mxu1  ;;  %2123 = vmatmul.bf16.gmra.mxu3 %v5816_v55  ;;  %2244 = vmatmul.bf16.gmra.mxu0 %v5177_v44 }
 0x243   :  { %2347 = vmatpush.bf16.msrb.mxu2 %v5111_v52 }
 0x245   :  { %2302 = vmatpush.bf16.msrb.mxu3 %v5020_v31  ;;  %v1521_v31 = vadd.f32 %v5138_v37, %v5173_v40 }
 0x247   :  { %2348 = vmatpush.bf16.msrb.mxu2 %v5128_v29  ;;  %v5820_v29 = vld [vmem:[#allocation13_spill] sm:$0xff] }
 0x24a   :  { %v5269_v62 = vpop.f32.mrf.mxu1  ;;  %2169 = vmatmul.bf16.gmra.mxu2 %v5819_v7  ;;  %2290 = vmatmul.bf16.gmra.mxu1 %v5197_v60 }
 0x252   :  { %v5274_v48 = vpop.f32.mrf.mxu1  ;;  %2205 = vmatmul.bf16.vlgmr.msra.gmra.mxu3 %v5809_v61  ;;  %2326 = vmatmul.bf16.vlgmr.msrb.gmra.mxu0 %v5132_v1 }
 0x253   :  { %2387 = vmatpush.bf16.msra.mxu3 %v5055_v50 }
 0x257   :  { %2388 = vmatpush.bf16.msra.mxu3 %v5061_v16  ;;  %v1528_v16 = vmax.f32 %v1521_v31, 0.0 }
 0x25a   :  { %v5280_v52 = vpop.f32.mrf.mxu1  ;;  %2257 = vmatmul.bf16.vlgmr.msra.gmra.mxu2 %v5805_v9  ;;  %2372 = vmatmul.bf16.vlgmr.msra.gmra.mxu1 %v5805_v9 }
 0x25b   :  { %2433 = vmatpush.bf16.msra.mxu2 %v5153_v6  ;;  %2389 = vmatpush.bf16.msra.mxu3 %v5075_v56  ;;  %v1535_v56 = vpack.c.bf16 %v1528_v16, %v1528_v16 }
 0x25f   :  { %2434 = vmatpush.bf16.msra.mxu2 %v5169_v0  ;;  %2390 = vmatpush.bf16.msra.mxu3 %v5085_v43  ;;  %v2221_v43 = vunpack.c.l.b16 %v1535_v56 }
 0x262   :  { %v2103_v50 = vpop.f32.mrf.mxu1  ;;  %2210 = vmatmul.bf16.gmra.mxu3 %v5820_v29  ;;  %2331 = vmatmul.bf16.gmra.mxu0 %v5181_v27 }
 0x263   :  { %2435 = vmatpush.bf16.msra.mxu2 %v5189_v5  ;;  %2391 = vmatpush.bf16.msra.mxu3 %v5099_v20  ;;  %v5302_v20 = vpack.c.b16 %v2221_v43, %v2221_v43 }
 0x267   :  { %2436 = vmatpush.bf16.msra.mxu2 %v5194_v18  ;;  %2392 = vmatpush.bf16.msra.mxu3 %v5109_v39 }
 0x26a   :  { %2262 = vmatmul.bf16.gmra.mxu2 %v5813_v25  ;;  %2377 = vmatmul.bf16.gmra.mxu1 %v5813_v25 }
 0x26b   :  { %2437 = vmatpush.bf16.msra.mxu2 %v5208_v19  ;;  %2393 = vmatpush.bf16.msra.mxu3 %v5126_v24 }
 0x26f   :  { %v2137_v37 = vpop.f32.mrf.mxu0  ;;  %2438 = vmatpush.bf16.msra.mxu2 %v5218_v32  ;;  %2394 = vmatpush.bf16.msra.mxu3 %v5150_v22 }
 0x272   :  { %2215 = vmatmul.bf16.gmra.mxu3 %v5031_v57  ;;  %2336 = vmatmul.bf16.gmra.mxu0 %v5302_v20 }
 0x273   :  { %2439 = vmatpush.bf16.msra.mxu2 %v5224_v47 }
 0x275   :  { %v2022_v39 = vpop.f32.mrf.mxu3 }
 0x276   :  { %v2023_v24 = vadd.f32 %v2022_v39, %v5163_v15 }
 0x277   :  { %v5307_v6 = vpop.f32.mrf.mxu0  ;;  %v2183_v0 = vpop.f32.mrf.mxu1  ;;  %2440 = vmatpush.bf16.msra.mxu2 %v5233_v51 }
 0x278   :  { %v2046_v22 = vadd.f32 %v5187_v14, %v2023_v24 }
 0x27a   :  { %2267 = vmatmul.bf16.gmra.mxu2 %v5819_v7  ;;  %2382 = vmatmul.bf16.gmra.mxu1 %v5819_v7 }
 0x27d   :  { %v2024_v40 = vpop.f32.mrf.mxu3  ;;  %v2068_v5 = vpop.f32.mrf.mxu2 }
 0x27e   :  { %v2069_v18 = vadd.f32 %v2068_v5, %v2046_v22  ;;  %v2025_v53 = vadd.f32 %v2024_v40, %v5183_v26 }
 0x27f   :  { %v2142_v19 = vpop.f32.mrf.mxu0  ;;  %v5314_v32 = vpop.f32.mrf.mxu1 }
 0x280   :  { %v5318_v21 = vadd.f32 %v5251_v30, %v2069_v18  ;;  %v2048_v15 = vadd.f32 %v5205_v38, %v2025_v53 }
 0x282   :  { %2303 = vmatmul.bf16.vlgmr.msrb.gmra.mxu3 %v5809_v61  ;;  %2418 = vmatmul.bf16.vlgmr.msra.gmra.mxu0 %v5809_v61 }
 0x285   :  { %v2027_v47 = vpop.f32.mrf.mxu3  ;;  %v2070_v9 = vpop.f32.mrf.mxu2 }
 0x286   :  { %v5323_v14 = vadd.f32 %v2070_v9, %v2048_v15  ;;  %v2028_v51 = vadd.f32 %v2027_v47, %v5201_v34 }
 0x287   :  { %v2144_v42 = vpop.f32.mrf.mxu0  ;;  %v2188_v58 = vpop.f32.mrf.mxu1 }
 0x288   :  { %v2051_v26 = vadd.f32 %v5216_v11, %v2028_v51 }
 0x28a   :  { %2349 = vmatmul.bf16.vlgmr.msrb.gmra.mxu2 %v5078_v4 }
 0x28d   :  { %v2029_v2 = vpop.f32.mrf.mxu3  ;;  %v2073_v17 = vpop.f32.mrf.mxu2 }
 0x28e   :  { %v2074_v46 = vadd.f32 %v2073_v17, %v2051_v26  ;;  %v2030_v61 = vadd.f32 %v2029_v2, %v5212_v23 }
 0x28f   :  { %v2147_v45 = vpop.f32.mrf.mxu0  ;;  %v2190_v8 = vpop.f32.mrf.mxu1 }
 0x290   :  { %v5330_v38 = vadd.f32 %v5269_v62, %v2074_v46  ;;  %v2053_v34 = vadd.f32 %v5230_v35, %v2030_v61 }
 0x292   :  { %2308 = vmatmul.bf16.gmra.mxu3 %v5820_v29  ;;  %2423 = vmatmul.bf16.gmra.mxu0 %v5820_v29 }
 0x295   :  { %v2032_v3 = vpop.f32.mrf.mxu3  ;;  %v2075_v4 = vpop.f32.mrf.mxu2 }
 0x296   :  { %v5335_v33 = vadd.f32 %v2075_v4, %v2053_v34  ;;  %v2033_v25 = vadd.f32 %v2032_v3, %v5226_v28 }
 0x297   :  { %v2149_v11 = vpop.f32.mrf.mxu0  ;;  %v2193_v30 = vpop.f32.mrf.mxu1 }
 0x298   :  { %v2056_v23 = vadd.f32 %v5243_v36, %v2033_v25 }
 0x29a   :  { %2354 = vmatmul.bf16.gmra.mxu2 %v5132_v1 }
 0x29d   :  { %v2034_v13 = vpop.f32.mrf.mxu3  ;;  %v2078_v63 = vpop.f32.mrf.mxu2 }
 0x29e   :  { %v2079_v41 = vadd.f32 %v2078_v63, %v2056_v23 }
 0x29f   :  { %v2195_v55 = vpop.f32.mrf.mxu1  ;;  %v2235_v10 = vpop.f32.mrf.mxu0 }
 0x2a0   :  { %v5341_v59 = vadd.f32 %v5280_v52, %v2079_v41 }
 0x2a2   :  { %2313 = vmatmul.bf16.gmra.mxu3 %v5031_v57  ;;  %2428 = vmatmul.bf16.gmra.mxu0 %v5031_v57 }
 0x2a5   :  { %v2080_v35 = vpop.f32.mrf.mxu2  ;;  %v2114_v62 = vpop.f32.mrf.mxu3 }
 0x2a6   :  { %v2138_v7 = vadd.f32 %v2137_v37, %v2114_v62 }
 0x2a7   :  { %v2237_v28 = vpop.f32.mrf.mxu0  ;;  %v2281_v31 = vpop.f32.mrf.mxu1 }
 0x2aa   :  { %2359 = vmatmul.bf16.gmra.mxu2 %v5177_v44 }
 0x2ad   :  { %v2116_v36 = vpop.f32.mrf.mxu3  ;;  %v2160_v50 = vpop.f32.mrf.mxu2 }
 0x2ae   :  { %v2161_v29 = vadd.f32 %v2160_v50, %v2138_v7 }
 0x2af   :  { %v2240_v16 = vpop.f32.mrf.mxu0  ;;  %v2283_v56 = vpop.f32.mrf.mxu1 }
 0x2b0   :  { %v2184_v43 = vadd.f32 %v2183_v0, %v2161_v29 }
 0x2b2   :  { %2395 = vmatmul.bf16.vlgmr.msra.gmra.mxu3 %v5103_v12 }
 0x2b5   :  { %v2119_v52 = vpop.f32.mrf.mxu3  ;;  %v2162_v39 = vpop.f32.mrf.mxu2 }
 0x2b6   :  { %v2143_v24 = vadd.f32 %v2142_v19, %v2119_v52 }
 0x2b7   :  { %v2242_v22 = vpop.f32.mrf.mxu0  ;;  %v2286_v57 = vpop.f32.mrf.mxu1 }
 0x2ba   :  { %2441 = vmatmul.bf16.vlgmr.msra.gmra.mxu2 %v5132_v1 }
 0x2bd   :  { %v2121_v37 = vpop.f32.mrf.mxu3  ;;  %v2165_v40 = vpop.f32.mrf.mxu2 }
 0x2be   :  { %v2166_v5 = vadd.f32 %v2165_v40, %v2143_v24  ;;  %v2145_v15 = vadd.f32 %v2144_v42, %v2121_v37  ;;  %v2140_v42 = vadd.f32 %v5307_v6, %v2116_v36 }
 0x2bf   :  { %v2245_v18 = vpop.f32.mrf.mxu0  ;;  %v2288_v44 = vpop.f32.mrf.mxu1 }
 0x2c0   :  { %v2189_v53 = vadd.f32 %v2188_v58, %v2166_v5 }
 0x2c2   :  { %2400 = vmatmul.bf16.gmra.mxu3 %v5159_v54 }
 0x2c5   :  { %v2124_v47 = vpop.f32.mrf.mxu3  ;;  %v2167_v0 = vpop.f32.mrf.mxu2 }
 0x2c6   :  { %v2148_v9 = vadd.f32 %v2147_v45, %v2124_v47  ;;  %v2168_v12 = vadd.f32 %v2167_v0, %v2145_v15 }
 0x2c7   :  { %v2247_v51 = vpop.f32.mrf.mxu0  ;;  %v2291_v26 = vpop.f32.mrf.mxu1 }
 0x2c8   :  { %v2191_v19 = vadd.f32 %v2190_v8, %v2168_v12  ;;  %v2163_v8 = vadd.f32 %v2162_v39, %v2140_v42 }
 0x2ca   :  { %2446 = vmatmul.bf16.gmra.mxu2 %v5181_v27  ;;  %v2186_v27 = vadd.f32 %v5314_v32, %v2163_v8 }
 0x2cd   :  { %v2126_v2 = vpop.f32.mrf.mxu3  ;;  %v2170_v1 = vpop.f32.mrf.mxu2 }
 0x2ce   :  { %v2171_v17 = vadd.f32 %v2170_v1, %v2148_v9  ;;  %v3623_v1 = vld [vmem:[%s5606_s5 + $0x30] sm:$0xff] }
 0x2cf   :  { %v2293_v46 = vpop.f32.mrf.mxu1  ;;  %v2327_v61 = vpop.f32.mrf.mxu0 }
 0x2d0   :  { %v2194_v34 = vadd.f32 %v2193_v30, %v2171_v17  ;;  %v3631_v46 = vld [vmem:[%s5606_s5 + $0x70] sm:$0xff] }
 0x2d2   :  { %2405 = vmatmul.bf16.gmra.mxu3 %v5197_v60 }
 0x2d5   :  { %v2172_v58 = vpop.f32.mrf.mxu2  ;;  %v2206_v54 = vpop.f32.mrf.mxu3 }
 0x2d6   :  { %v5352_v3 = vadd.f32 %v2206_v54, %v2184_v43  ;;  %v3622_v58 = vld [vmem:[%s5606_s5 + $0x28] sm:$0xff]  ;;  %v5414_v54 = vadd.f32 %v5261_v49, %v5323_v14  ;;  %v3621_v49 = vld [vmem:[%s5606_s5 + $0x20] sm:$0xff] }
 0x2d7   :  { %v2329_v45 = vpop.f32.mrf.mxu0  ;;  %v5354_v4 = vpop.f32.mrf.mxu1 }
 0x2da   :  { %2451 = vmatmul.bf16.gmra.mxu2 %v5302_v20 }
 0x2dd   :  { %v2208_v11 = vpop.f32.mrf.mxu3  ;;  %v2258_v25 = vpop.f32.mrf.mxu2 }
 0x2de   :  { %v5358_v23 = vadd.f32 %v2208_v11, %v2186_v27  ;;  %v2259_v30 = vadd.f32 %v2258_v25, %v2235_v10  ;;  %v3630_v27 = vld [vmem:[%s5606_s5 + $0x68] sm:$0xff] }
 0x2df   :  { %v5360_v60 = vpop.f32.mrf.mxu0  ;;  %v5362_v13 = vpop.f32.mrf.mxu1 }
 0x2e0   :  { %v2282_v6 = vadd.f32 %v2281_v31, %v2259_v30  ;;  %v3647_v30 = vld [vmem:[%s5606_s5 + $0xf0] sm:$0xff] }
 0x2e5   :  { %v2211_v63 = vpop.f32.mrf.mxu3  ;;  %v2260_v41 = vpop.f32.mrf.mxu2 }
 0x2e6   :  { %v5364_v55 = vadd.f32 %v2211_v63, %v2189_v53  ;;  %v2261_v35 = vadd.f32 %v2260_v41, %v2237_v28  ;;  %v3620_v41 = vld [vmem:[%s5606_s5 + $0x18] sm:$0xff] }
 0x2e7   :  { %v5366_v62 = vpop.f32.mrf.mxu0  ;;  %v5368_v20 = vpop.f32.mrf.mxu1 }
 0x2e8   :  { %v2284_v32 = vadd.f32 %v2283_v56, %v2261_v35 }
 0x2ed   :  { %v2213_v7 = vpop.f32.mrf.mxu3  ;;  %v2263_v36 = vpop.f32.mrf.mxu2 }
 0x2ee   :  { %v5370_v50 = vadd.f32 %v2213_v7, %v2191_v19  ;;  %v2264_v10 = vadd.f32 %v2263_v36, %v2240_v16  ;;  %v3628_v36 = vld [vmem:[%s5606_s5 + $0x58] sm:$0xff] }
 0x2ef   :  { %v5372_v29 = vpop.f32.mrf.mxu0  ;;  %v5374_v43 = vpop.f32.mrf.mxu1 }
 0x2f0   :  { %v2287_v31 = vadd.f32 %v2286_v57, %v2264_v10 }
 0x2f5   :  { %v2216_v52 = vpop.f32.mrf.mxu3  ;;  %v2265_v39 = vpop.f32.mrf.mxu2 }
 0x2f6   :  { %v5376_v24 = vadd.f32 %v2216_v52, %v2194_v34  ;;  %v2266_v28 = vadd.f32 %v2265_v39, %v2242_v22  ;;  %v3624_v22 = vld [vmem:[%s5606_s5 + $0x38] sm:$0xff] }
 0x2f7   :  { %v2339_v37 = vpop.f32.mrf.mxu0  ;;  %v5378_v40 = vpop.f32.mrf.mxu1  ;;  %2599 = vmatpush.bf16.msrb.mxu3 %v3624_v22 }
 0x2f8   :  { %v2289_v5 = vadd.f32 %v2288_v44, %v2266_v28  ;;  %v5462_v28 = vadd.f32 %v5274_v48, %v5335_v33  ;;  %v3626_v48 = vld [vmem:[%s5606_s5 + $0x48] sm:$0xff] }
 0x2fb   :  { %2600 = vmatpush.bf16.msrb.mxu3 %v3623_v1  ;;  %v3636_v1 = vld [vmem:[%s5606_s5 + $0x98] sm:$0xff] }
 0x2fd   :  { %v2218_v56 = vpop.f32.mrf.mxu3  ;;  %v2268_v53 = vpop.f32.mrf.mxu2 }
 0x2fe   :  { %v2269_v15 = vadd.f32 %v2268_v53, %v2245_v18  ;;  %v3632_v18 = vld [vmem:[%s5606_s5 + $0x78] sm:$0xff]  ;;  %v3627_v56 = vld [vmem:[%s5606_s5 + $0x50] sm:$0xff]  ;;  %v3638_v53 = vld [vmem:[%s5606_s5 + $0xa8] sm:$0xff] }
 0x2ff   :  { %v2385_v47 = vpop.f32.mrf.mxu1  ;;  %v5380_v0 = vpop.f32.mrf.mxu0  ;;  %2538 = vmatpush.bf16.msrb.mxu1 %v3632_v18  ;;  %2601 = vmatpush.bf16.msrb.mxu3 %v3622_v58  ;;  %v3646_v18 = vld [vmem:[%s5606_s5 + $0xe8] sm:$0xff]  ;;  %v3635_v58 = vld [vmem:[%s5606_s5 + $0x90] sm:$0xff] }
 0x300   :  { %v5382_v16 = vadd.f32 %v2291_v26, %v2269_v15  ;;  %v3617_v47 = vld [vmem:[%s5606_s5] sm:$0xff] }
 0x303   :  { %2539 = vmatpush.bf16.msrb.mxu1 %v3631_v46  ;;  %2602 = vmatpush.bf16.msrb.mxu3 %v3621_v49  ;;  %v3634_v49 = vld [vmem:[%s5606_s5 + $0x88] sm:$0xff] }
 0x305   :  { %v2270_v9 = vpop.f32.mrf.mxu2  ;;  %v2304_v12 = vpop.f32.mrf.mxu3 }
 0x306   :  { %v2305_v57 = vadd.f32 %v2304_v12, %v2282_v6  ;;  %v3629_v6 = vld [vmem:[%s5606_s5 + $0x60] sm:$0xff] }
 0x307   :  { %v5384_v51 = vpop.f32.mrf.mxu0  ;;  %2540 = vmatpush.bf16.msrb.mxu1 %v3630_v27  ;;  %2603 = vmatpush.bf16.msrb.mxu3 %v3620_v41  ;;  %v3637_v9 = vld [vmem:[%s5606_s5 + $0xa0] sm:$0xff]  ;;  %v3655_v27 = vld [vmem:[%s5606_s5 + $0x130] sm:$0xff] }
 0x308   :  { %v5386_v19 = vadd.f32 %v2327_v61, %v2305_v57  ;;  %v3648_v61 = vld [vmem:[%s5606_s5 + $0xf8] sm:$0xff]  ;;  %v3633_v41 = vld [vmem:[%s5606_s5 + $0x80] sm:$0xff] }
 0x309   :  { %2722 = vmatpush.bf16.msrb.mxu2 %v3648_v61 }
 0x30a   :  { %v2456_v44 = vmax.f32 %v5318_v21, %v5386_v19 }
 0x30b   :  { %2541 = vmatpush.bf16.msrb.mxu1 %v3629_v6  ;;  %v3643_v6 = vld [vmem:[%s5606_s5 + $0xd0] sm:$0xff] }
 0x30d   :  { %v2306_v26 = vpop.f32.mrf.mxu3  ;;  %v5396_v2 = vpop.f32.mrf.mxu2  ;;  %2723 = vmatpush.bf16.msrb.mxu2 %v3647_v30 }
 0x30e   :  { %v2307_v17 = vadd.f32 %v2306_v26, %v2284_v32  ;;  %v3639_v32 = vld [vmem:[%s5606_s5 + $0xb0] sm:$0xff]  ;;  %v3625_v26 = vld [vmem:[%s5606_s5 + $0x40] sm:$0xff] }
 0x30f   :  { %v5407_v34 = vpop.f32.mrf.mxu0  ;;  %2542 = vmatpush.bf16.msrb.mxu1 %v3628_v36  ;;  %v2374_v36 = vadd.f32 %v5354_v4, %v5396_v2  ;;  %v3641_v4 = vld [vmem:[%s5606_s5 + $0xc0] sm:$0xff]  ;;  %v3651_v2 = vld [vmem:[%s5606_s5 + $0x110] sm:$0xff] }
 0x310   :  { %v5416_v42 = vadd.f32 %v2329_v45, %v2307_v17  ;;  %v3640_v45 = vld [vmem:[%s5606_s5 + $0xb8] sm:$0xff]  ;;  %v3645_v17 = vld [vmem:[%s5606_s5 + $0xe0] sm:$0xff] }
 0x311   :  { %2660 = vmatpush.bf16.msrb.mxu0 %v3640_v45  ;;  %2724 = vmatpush.bf16.msrb.mxu2 %v3646_v18 }
 0x312   :  { %v2458_v8 = vmax.f32 %v5414_v54, %v5416_v42 }
 0x313   :  { %2543 = vmatpush.bf16.msrb.mxu1 %v3627_v56 }
 0x315   :  { %v2309_v11 = vpop.f32.mrf.mxu3  ;;  %v5423_v25 = vpop.f32.mrf.mxu2  ;;  %2661 = vmatpush.bf16.msrb.mxu0 %v3639_v32  ;;  %2725 = vmatpush.bf16.msrb.mxu2 %v3645_v17  ;;  %v3653_v32 = vld [vmem:[%s5606_s5 + $0x120] sm:$0xff] }
 0x316   :  { %v2310_v14 = vadd.f32 %v2309_v11, %v2287_v31  ;;  %v3644_v11 = vld [vmem:[%s5606_s5 + $0xd8] sm:$0xff] }
 0x317   :  { %v5437_v63 = vpop.f32.mrf.mxu0  ;;  %2544 = vmatpush.bf16.msrb.mxu1 %v3626_v48  ;;  %v2376_v48 = vadd.f32 %v5362_v13, %v5423_v25 }
 0x318   :  { %v5443_v35 = vadd.f32 %v5360_v60, %v2310_v14  ;;  %v3619_v60 = vld [vmem:[%s5606_s5 + $0x10] sm:$0xff]  ;;  %v3654_v14 = vld [vmem:[%s5606_s5 + $0x128] sm:$0xff] }
 0x319   :  { %2604 = vmatpush.bf16.msrb.mxu3 %v3619_v60  ;;  %2662 = vmatpush.bf16.msrb.mxu0 %v3638_v53  ;;  %v3642_v60 = vld [vmem:[%s5606_s5 + $0xc8] sm:$0xff] }
 0x31a   :  { %v2460_v7 = vmax.f32 %v5330_v38, %v5443_v35  ;;  %2726 = vmatpush.bf16.msrb.mxu2 %v3644_v11 }
 0x31b   :  { %2545 = vmatpush.bf16.msrb.mxu1 %v3625_v26 }
 0x31d   :  { %v2311_v10 = vpop.f32.mrf.mxu3  ;;  %v5453_v31 = vpop.f32.mrf.mxu2  ;;  %2663 = vmatpush.bf16.msrb.mxu0 %v3637_v9 }
 0x31e   :  { %v2312_v52 = vadd.f32 %v2311_v10, %v2289_v5  ;;  %v3618_v5 = vld [vmem:[%s5606_s5 + $0x8] sm:$0xff]  ;;  %2727 = vmatpush.bf16.msrb.mxu2 %v3643_v6 }
 0x31f   :  { %v5458_v39 = vpop.f32.mrf.mxu0  ;;  %2605 = vmatpush.bf16.msrb.mxu3 %v3618_v5 }
 0x320   :  { %v5465_v37 = vadd.f32 %v5366_v62, %v2312_v52  ;;  %v3652_v52 = vld [vmem:[%s5606_s5 + $0x118] sm:$0xff] }
 0x321   :  { %2664 = vmatpush.bf16.msrb.mxu0 %v3636_v1  ;;  %v2379_v1 = vadd.f32 %v5368_v20, %v5453_v31 }
 0x322   :  { %v2462_v15 = vmax.f32 %v5462_v28, %v5465_v37  ;;  %2728 = vmatpush.bf16.msrb.mxu2 %v3642_v60 }
 0x323   :  { %2606 = vmatpush.bf16.msrb.mxu3 %v3617_v47 }
 0x325   :  { %v2314_v33 = vpop.f32.mrf.mxu3  ;;  %v5481_v62 = vpop.f32.mrf.mxu2  ;;  %2665 = vmatpush.bf16.msrb.mxu0 %v3635_v58 }
 0x326   :  { %v2315_v12 = vadd.f32 %v2314_v33, %v5382_v16  ;;  %v3656_v16 = vld [vmem:[%s5606_s5 + $0x138] sm:$0xff]  ;;  %2729 = vmatpush.bf16.msrb.mxu2 %v3641_v4  ;;  %v2381_v20 = vadd.f32 %v5374_v43, %v5481_v62 }
 0x327   :  { %v2431_v57 = vpop.f32.mrf.mxu0  ;;  %2784 = vmatpush.bf16.msra.mxu1 %v3656_v16  ;;  %v3660_v4 = vld [vmem:[#allocation6 + $0x18] sm:$0xff] }
 0x328   :  { %v5491_v22 = vadd.f32 %v5372_v29, %v2315_v12  ;;  %v3650_v12 = vld [vmem:[%s5606_s5 + $0x108] sm:$0xff] }
 0x329   :  { %2666 = vmatpush.bf16.msrb.mxu0 %v3634_v49 }
 0x32a   :  { %v2464_v29 = vmax.f32 %v5341_v59, %v5491_v22  ;;  %v3658_v59 = vld [vmem:[#allocation6 + $0x8] sm:$0xff]  ;;  %v3657_v22 = vld [vmem:[#allocation6] sm:$0xff] }
 0x32b   :  { %2785 = vmatpush.bf16.msra.mxu1 %v3655_v27 }
 0x32d   :  { %v2316_v46 = vpop.f32.mrf.mxu3  ;;  %v5510_v61 = vpop.f32.mrf.mxu2  ;;  %2667 = vmatpush.bf16.msrb.mxu0 %v3633_v41 }
 0x32e   :  { %v2384_v6 = vadd.f32 %v5378_v40, %v5510_v61 }
 0x32f   :  { %2786 = vmatpush.bf16.msra.mxu1 %v3654_v14 }
 0x333   :  { %2787 = vmatpush.bf16.msra.mxu1 %v3653_v32 }
 0x335   :  { %v2362_v45 = vpop.f32.mrf.mxu2  ;;  %v2396_v30 = vpop.f32.mrf.mxu3 }
 0x336   :  { %v2397_v10 = vadd.f32 %v2396_v30, %v2374_v36 }
 0x337   :  { %2788 = vmatpush.bf16.msra.mxu1 %v3652_v52 }
 0x338   :  { %v2420_v56 = vadd.f32 %v5380_v0, %v2397_v10  ;;  %v3675_v0 = vld [vmem:[%s5605_s4] ss:$0 sm:$0xff] }
 0x33b   :  { %2789 = vmatpush.bf16.msra.mxu1 %v3651_v2 }
 0x33d   :  { %v2398_v53 = vpop.f32.mrf.mxu3  ;;  %v2442_v5 = vpop.f32.mrf.mxu2 }
 0x33e   :  { %v2443_v33 = vadd.f32 %v2442_v5, %v2420_v56  ;;  %v2399_v47 = vadd.f32 %v2398_v53, %v2376_v48  ;;  %v3662_v53 = vld [vmem:[#allocation6 + $0x28] sm:$0xff]  ;;  %v3661_v5 = vld [vmem:[#allocation6 + $0x20] sm:$0xff] }
 0x33f   :  { %2790 = vmatpush.bf16.msra.mxu1 %v3650_v12 }
 0x340   :  { %v2457_v9 = vmax.f32 %v5352_v3, %v2443_v33  ;;  %v2422_v13 = vadd.f32 %v5384_v51, %v2399_v47  ;;  %v3649_v3 = vld [vmem:[%s5606_s5 + $0x100] sm:$0xff] }
 0x342   :  { %v2466_v57 = vmax.f32 %v2456_v44, %v2457_v9 }
 0x343   :  { %2791 = vmatpush.bf16.msra.mxu1 %v3649_v3 }
 0x344   :  { %v2475_v18 = vadd.f32 %v3675_v0, %v2466_v57 }
 0x345   :  { %v2401_v25 = vpop.f32.mrf.mxu3  ;;  %v2444_v26 = vpop.f32.mrf.mxu2 }
 0x346   :  { %v2480_v16 = vmax.f32 %v2475_v18, 0.0  ;;  %v2445_v17 = vadd.f32 %v2444_v26, %v2422_v13  ;;  %v2402_v58 = vadd.f32 %v2401_v25, %v2379_v1  ;;  %v3676_v13 = vld [vmem:[%s5607_s6] ss:$0 sm:$0xff] }
 0x348   :  { %v2485_v46 = vpack.c.bf16 %v2480_v16, %v2480_v16  ;;  %v2459_v21 = vmax.f32 %v5358_v23, %v2445_v17  ;;  %v2425_v44 = vadd.f32 %v5407_v34, %v2402_v58  ;;  %v3677_v58 = vld [vmem:[%s5609_s8] ss:$0 sm:$0xff] }
 0x34a   :  { %v2467_v51 = vmax.f32 %v2458_v8, %v2459_v21  ;;  %2607 = vmatmul.bf16.vlgmr.msrb.gmra.mxu3 %v2485_v46 }
 0x34c   :  { %v2476_v19 = vadd.f32 %v3675_v0, %v2467_v51 }
 0x34d   :  { %v2403_v27 = vpop.f32.mrf.mxu3  ;;  %v2447_v11 = vpop.f32.mrf.mxu2 }
 0x34e   :  { %v2481_v31 = vmax.f32 %v2476_v19, 0.0  ;;  %v2448_v49 = vadd.f32 %v2447_v11, %v2425_v44  ;;  %v2404_v45 = vadd.f32 %v2403_v27, %v2381_v20 }
 0x350   :  { %v2486_v14 = vpack.c.bf16 %v2481_v31, %v2481_v31  ;;  %v2461_v23 = vmax.f32 %v5364_v55, %v2448_v49  ;;  %v2427_v8 = vadd.f32 %v5437_v63, %v2404_v45 }
 0x352   :  { %v2468_v54 = vmax.f32 %v2460_v7, %v2461_v23  ;;  %2546 = vmatmul.bf16.vlgmr.msrb.gmra.mxu1 %v2486_v14 }
 0x354   :  { %v2477_v42 = vadd.f32 %v3675_v0, %v2468_v54 }
 0x355   :  { %v2406_v34 = vpop.f32.mrf.mxu3  ;;  %v2449_v30 = vpop.f32.mrf.mxu2 }
 0x356   :  { %v2482_v43 = vmax.f32 %v2477_v42, 0.0  ;;  %v2450_v62 = vadd.f32 %v2449_v30, %v2427_v8  ;;  %v2407_v32 = vadd.f32 %v2406_v34, %v2384_v6 }
 0x358   :  { %v2487_v41 = vpack.c.bf16 %v2482_v43, %v2482_v43  ;;  %v2463_v36 = vmax.f32 %v5370_v50, %v2450_v62  ;;  %v2430_v35 = vadd.f32 %v5458_v39, %v2407_v32  ;;  %v3663_v39 = vld [vmem:[#allocation6 + $0x30] sm:$0xff] }
 0x35a   :  { %v2469_v38 = vmax.f32 %v2462_v15, %v2463_v36  ;;  %2668 = vmatmul.bf16.vlgmr.msrb.gmra.mxu0 %v2487_v41  ;;  %v3664_v15 = vld [vmem:[#allocation6 + $0x38] sm:$0xff] }
 0x35b   :  { %2873 = vmatpush.bf16.msra.mxu3 %v3664_v15 }
 0x35c   :  { %v2478_v55 = vadd.f32 %v3675_v0, %v2469_v38 }
 0x35d   :  { %v2408_v63 = vpop.f32.mrf.mxu3  ;;  %v2452_v7 = vpop.f32.mrf.mxu2 }
 0x35e   :  { %v2483_v10 = vmax.f32 %v2478_v55, 0.0  ;;  %v2453_v60 = vadd.f32 %v2452_v7, %v2430_v35 }
 0x35f   :  { %2874 = vmatpush.bf16.msra.mxu3 %v3663_v39 }
 0x360   :  { %v2488_v52 = vpack.c.bf16 %v2483_v10, %v2483_v10  ;;  %v2465_v40 = vmax.f32 %v5376_v24, %v2453_v60  ;;  %v3659_v24 = vld [vmem:[#allocation6 + $0x10] sm:$0xff] }
 0x362   :  { %v2470_v61 = vmax.f32 %v2464_v29, %v2465_v40  ;;  %2730 = vmatmul.bf16.vlgmr.msrb.gmra.mxu2 %v2488_v52 }
 0x363   :  { %2875 = vmatpush.bf16.msra.mxu3 %v3662_v53 }
 0x364   :  { %v2479_v50 = vadd.f32 %v3675_v0, %v2470_v61 }
 0x365   :  { %v2454_v56 = vpop.f32.mrf.mxu2 }
 0x366   :  { %v2484_v28 = vmax.f32 %v2479_v50, 0.0 }
 0x367   :  { %2876 = vmatpush.bf16.msra.mxu3 %v3661_v5 }
 0x368   :  { %v2489_v37 = vpack.c.bf16 %v2484_v28, %v2484_v28 }
 0x36a   :  { %2792 = vmatmul.bf16.vlgmr.msra.gmra.mxu1 %v2489_v37 }
 0x36b   :  { %2877 = vmatpush.bf16.msra.mxu3 %v3660_v4 }
 0x36f   :  { %2878 = vmatpush.bf16.msra.mxu3 %v3659_v24 }
 0x373   :  { %2879 = vmatpush.bf16.msra.mxu3 %v3658_v59 }
 0x377   :  { %2880 = vmatpush.bf16.msra.mxu3 %v3657_v22 }
 0x3cd   :  { %v2608_v29 = vpop.f32.mrf.mxu3 }
 0x3cf   :  { %v2547_v2 = vpop.f32.mrf.mxu1 }
 0x3d0   :  { %v2609_v0 = vadd.f32 %v2608_v29, %v2547_v2 }
 0x3d5   :  { %v2610_v48 = vpop.f32.mrf.mxu3 }
 0x3d7   :  { %v2549_v33 = vpop.f32.mrf.mxu1  ;;  %v2669_v47 = vpop.f32.mrf.mxu0 }
 0x3d8   :  { %v2673_v12 = vadd.f32 %v2669_v47, %v2609_v0 }
 0x3df   :  { %v2671_v9 = vpop.f32.mrf.mxu0 }
 0x3e5   :  { %v2731_v57 = vpop.f32.mrf.mxu2 }
 0x3e6   :  { %v2735_v18 = vadd.f32 %v2731_v57, %v2673_v12 }
 0x3e7   :  { %v2793_v25 = vpop.f32.mrf.mxu1 }
 0x3e8   :  { %v2797_v26 = vadd.f32 %v2793_v25, %v2735_v18 }
 0x3ea   :  { %v2802_v3 = vadd.f32 %v3676_v13, %v2797_v26 }
 0x3ec   :  { %v2803_v1 = vmax.f32 %v2802_v3, 0.0 }
 0x3ed   :  { %v2733_v16 = vpop.f32.mrf.mxu2 }
 0x3ee   :  { %v2804_v17 = vpack.c.bf16 %v2803_v1, %v2803_v1 }
 0x3ef   :  { %v2795_v46 = vpop.f32.mrf.mxu1 }
 0x3f0   :  { %2881 = vmatmul.bf16.vlgmr.msra.gmra.mxu3 %v2804_v17 }
 0x473   :  { %v2882_v21 = vpop.f32.mrf.mxu3 }
 0x474   :  { %v2883_v51 = vadd.f32 %v3677_v58, %v2882_v21 }
 0x476   :  { %2886 = vst [vmem:[%s5610_s9] sm:$0xff] %v2883_v51 }
 0x47b   :  { %v2884_v19 = vpop.f32.mrf.mxu3 }
 0x47c   :  { %2891 = vsyncpa [#allocation3], 1 }
 0x47d   :  { %2892 = vsyncpa [#allocation5], 1 }

</bundles_post_ra>
